<compile_context>
chip_gen: v5e
topology: v5e:2x2
jax: 0.10.0
libtpu: 0.0.40
codegen_flags: <defaults>
</compile_context>

<pallas_src>
import functools

import jax
import jax.numpy as jnp
from jax.experimental import pallas as pl
from jax.experimental.pallas import tpu as pltpu

EPS = 1e-5


# ---------------------------------------------------------------------------
# Kernel A: per-feature sum / sum-of-squares over the whole batch.
# Grid axis over batch tiles is a reduction ("arbitrary"); outputs are
# VMEM-resident accumulators (constant index_map), zeroed on the first step.
# Used both for BN1 stats (over x) and BN2 stats (over h1).
# ---------------------------------------------------------------------------
def bn_stats_kernel(x_ref, s_ref, ss_ref):
    @pl.when(pl.program_id(0) == 0)
    def _init():
        s_ref[...] = jnp.zeros_like(s_ref)
        ss_ref[...] = jnp.zeros_like(ss_ref)

    x = x_ref[...].astype(jnp.float32)
    s_ref[...] += jnp.sum(x, axis=0, keepdims=True)
    ss_ref[...] += jnp.sum(x * x, axis=0, keepdims=True)


# ---------------------------------------------------------------------------
# Kernel B: BN1-apply (precomputed scale/shift) -> Linear1 (bf16 MXU) -> ReLU.
# Pure map over batch tiles -> "parallel".  When the batch was zero-padded,
# padded rows of h1 are forced to zero so the downstream BN2 statistics
# (and their 1/N normalization with the true N) stay exact.
# ---------------------------------------------------------------------------
def layer1_kernel(scale1_ref, shift1_ref, w1_ref, bb1_ref, x_ref, h1_ref, *,
                  tile_rows, n_valid, masked):
    xn = x_ref[...].astype(jnp.float32) * scale1_ref[...] + shift1_ref[...]
    h = jnp.dot(xn.astype(jnp.bfloat16), w1_ref[...],
                preferred_element_type=jnp.float32) + bb1_ref[...]
    h = jnp.maximum(h, 0.0)
    if masked:
        row = (pl.program_id(0) * tile_rows
               + jax.lax.broadcasted_iota(jnp.int32, (tile_rows, 1), 0))
        h = jnp.where(row < n_valid, h, 0.0)
    h1_ref[...] = h.astype(h1_ref.dtype)  # bf16 activation to HBM


# ---------------------------------------------------------------------------
# Kernel C: BN2-apply -> Linear2 (bf16) -> ReLU -> embedding Linear (bf16).
# Pure map over batch tiles -> "parallel".
# ---------------------------------------------------------------------------
def layer23_kernel(scale2_ref, shift2_ref, w2_ref, bb2_ref, w3_ref, bb3_ref,
                   h1_ref, o_ref):
    hn = h1_ref[...].astype(jnp.float32) * scale2_ref[...] + shift2_ref[...]
    h2 = jnp.dot(hn.astype(jnp.bfloat16), w2_ref[...],
                 preferred_element_type=jnp.float32) + bb2_ref[...]
    h2 = jnp.maximum(h2, 0.0)
    out = jnp.dot(h2.astype(jnp.bfloat16), w3_ref[...],
                  preferred_element_type=jnp.float32) + bb3_ref[...]
    o_ref[...] = out.astype(o_ref.dtype)


def _physical_vmem_bytes():
    try:
        info = pltpu.get_tpu_info()
        v = getattr(info, "vmem_capacity_bytes", None)
        if v:
            return int(v)
    except Exception:
        pass
    return 64 << 20  # conservative (v7x-sized) fallback


def _vmem_limit(resident_bytes):
    # Double-buffered tiles + headroom; cap is generation-aware:
    # ~102 MiB on v5e/v6e (128 MiB physical VMEM), ~51 MiB on v7x (64 MiB).
    cap = (_physical_vmem_bytes() * 4) // 5
    return int(min(max(2 * resident_bytes + (4 << 20), 32 << 20), cap))


def _bn_fold(s, ss, gamma, beta, inv_n):
    # Fold BN into one per-feature scale/shift (f32), once per forward.
    mean = s * inv_n
    var = ss * inv_n - mean * mean
    scale = gamma * jax.lax.rsqrt(var + EPS)
    shift = beta - mean * scale
    return scale, shift


@functools.partial(jax.jit, static_argnames=("batch_tile",))
def expander_forward(x, params, batch_tile=256):
    """x: (N, rep_dim) float32. params: dict of 2D arrays (see init_params)."""
    n, d = x.shape
    h_dim = params["w2"].shape[1]
    f32 = jnp.float32

    # One-time bf16 cast of the activations (weights already stored bf16).
    xb = x.astype(jnp.bfloat16)

    # Zero-pad the batch up to a multiple of the tile size (keeps the
    # double-buffered pipeline and MXU shape for ragged N).
    tn = int(batch_tile)
    n_pad = (-n) % tn
    n_full = n + n_pad
    if n_pad:
        xb = jnp.pad(xb, ((0, n_pad), (0, 0)))
    nt = n_full // tn
    inv_n = 1.0 / n  # true batch size: zero-padded rows contribute 0 to sums

    w1, w2, w3 = params["w1"], params["w2"], params["w3"]

    def const(shape):
        return pl.BlockSpec(shape, lambda i: (0, 0))

    # ---- pass 1: BN1 batch statistics over x (reduction) --------------------
    s1, ss1 = pl.pallas_call(
        bn_stats_kernel,
        out_shape=(jax.ShapeDtypeStruct((1, d), f32),
                   jax.ShapeDtypeStruct((1, d), f32)),
        grid_spec=pltpu.PrefetchScalarGridSpec(
            num_scalar_prefetch=0, grid=(nt,),
            in_specs=[pl.BlockSpec((tn, d), lambda i: (i, 0))],
            out_specs=(const((1, d)), const((1, d)))),
        compiler_params=pltpu.CompilerParams(
            dimension_semantics=("arbitrary",),
            vmem_limit_bytes=_vmem_limit(tn * d * 2 + 2 * d * 4)),
        cost_estimate=pl.CostEstimate(
            flops=3 * n_full * d, transcendentals=0,
            bytes_accessed=n_full * d * 2 + 2 * d * 4),
    )(xb)

    scale1, shift1 = _bn_fold(s1, ss1, params["g1"], params["b1"], inv_n)

    # ---- pass 2: BN1-apply + Linear1 + ReLU (pure map -> parallel) ---------
    resident2 = (tn * d * 2 + d * h_dim * 2 + tn * h_dim * 2
                 + 2 * d * 4 + h_dim * 4)
    h1 = pl.pallas_call(
        functools.partial(layer1_kernel, tile_rows=tn, n_valid=n,
                          masked=bool(n_pad)),
        out_shape=jax.ShapeDtypeStruct((n_full, h_dim), jnp.bfloat16),
        grid_spec=pltpu.PrefetchScalarGridSpec(
            num_scalar_prefetch=0, grid=(nt,),
            in_specs=[const((1, d)), const((1, d)),             # scale1, shift1
                      const((d, h_dim)), const((1, h_dim)),     # w1, bb1
                      pl.BlockSpec((tn, d), lambda i: (i, 0))],  # x tile
            out_specs=pl.BlockSpec((tn, h_dim), lambda i: (i, 0))),
        compiler_params=pltpu.CompilerParams(
            dimension_semantics=("parallel",),
            vmem_limit_bytes=_vmem_limit(resident2)),
        cost_estimate=pl.CostEstimate(
            flops=2 * n_full * d * h_dim, transcendentals=0,
            bytes_accessed=n_full * d * 2 + d * h_dim * 2 + n_full * h_dim * 2),
    )(scale1, shift1, w1, params["bb1"], xb)

    # ---- pass 2b: BN2 batch statistics over the bf16 h1 (reduction) --------
    # Separate tiny pass so pass 2 can be megacore-parallel; also makes the
    # stats agree exactly with the bf16 h1 that BN2 is later applied to.
    s2, ss2 = pl.pallas_call(
        bn_stats_kernel,
        out_shape=(jax.ShapeDtypeStruct((1, h_dim), f32),
                   jax.ShapeDtypeStruct((1, h_dim), f32)),
        grid_spec=pltpu.PrefetchScalarGridSpec(
            num_scalar_prefetch=0, grid=(nt,),
            in_specs=[pl.BlockSpec((tn, h_dim), lambda i: (i, 0))],
            out_specs=(const((1, h_dim)), const((1, h_dim)))),
        compiler_params=pltpu.CompilerParams(
            dimension_semantics=("arbitrary",),
            vmem_limit_bytes=_vmem_limit(tn * h_dim * 2 + 2 * h_dim * 4)),
        cost_estimate=pl.CostEstimate(
            flops=3 * n_full * h_dim, transcendentals=0,
            bytes_accessed=n_full * h_dim * 2 + 2 * h_dim * 4),
    )(h1)

    scale2, shift2 = _bn_fold(s2, ss2, params["g2"], params["b2"], inv_n)

    # ---- pass 3: BN2-apply + Linear2 + ReLU + embedding Linear (parallel) --
    resident3 = (tn * h_dim * 2 + 2 * h_dim * h_dim * 2 + tn * h_dim * 4
                 + 4 * h_dim * 4)
    out = pl.pallas_call(
        layer23_kernel,
        out_shape=jax.ShapeDtypeStruct((n_full, h_dim), f32),
        grid_spec=pltpu.PrefetchScalarGridSpec(
            num_scalar_prefetch=0, grid=(nt,),
            in_specs=[const((1, h_dim)), const((1, h_dim)),         # scale2, shift2
                      const((h_dim, h_dim)), const((1, h_dim)),     # w2, bb2
                      const((h_dim, h_dim)), const((1, h_dim)),     # w3, bb3
                      pl.BlockSpec((tn, h_dim), lambda i: (i, 0))],  # h1 tile
            out_specs=pl.BlockSpec((tn, h_dim), lambda i: (i, 0))),
        compiler_params=pltpu.CompilerParams(
            dimension_semantics=("parallel",),
            vmem_limit_bytes=_vmem_limit(resident3)),
        cost_estimate=pl.CostEstimate(
            flops=4 * n_full * h_dim * h_dim, transcendentals=0,
            bytes_accessed=(n_full * h_dim * 2 + 2 * h_dim * h_dim * 2
                            + n_full * h_dim * 4)),
    )(scale2, shift2, w2, params["bb2"], w3, params["bb3"], h1)

    if n_pad:
        out = out[:n]
    return out


def init_params(key, rep_dim, hidden_dim):
    ks = jax.random.split(key, 6)
    s1 = 1.0 / jnp.sqrt(rep_dim)
    s2 = 1.0 / jnp.sqrt(hidden_dim)
    u = jax.random.uniform
    return {
        # BatchNorm1d(rep_dim): gamma=1, beta=0 (PyTorch default init)
        "g1": jnp.ones((1, rep_dim), jnp.float32),
        "b1": jnp.zeros((1, rep_dim), jnp.float32),
        # Linear(rep_dim, hidden): stored (in, out); bf16 pre-cast (MXU dtype)
        "w1": u(ks[0], (rep_dim, hidden_dim), jnp.float32, -s1, s1
                ).astype(jnp.bfloat16),
        "bb1": u(ks[1], (1, hidden_dim), jnp.float32, -s1, s1),
        # BatchNorm1d(hidden)
        "g2": jnp.ones((1, hidden_dim), jnp.float32),
        "b2": jnp.zeros((1, hidden_dim), jnp.float32),
        # Linear(hidden, hidden)
        "w2": u(ks[2], (hidden_dim, hidden_dim), jnp.float32, -s2, s2
                ).astype(jnp.bfloat16),
        "bb2": u(ks[3], (1, hidden_dim), jnp.float32, -s2, s2),
        # embedding_layer: Linear(hidden, hidden)
        "w3": u(ks[4], (hidden_dim, hidden_dim), jnp.float32, -s2, s2
                ).astype(jnp.bfloat16),
        "bb3": u(ks[5], (1, hidden_dim), jnp.float32, -s2, s2),
    }


def expander_ref(x, p):
    """Pure-JAX reference mirroring the kernel's mixed-precision numerics."""
    def bn(hf, g, b):
        m = hf.mean(0, keepdims=True)
        v = (hf * hf).mean(0, keepdims=True) - m * m
        scale = g * jax.lax.rsqrt(v + EPS)
        return hf * scale + (b - m * scale)

    def mm(a, w, bias):
        return jnp.dot(a.astype(jnp.bfloat16), w.astype(jnp.bfloat16),
                       preferred_element_type=jnp.float32) + bias

    xf = x.astype(jnp.bfloat16).astype(jnp.float32)        # bf16 x read
    h = jnp.maximum(mm(bn(xf, p["g1"], p["b1"]), p["w1"], p["bb1"]), 0.0)
    hf = h.astype(jnp.bfloat16).astype(jnp.float32)         # h1 HBM roundtrip
    h2 = jnp.maximum(mm(bn(hf, p["g2"], p["b2"]), p["w2"], p["bb2"]), 0.0)
    return mm(h2, p["w3"], p["bb3"])


if __name__ == "__main__":
    # Small shapes consistent with the module; two 256-row batch tiles so the
    # grid / pipeline / parallel sharding paths are exercised.
    N, REP, HID = 512, 128, 256
    key = jax.random.PRNGKey(0)
    kx, kx2, kp = jax.random.split(key, 3)
    x = jax.random.normal(kx, (N, REP), jnp.float32)
    params = init_params(kp, REP, HID)

    out = jax.block_until_ready(expander_forward(x, params, batch_tile=256))
    ref = expander_ref(x, params)
    assert out.shape == (N, HID)
    err = float(jnp.max(jnp.abs(out - ref)))
    assert jnp.allclose(out, ref, atol=3e-2, rtol=3e-2), f"max abs err {err}"

    # Ragged batch: exercises zero-padding + masked BN2 statistics.
    N2 = 300
    x2 = jax.random.normal(kx2, (N2, REP), jnp.float32)
    out2 = jax.block_until_ready(expander_forward(x2, params, batch_tile=256))
    ref2 = expander_ref(x2, params)
    assert out2.shape == (N2, HID)
    err2 = float(jnp.max(jnp.abs(out2 - ref2)))
    assert jnp.allclose(out2, ref2, atol=3e-2, rtol=3e-2), f"max abs err {err2}"

    print("KERNEL_OK")
</pallas_src>

<mosaic_0001>
module attributes {stable_mosaic.version = 11 : i64} {
  func.func @layer1_kernel(%arg0: i32, %arg1: memref<1x128xf32, #tpu.memory_space<vmem>>, %arg2: memref<1x128xf32, #tpu.memory_space<vmem>>, %arg3: memref<128x256xbf16, #tpu.memory_space<vmem>>, %arg4: memref<1x256xf32, #tpu.memory_space<vmem>>, %arg5: memref<256x128xbf16, #tpu.memory_space<vmem>>, %arg6: memref<256x256xbf16, #tpu.memory_space<vmem>>) attributes {dimension_semantics = [#tpu.dimension_semantics<parallel>], iteration_bounds = array<i64: 2>, scalar_prefetch = 0 : i64, scratch_operands = 0 : i64, tpu.core_type = #tpu.core_type<tc>, window_params = [{pipeline_mode = #tpu.pipeline_mode<synchronous>, transform_indices = @transform_0, window_bounds = array<i64: 1, 128>}, {pipeline_mode = #tpu.pipeline_mode<synchronous>, transform_indices = @transform_1, window_bounds = array<i64: 1, 128>}, {pipeline_mode = #tpu.pipeline_mode<synchronous>, transform_indices = @transform_2, window_bounds = array<i64: 128, 256>}, {pipeline_mode = #tpu.pipeline_mode<synchronous>, transform_indices = @transform_3, window_bounds = array<i64: 1, 256>}, {transform_indices = @transform_4, window_bounds = array<i64: 256, 128>}, {transform_indices = @transform_5, window_bounds = array<i64: 256, 256>}]} {
    %c0 = arith.constant 0 : index
    %c0_0 = arith.constant 0 : index
    %0 = vector.load %arg5[%c0, %c0_0] : memref<256x128xbf16, #tpu.memory_space<vmem>>, vector<256x128xbf16>
    %1 = arith.extf %0 : vector<256x128xbf16> to vector<256x128xf32>
    %c0_1 = arith.constant 0 : index
    %c0_2 = arith.constant 0 : index
    %2 = vector.load %arg1[%c0_1, %c0_2] : memref<1x128xf32, #tpu.memory_space<vmem>>, vector<1x128xf32>
    %3 = vector.broadcast %2 : vector<1x128xf32> to vector<256x128xf32>
    %4 = arith.mulf %1, %3 : vector<256x128xf32>
    %c0_3 = arith.constant 0 : index
    %c0_4 = arith.constant 0 : index
    %5 = vector.load %arg2[%c0_3, %c0_4] : memref<1x128xf32, #tpu.memory_space<vmem>>, vector<1x128xf32>
    %6 = vector.broadcast %5 : vector<1x128xf32> to vector<256x128xf32>
    %7 = arith.addf %4, %6 : vector<256x128xf32>
    %8 = arith.truncf %7 : vector<256x128xf32> to vector<256x128xbf16>
    %c0_5 = arith.constant 0 : index
    %c0_6 = arith.constant 0 : index
    %9 = vector.load %arg3[%c0_5, %c0_6] : memref<128x256xbf16, #tpu.memory_space<vmem>>, vector<128x256xbf16>
    %cst = arith.constant dense<0.000000e+00> : vector<256x256xf32>
    %10 = tpu.matmul %8, %9, %cst {dimension_numbers = #tpu.dot_dimension_numbers<[1], [0], [0], [1], [0, 0, 1, 1], [], []>} : vector<256x128xbf16>, vector<128x256xbf16>, vector<256x256xf32> -> vector<256x256xf32>
    %c0_7 = arith.constant 0 : index
    %c0_8 = arith.constant 0 : index
    %11 = vector.load %arg4[%c0_7, %c0_8] : memref<1x256xf32, #tpu.memory_space<vmem>>, vector<1x256xf32>
    %12 = vector.broadcast %11 : vector<1x256xf32> to vector<256x256xf32>
    %13 = arith.addf %10, %12 : vector<256x256xf32>
    %cst_9 = arith.constant 0.000000e+00 : f32
    %14 = vector.broadcast %cst_9 : f32 to vector<256x256xf32>
    %15 = arith.maximumf %13, %14 : vector<256x256xf32>
    %16 = arith.truncf %15 : vector<256x256xf32> to vector<256x256xbf16>
    %c0_10 = arith.constant 0 : index
    %c0_11 = arith.constant 0 : index
    %17 = vector.load %arg6[%c0_10, %c0_11] : memref<256x256xbf16, #tpu.memory_space<vmem>>, vector<256x256xbf16>
    tpu.vector_store %arg6[%c0_10, %c0_11], %16 {strides = array<i32>} : memref<256x256xbf16, #tpu.memory_space<vmem>>, vector<256x256xbf16>,
    return
  }
  func.func @transform_0(%arg0: i32) -> (i32, i32) {
    %c0_i32 = arith.constant 0 : i32
    %c0_i32_0 = arith.constant 0 : i32
    %c0_i32_1 = arith.constant 0 : i32
    return %c0_i32, %c0_i32_0 : i32, i32
  }
  func.func @transform_1(%arg0: i32) -> (i32, i32) {
    %c0_i32 = arith.constant 0 : i32
    %c0_i32_0 = arith.constant 0 : i32
    %c0_i32_1 = arith.constant 0 : i32
    return %c0_i32, %c0_i32_0 : i32, i32
  }
  func.func @transform_2(%arg0: i32) -> (i32, i32) {
    %c0_i32 = arith.constant 0 : i32
    %c0_i32_0 = arith.constant 0 : i32
    %c0_i32_1 = arith.constant 0 : i32
    return %c0_i32, %c0_i32_0 : i32, i32
  }
  func.func @transform_3(%arg0: i32) -> (i32, i32) {
    %c0_i32 = arith.constant 0 : i32
    %c0_i32_0 = arith.constant 0 : i32
    %c0_i32_1 = arith.constant 0 : i32
    return %c0_i32, %c0_i32_0 : i32, i32
  }
  func.func @transform_4(%arg0: i32) -> (i32, i32) {
    %c0_i32 = arith.constant 0 : i32
    %c0_i32_0 = arith.constant 0 : i32
    return %arg0, %c0_i32 : i32, i32
  }
  func.func @transform_5(%arg0: i32) -> (i32, i32) {
    %c0_i32 = arith.constant 0 : i32
    %c0_i32_0 = arith.constant 0 : i32
    return %arg0, %c0_i32 : i32, i32
  }
}

module attributes {stable_mosaic.version = 11 : i64} {
  func.func @bn_stats_kernel(%arg0: i32, %arg1: memref<256x128xbf16, #tpu.memory_space<vmem>>, %arg2: memref<1x128xf32, #tpu.memory_space<vmem>>, %arg3: memref<1x128xf32, #tpu.memory_space<vmem>>) attributes {dimension_semantics = [#tpu.dimension_semantics<arbitrary>], iteration_bounds = array<i64: 2>, scalar_prefetch = 0 : i64, scratch_operands = 0 : i64, tpu.core_type = #tpu.core_type<tc>, window_params = [{transform_indices = @transform_0, window_bounds = array<i64: 256, 128>}, {pipeline_mode = #tpu.pipeline_mode<synchronous>, transform_indices = @transform_1, window_bounds = array<i64: 1, 128>}, {pipeline_mode = #tpu.pipeline_mode<synchronous>, transform_indices = @transform_2, window_bounds = array<i64: 1, 128>}]} {
    %c0_i32 = arith.constant 0 : i32
    %0 = arith.cmpi eq, %arg0, %c0_i32 : i32
    %1 = arith.extui %0 : i1 to i32
    %c0_i32_0 = arith.constant 0 : i32
    %2 = arith.cmpi ne, %1, %c0_i32_0 : i32
    scf.if %2 {
      %cst_11 = arith.constant 0.000000e+00 : f32
      %16 = vector.broadcast %cst_11 : f32 to vector<1x128xf32>
      %c0_12 = arith.constant 0 : index
      %c0_13 = arith.constant 0 : index
      %17 = vector.load %arg2[%c0_12, %c0_13] : memref<1x128xf32, #tpu.memory_space<vmem>>, vector<1x128xf32>
      tpu.vector_store %arg2[%c0_12, %c0_13], %16 {strides = array<i32>} : memref<1x128xf32, #tpu.memory_space<vmem>>, vector<1x128xf32>,
      %cst_14 = arith.constant 0.000000e+00 : f32
      %18 = vector.broadcast %cst_14 : f32 to vector<1x128xf32>
      %c0_15 = arith.constant 0 : index
      %c0_16 = arith.constant 0 : index
      %19 = vector.load %arg3[%c0_15, %c0_16] : memref<1x128xf32, #tpu.memory_space<vmem>>, vector<1x128xf32>
      tpu.vector_store %arg3[%c0_15, %c0_16], %18 {strides = array<i32>} : memref<1x128xf32, #tpu.memory_space<vmem>>, vector<1x128xf32>,
    } else {
    }
    %c0 = arith.constant 0 : index
    %c0_1 = arith.constant 0 : index
    %3 = vector.load %arg1[%c0, %c0_1] : memref<256x128xbf16, #tpu.memory_space<vmem>>, vector<256x128xbf16>
    %4 = arith.extf %3 : vector<256x128xbf16> to vector<256x128xf32>
    %c0_2 = arith.constant 0 : index
    %c0_3 = arith.constant 0 : index
    %5 = vector.load %arg2[%c0_2, %c0_3] : memref<1x128xf32, #tpu.memory_space<vmem>>, vector<1x128xf32>
    %cst = arith.constant dense<0.000000e+00> : vector<128xf32>
    %6 = vector.multi_reduction <add>, %4, %cst [0] : vector<256x128xf32> to vector<128xf32>
    %7 = vector.shape_cast %6 : vector<128xf32> to vector<1x128xf32>
    %8 = arith.addf %5, %7 : vector<1x128xf32>
    %c0_4 = arith.constant 0 : index
    %c0_5 = arith.constant 0 : index
    %9 = vector.load %arg2[%c0_4, %c0_5] : memref<1x128xf32, #tpu.memory_space<vmem>>, vector<1x128xf32>
    tpu.vector_store %arg2[%c0_4, %c0_5], %8 {strides = array<i32>} : memref<1x128xf32, #tpu.memory_space<vmem>>, vector<1x128xf32>,
    %c0_6 = arith.constant 0 : index
    %c0_7 = arith.constant 0 : index
    %10 = vector.load %arg3[%c0_6, %c0_7] : memref<1x128xf32, #tpu.memory_space<vmem>>, vector<1x128xf32>
    %11 = arith.mulf %4, %4 : vector<256x128xf32>
    %cst_8 = arith.constant dense<0.000000e+00> : vector<128xf32>
    %12 = vector.multi_reduction <add>, %11, %cst_8 [0] : vector<256x128xf32> to vector<128xf32>
    %13 = vector.shape_cast %12 : vector<128xf32> to vector<1x128xf32>
    %14 = arith.addf %10, %13 : vector<1x128xf32>
    %c0_9 = arith.constant 0 : index
    %c0_10 = arith.constant 0 : index
    %15 = vector.load %arg3[%c0_9, %c0_10] : memref<1x128xf32, #tpu.memory_space<vmem>>, vector<1x128xf32>
    tpu.vector_store %arg3[%c0_9, %c0_10], %14 {strides = array<i32>} : memref<1x128xf32, #tpu.memory_space<vmem>>, vector<1x128xf32>,
    return
  }
  func.func @transform_0(%arg0: i32) -> (i32, i32) {
    %c0_i32 = arith.constant 0 : i32
    %c0_i32_0 = arith.constant 0 : i32
    return %arg0, %c0_i32 : i32, i32
  }
  func.func @transform_1(%arg0: i32) -> (i32, i32) {
    %c0_i32 = arith.constant 0 : i32
    %c0_i32_0 = arith.constant 0 : i32
    %c0_i32_1 = arith.constant 0 : i32
    return %c0_i32, %c0_i32_0 : i32, i32
  }
  func.func @transform_2(%arg0: i32) -> (i32, i32) {
    %c0_i32 = arith.constant 0 : i32
    %c0_i32_0 = arith.constant 0 : i32
    %c0_i32_1 = arith.constant 0 : i32
    return %c0_i32, %c0_i32_0 : i32, i32
  }
}

module attributes {stable_mosaic.version = 11 : i64} {
  func.func @bn_stats_kernel(%arg0: i32, %arg1: memref<256x256xbf16, #tpu.memory_space<vmem>>, %arg2: memref<1x256xf32, #tpu.memory_space<vmem>>, %arg3: memref<1x256xf32, #tpu.memory_space<vmem>>) attributes {dimension_semantics = [#tpu.dimension_semantics<arbitrary>], iteration_bounds = array<i64: 2>, scalar_prefetch = 0 : i64, scratch_operands = 0 : i64, tpu.core_type = #tpu.core_type<tc>, window_params = [{transform_indices = @transform_0, window_bounds = array<i64: 256, 256>}, {pipeline_mode = #tpu.pipeline_mode<synchronous>, transform_indices = @transform_1, window_bounds = array<i64: 1, 256>}, {pipeline_mode = #tpu.pipeline_mode<synchronous>, transform_indices = @transform_2, window_bounds = array<i64: 1, 256>}]} {
    %c0_i32 = arith.constant 0 : i32
    %0 = arith.cmpi eq, %arg0, %c0_i32 : i32
    %1 = arith.extui %0 : i1 to i32
    %c0_i32_0 = arith.constant 0 : i32
    %2 = arith.cmpi ne, %1, %c0_i32_0 : i32
    scf.if %2 {
      %cst_11 = arith.constant 0.000000e+00 : f32
      %16 = vector.broadcast %cst_11 : f32 to vector<1x256xf32>
      %c0_12 = arith.constant 0 : index
      %c0_13 = arith.constant 0 : index
      %17 = vector.load %arg2[%c0_12, %c0_13] : memref<1x256xf32, #tpu.memory_space<vmem>>, vector<1x256xf32>
      tpu.vector_store %arg2[%c0_12, %c0_13], %16 {strides = array<i32>} : memref<1x256xf32, #tpu.memory_space<vmem>>, vector<1x256xf32>,
      %cst_14 = arith.constant 0.000000e+00 : f32
      %18 = vector.broadcast %cst_14 : f32 to vector<1x256xf32>
      %c0_15 = arith.constant 0 : index
      %c0_16 = arith.constant 0 : index
      %19 = vector.load %arg3[%c0_15, %c0_16] : memref<1x256xf32, #tpu.memory_space<vmem>>, vector<1x256xf32>
      tpu.vector_store %arg3[%c0_15, %c0_16], %18 {strides = array<i32>} : memref<1x256xf32, #tpu.memory_space<vmem>>, vector<1x256xf32>,
    } else {
    }
    %c0 = arith.constant 0 : index
    %c0_1 = arith.constant 0 : index
    %3 = vector.load %arg1[%c0, %c0_1] : memref<256x256xbf16, #tpu.memory_space<vmem>>, vector<256x256xbf16>
    %4 = arith.extf %3 : vector<256x256xbf16> to vector<256x256xf32>
    %c0_2 = arith.constant 0 : index
    %c0_3 = arith.constant 0 : index
    %5 = vector.load %arg2[%c0_2, %c0_3] : memref<1x256xf32, #tpu.memory_space<vmem>>, vector<1x256xf32>
    %cst = arith.constant dense<0.000000e+00> : vector<256xf32>
    %6 = vector.multi_reduction <add>, %4, %cst [0] : vector<256x256xf32> to vector<256xf32>
    %7 = vector.shape_cast %6 : vector<256xf32> to vector<1x256xf32>
    %8 = arith.addf %5, %7 : vector<1x256xf32>
    %c0_4 = arith.constant 0 : index
    %c0_5 = arith.constant 0 : index
    %9 = vector.load %arg2[%c0_4, %c0_5] : memref<1x256xf32, #tpu.memory_space<vmem>>, vector<1x256xf32>
    tpu.vector_store %arg2[%c0_4, %c0_5], %8 {strides = array<i32>} : memref<1x256xf32, #tpu.memory_space<vmem>>, vector<1x256xf32>,
    %c0_6 = arith.constant 0 : index
    %c0_7 = arith.constant 0 : index
    %10 = vector.load %arg3[%c0_6, %c0_7] : memref<1x256xf32, #tpu.memory_space<vmem>>, vector<1x256xf32>
    %11 = arith.mulf %4, %4 : vector<256x256xf32>
    %cst_8 = arith.constant dense<0.000000e+00> : vector<256xf32>
    %12 = vector.multi_reduction <add>, %11, %cst_8 [0] : vector<256x256xf32> to vector<256xf32>
    %13 = vector.shape_cast %12 : vector<256xf32> to vector<1x256xf32>
    %14 = arith.addf %10, %13 : vector<1x256xf32>
    %c0_9 = arith.constant 0 : index
    %c0_10 = arith.constant 0 : index
    %15 = vector.load %arg3[%c0_9, %c0_10] : memref<1x256xf32, #tpu.memory_space<vmem>>, vector<1x256xf32>
    tpu.vector_store %arg3[%c0_9, %c0_10], %14 {strides = array<i32>} : memref<1x256xf32, #tpu.memory_space<vmem>>, vector<1x256xf32>,
    return
  }
  func.func @transform_0(%arg0: i32) -> (i32, i32) {
    %c0_i32 = arith.constant 0 : i32
    %c0_i32_0 = arith.constant 0 : i32
    return %arg0, %c0_i32 : i32, i32
  }
  func.func @transform_1(%arg0: i32) -> (i32, i32) {
    %c0_i32 = arith.constant 0 : i32
    %c0_i32_0 = arith.constant 0 : i32
    %c0_i32_1 = arith.constant 0 : i32
    return %c0_i32, %c0_i32_0 : i32, i32
  }
  func.func @transform_2(%arg0: i32) -> (i32, i32) {
    %c0_i32 = arith.constant 0 : i32
    %c0_i32_0 = arith.constant 0 : i32
    %c0_i32_1 = arith.constant 0 : i32
    return %c0_i32, %c0_i32_0 : i32, i32
  }
}

module attributes {stable_mosaic.version = 11 : i64} {
  func.func @layer23_kernel(%arg0: i32, %arg1: memref<1x256xf32, #tpu.memory_space<vmem>>, %arg2: memref<1x256xf32, #tpu.memory_space<vmem>>, %arg3: memref<256x256xbf16, #tpu.memory_space<vmem>>, %arg4: memref<1x256xf32, #tpu.memory_space<vmem>>, %arg5: memref<256x256xbf16, #tpu.memory_space<vmem>>, %arg6: memref<1x256xf32, #tpu.memory_space<vmem>>, %arg7: memref<256x256xbf16, #tpu.memory_space<vmem>>, %arg8: memref<256x256xf32, #tpu.memory_space<vmem>>) attributes {dimension_semantics = [#tpu.dimension_semantics<parallel>], iteration_bounds = array<i64: 2>, scalar_prefetch = 0 : i64, scratch_operands = 0 : i64, tpu.core_type = #tpu.core_type<tc>, window_params = [{pipeline_mode = #tpu.pipeline_mode<synchronous>, transform_indices = @transform_0, window_bounds = array<i64: 1, 256>}, {pipeline_mode = #tpu.pipeline_mode<synchronous>, transform_indices = @transform_1, window_bounds = array<i64: 1, 256>}, {pipeline_mode = #tpu.pipeline_mode<synchronous>, transform_indices = @transform_2, window_bounds = array<i64: 256, 256>}, {pipeline_mode = #tpu.pipeline_mode<synchronous>, transform_indices = @transform_3, window_bounds = array<i64: 1, 256>}, {pipeline_mode = #tpu.pipeline_mode<synchronous>, transform_indices = @transform_4, window_bounds = array<i64: 256, 256>}, {pipeline_mode = #tpu.pipeline_mode<synchronous>, transform_indices = @transform_5, window_bounds = array<i64: 1, 256>}, {transform_indices = @transform_6, window_bounds = array<i64: 256, 256>}, {transform_indices = @transform_7, window_bounds = array<i64: 256, 256>}]} {
    %c0 = arith.constant 0 : index
    %c0_0 = arith.constant 0 : index
    %0 = vector.load %arg7[%c0, %c0_0] : memref<256x256xbf16, #tpu.memory_space<vmem>>, vector<256x256xbf16>
    %1 = arith.extf %0 : vector<256x256xbf16> to vector<256x256xf32>
    %c0_1 = arith.constant 0 : index
    %c0_2 = arith.constant 0 : index
    %2 = vector.load %arg1[%c0_1, %c0_2] : memref<1x256xf32, #tpu.memory_space<vmem>>, vector<1x256xf32>
    %3 = vector.broadcast %2 : vector<1x256xf32> to vector<256x256xf32>
    %4 = arith.mulf %1, %3 : vector<256x256xf32>
    %c0_3 = arith.constant 0 : index
    %c0_4 = arith.constant 0 : index
    %5 = vector.load %arg2[%c0_3, %c0_4] : memref<1x256xf32, #tpu.memory_space<vmem>>, vector<1x256xf32>
    %6 = vector.broadcast %5 : vector<1x256xf32> to vector<256x256xf32>
    %7 = arith.addf %4, %6 : vector<256x256xf32>
    %8 = arith.truncf %7 : vector<256x256xf32> to vector<256x256xbf16>
    %c0_5 = arith.constant 0 : index
    %c0_6 = arith.constant 0 : index
    %9 = vector.load %arg3[%c0_5, %c0_6] : memref<256x256xbf16, #tpu.memory_space<vmem>>, vector<256x256xbf16>
    %cst = arith.constant dense<0.000000e+00> : vector<256x256xf32>
    %10 = tpu.matmul %8, %9, %cst {dimension_numbers = #tpu.dot_dimension_numbers<[1], [0], [0], [1], [0, 0, 1, 1], [], []>} : vector<256x256xbf16>, vector<256x256xbf16>, vector<256x256xf32> -> vector<256x256xf32>
    %c0_7 = arith.constant 0 : index
    %c0_8 = arith.constant 0 : index
    %11 = vector.load %arg4[%c0_7, %c0_8] : memref<1x256xf32, #tpu.memory_space<vmem>>, vector<1x256xf32>
    %12 = vector.broadcast %11 : vector<1x256xf32> to vector<256x256xf32>
    %13 = arith.addf %10, %12 : vector<256x256xf32>
    %cst_9 = arith.constant 0.000000e+00 : f32
    %14 = vector.broadcast %cst_9 : f32 to vector<256x256xf32>
    %15 = arith.maximumf %13, %14 : vector<256x256xf32>
    %16 = arith.truncf %15 : vector<256x256xf32> to vector<256x256xbf16>
    %c0_10 = arith.constant 0 : index
    %c0_11 = arith.constant 0 : index
    %17 = vector.load %arg5[%c0_10, %c0_11] : memref<256x256xbf16, #tpu.memory_space<vmem>>, vector<256x256xbf16>
    %cst_12 = arith.constant dense<0.000000e+00> : vector<256x256xf32>
    %18 = tpu.matmul %16, %17, %cst_12 {dimension_numbers = #tpu.dot_dimension_numbers<[1], [0], [0], [1], [0, 0, 1, 1], [], []>} : vector<256x256xbf16>, vector<256x256xbf16>, vector<256x256xf32> -> vector<256x256xf32>
    %c0_13 = arith.constant 0 : index
    %c0_14 = arith.constant 0 : index
    %19 = vector.load %arg6[%c0_13, %c0_14] : memref<1x256xf32, #tpu.memory_space<vmem>>, vector<1x256xf32>
    %20 = vector.broadcast %19 : vector<1x256xf32> to vector<256x256xf32>
    %21 = arith.addf %18, %20 : vector<256x256xf32>
    %c0_15 = arith.constant 0 : index
    %c0_16 = arith.constant 0 : index
    %22 = vector.load %arg8[%c0_15, %c0_16] : memref<256x256xf32, #tpu.memory_space<vmem>>, vector<256x256xf32>
    tpu.vector_store %arg8[%c0_15, %c0_16], %21 {strides = array<i32>} : memref<256x256xf32, #tpu.memory_space<vmem>>, vector<256x256xf32>,
    return
  }
  func.func @transform_0(%arg0: i32) -> (i32, i32) {
    %c0_i32 = arith.constant 0 : i32
    %c0_i32_0 = arith.constant 0 : i32
    %c0_i32_1 = arith.constant 0 : i32
    return %c0_i32, %c0_i32_0 : i32, i32
  }
  func.func @transform_1(%arg0: i32) -> (i32, i32) {
    %c0_i32 = arith.constant 0 : i32
    %c0_i32_0 = arith.constant 0 : i32
    %c0_i32_1 = arith.constant 0 : i32
    return %c0_i32, %c0_i32_0 : i32, i32
  }
  func.func @transform_2(%arg0: i32) -> (i32, i32) {
    %c0_i32 = arith.constant 0 : i32
    %c0_i32_0 = arith.constant 0 : i32
    %c0_i32_1 = arith.constant 0 : i32
    return %c0_i32, %c0_i32_0 : i32, i32
  }
  func.func @transform_3(%arg0: i32) -> (i32, i32) {
    %c0_i32 = arith.constant 0 : i32
    %c0_i32_0 = arith.constant 0 : i32
    %c0_i32_1 = arith.constant 0 : i32
    return %c0_i32, %c0_i32_0 : i32, i32
  }
  func.func @transform_4(%arg0: i32) -> (i32, i32) {
    %c0_i32 = arith.constant 0 : i32
    %c0_i32_0 = arith.constant 0 : i32
    %c0_i32_1 = arith.constant 0 : i32
    return %c0_i32, %c0_i32_0 : i32, i32
  }
  func.func @transform_5(%arg0: i32) -> (i32, i32) {
    %c0_i32 = arith.constant 0 : i32
    %c0_i32_0 = arith.constant 0 : i32
    %c0_i32_1 = arith.constant 0 : i32
    return %c0_i32, %c0_i32_0 : i32, i32
  }
  func.func @transform_6(%arg0: i32) -> (i32, i32) {
    %c0_i32 = arith.constant 0 : i32
    %c0_i32_0 = arith.constant 0 : i32
    return %arg0, %c0_i32 : i32, i32
  }
  func.func @transform_7(%arg0: i32) -> (i32, i32) {
    %c0_i32 = arith.constant 0 : i32
    %c0_i32_0 = arith.constant 0 : i32
    return %arg0, %c0_i32 : i32, i32
  }
}

</mosaic_0001>

<bundles_post_ra>
// kernel: expander_forward.4
= control target key start
LH: loop header
LB: loop body
LE: loop exit
PB: predicated region body
PF: predicated region fallthrough
CT: control target
= control target key end

     0   :  { %s466_s9 = smov 0   ;;  %s516_s0 = inlined_call_operand.vmem [shape: bf16[512,128], index: 0, kind: input, shape index: {}]   ;;  %s517_s1 = inlined_call_operand.vmem [shape: f32[1,128], index: 1, kind: output, shape index: {0}]   ;;  %s518_s2 = inlined_call_operand.vmem [shape: f32[1,128], index: 2, kind: output, shape index: {1}]  }
   0x1 LB: > { %s345_s10 = sadd.s32 4294967295, %s448_s9   ;;  %p348_p0 = scmp.ge.s32.totalorder %s448_s9, 1  ;;  %s448_s9 = sphi %s466_s9, %s13_s9  }
   0x2   : > { %p106_p1 = scmp.lt.s32.totalorder %s448_s9, 3 }
   0x4   : > { %p107_p2 = pnand %p348_p0, %p106_p1 }
   0x5   : > { %s349_s11 = sshll.u32 (!%p107_p2), %s345_s10, 5  ;;  %p351_p4 = scmp.ne.s32.totalorder (!%p107_p2), %s345_s10, 0 }
   0x6   : > { %110 = sbr.rel (%p107_p2) target bundleno = 101 (0x65), region = 24  ;;  %p124_p3 = scmp.lt.s32.totalorder (!%p107_p2), %s349_s11, 63 }
   0xb   : > { %s520_s11 = smov (!%p124_p3, %s349_s11), 63  ;;  %132 = sbr.rel (%p351_p4) target bundleno = 19 (0x13), region = 28 }
   0xc   : > { %s350_s12 = sshll.u32 %s520_s11, 2 }
   0xd   : > { %s477_s15 = scalar_lea.vmem %s516_s0, %s350_s12 }
  0x10   : > { %v450_v0 = vmov 0.0  }
  0x11   : > { %133 = vst [vmem:[%s517_s1] sm:$0x1] %v450_v0 }
  0x12   : > { %134 = vst [vmem:[%s518_s2] sm:$0x1] %v450_v0 }
  0x13 PF: > { %v355_v1 = vld [vmem:[%s477_s15] sm:$0xff]   ;;  %v418_v2 = vld [vmem:[%s477_s15 + $0x8] sm:$0xff]   ;;  %v419_v6 = vld [vmem:[%s477_s15 + $0x10] sm:$0xff]  }
  0x14   : > { %v356_v3 = vunpack.c.l.bf16 %v355_v1  ;;  %v357_v4 = vunpack.c.h.bf16 %v355_v1  ;;  %v360_v5 = vunpack.c.l.bf16 %v418_v2  ;;  %v361_v8 = vunpack.c.h.bf16 %v418_v2  ;;  %v420_v14 = vld [vmem:[%s477_s15 + $0x18] sm:$0xff]   ;;  %v421_v23 = vld [vmem:[%s477_s15 + $0x20] sm:$0xff]   ;;  %v422_v32 = vld [vmem:[%s477_s15 + $0x28] sm:$0xff]  }
  0x15   : > { %v364_v12 = vunpack.c.l.bf16 %v419_v6  ;;  %v365_v16 = vunpack.c.h.bf16 %v419_v6  ;;  %v368_v20 = vunpack.c.l.bf16 %v420_v14  ;;  %v369_v25 = vunpack.c.h.bf16 %v420_v14  ;;  %v423_v41 = vld [vmem:[%s477_s15 + $0x30] sm:$0xff]   ;;  %v424_v50 = vld [vmem:[%s477_s15 + $0x38] sm:$0xff]   ;;  %v425_v59 = vld [vmem:[%s477_s15 + $0x40] sm:$0xff]  }
  0x16   : > { %v200_v7 = vadd.f32 %v357_v4, %v356_v3  ;;  %v240_v9 = vmul.f32 %v356_v3, %v356_v3  ;;  %v241_v10 = vmul.f32 %v357_v4, %v357_v4  ;;  %v242_v13 = vmul.f32 %v360_v5, %v360_v5  ;;  %v426_v4 = vld [vmem:[%s477_s15 + $0x48] sm:$0xff]  }
  0x17   : > { %v243_v17 = vmul.f32 %v361_v8, %v361_v8  ;;  %v244_v21 = vmul.f32 %v364_v12, %v364_v12  ;;  %v245_v26 = vmul.f32 %v365_v16, %v365_v16  ;;  %v372_v29 = vunpack.c.l.bf16 %v421_v23 }
  0x18   : > { %v201_v11 = vadd.f32 %v360_v5, %v200_v7  ;;  %v272_v18 = vadd.f32 %v241_v10, %v240_v9  ;;  %v246_v30 = vmul.f32 %v368_v20, %v368_v20  ;;  %v373_v34 = vunpack.c.h.bf16 %v421_v23 }
  0x19   : > { %v247_v35 = vmul.f32 %v369_v25, %v369_v25  ;;  %v376_v38 = vunpack.c.l.bf16 %v422_v32  ;;  %v248_v39 = vmul.f32 %v372_v29, %v372_v29  ;;  %v377_v43 = vunpack.c.h.bf16 %v422_v32 }
  0x1a   : > { %v202_v15 = vadd.f32 %v361_v8, %v201_v11  ;;  %v273_v22 = vadd.f32 %v272_v18, %v242_v13  ;;  %v249_v44 = vmul.f32 %v373_v34, %v373_v34  ;;  %v380_v47 = vunpack.c.l.bf16 %v423_v41  ;;  %v427_v13 = vld [vmem:[%s477_s15 + $0x50] sm:$0xff]  }
  0x1b   : > { %v250_v48 = vmul.f32 %v376_v38, %v376_v38  ;;  %v381_v52 = vunpack.c.h.bf16 %v423_v41  ;;  %v251_v53 = vmul.f32 %v377_v43, %v377_v43  ;;  %v384_v56 = vunpack.c.l.bf16 %v424_v50 }
  0x1c   : > { %v203_v19 = vadd.f32 %v364_v12, %v202_v15  ;;  %v274_v27 = vadd.f32 %v273_v22, %v243_v17  ;;  %v252_v57 = vmul.f32 %v380_v47, %v380_v47  ;;  %v385_v61 = vunpack.c.h.bf16 %v424_v50  ;;  %v428_v22 = vld [vmem:[%s477_s15 + $0x58] sm:$0xff]  }
  0x1d   : > { %v253_v62 = vmul.f32 %v381_v52, %v381_v52  ;;  %v388_v1 = vunpack.c.l.bf16 %v425_v59  ;;  %v254_v2 = vmul.f32 %v384_v56, %v384_v56  ;;  %v389_v6 = vunpack.c.h.bf16 %v425_v59 }
  0x1e   : > { %v204_v24 = vadd.f32 %v365_v16, %v203_v19  ;;  %v275_v31 = vadd.f32 %v274_v27, %v244_v21  ;;  %v255_v7 = vmul.f32 %v385_v61, %v385_v61  ;;  %v392_v10 = vunpack.c.l.bf16 %v426_v4 }
  0x1f   : > { %v256_v11 = vmul.f32 %v388_v1, %v388_v1  ;;  %v393_v15 = vunpack.c.h.bf16 %v426_v4  ;;  %v257_v16 = vmul.f32 %v389_v6, %v389_v6  ;;  %v396_v19 = vunpack.c.l.bf16 %v427_v13 }
  0x20   : > { %v205_v28 = vadd.f32 %v368_v20, %v204_v24  ;;  %v276_v36 = vadd.f32 %v275_v31, %v245_v26  ;;  %v258_v20 = vmul.f32 %v392_v10, %v392_v10  ;;  %v397_v24 = vunpack.c.h.bf16 %v427_v13  ;;  %v429_v31 = vld [vmem:[%s477_s15 + $0x60] sm:$0xff]  }
  0x22   : > { %v206_v33 = vadd.f32 %v369_v25, %v205_v28  ;;  %v277_v40 = vadd.f32 %v276_v36, %v246_v30  ;;  %v259_v25 = vmul.f32 %v393_v15, %v393_v15  ;;  %v400_v28 = vunpack.c.l.bf16 %v428_v22 }
  0x24   : > { %v207_v37 = vadd.f32 %v372_v29, %v206_v33  ;;  %v278_v45 = vadd.f32 %v277_v40, %v247_v35  ;;  %v260_v29 = vmul.f32 %v396_v19, %v396_v19  ;;  %v401_v33 = vunpack.c.h.bf16 %v428_v22  ;;  %v430_v40 = vld [vmem:[%s477_s15 + $0x68] sm:$0xff]   ;;  %v199_v22 = vld [vmem:[%s517_s1] sm:$0x1] }
  0x26   : > { %v208_v42 = vadd.f32 %v373_v34, %v207_v37  ;;  %v279_v49 = vadd.f32 %v278_v45, %v248_v39  ;;  %v261_v34 = vmul.f32 %v397_v24, %v397_v24  ;;  %v404_v37 = vunpack.c.l.bf16 %v429_v31 }
  0x28   : > { %v209_v46 = vadd.f32 %v376_v38, %v208_v42  ;;  %v280_v54 = vadd.f32 %v279_v49, %v249_v44  ;;  %v262_v38 = vmul.f32 %v400_v28, %v400_v28  ;;  %v405_v42 = vunpack.c.h.bf16 %v429_v31  ;;  %v431_v49 = vld [vmem:[%s477_s15 + $0x70] sm:$0xff]  }
  0x2a   : > { %v210_v51 = vadd.f32 %v377_v43, %v209_v46  ;;  %v281_v58 = vadd.f32 %v280_v54, %v250_v48  ;;  %v263_v43 = vmul.f32 %v401_v33, %v401_v33  ;;  %v408_v46 = vunpack.c.l.bf16 %v430_v40 }
  0x2c   : > { %v211_v55 = vadd.f32 %v380_v47, %v210_v51  ;;  %v282_v63 = vadd.f32 %v281_v58, %v251_v53  ;;  %v264_v47 = vmul.f32 %v404_v37, %v404_v37  ;;  %v409_v51 = vunpack.c.h.bf16 %v430_v40  ;;  %v432_v58 = vld [vmem:[%s477_s15 + $0x78] sm:$0xff]  }
  0x2d   : > { %v417_v4 = vunpack.c.h.bf16 %v432_v58 }
  0x2e   : > { %v212_v60 = vadd.f32 %v381_v52, %v211_v55  ;;  %v283_v3 = vadd.f32 %v282_v63, %v252_v57  ;;  %v265_v52 = vmul.f32 %v405_v42, %v405_v42  ;;  %v412_v55 = vunpack.c.l.bf16 %v431_v49 }
  0x30   : > { %v213_v0 = vadd.f32 %v384_v56, %v212_v60  ;;  %v284_v8 = vadd.f32 %v283_v3, %v253_v62  ;;  %v266_v56 = vmul.f32 %v408_v46, %v408_v46  ;;  %v413_v60 = vunpack.c.h.bf16 %v431_v49 }
  0x32   : > { %v214_v5 = vadd.f32 %v385_v61, %v213_v0  ;;  %v285_v12 = vadd.f32 %v284_v8, %v254_v2  ;;  %v267_v61 = vmul.f32 %v409_v51, %v409_v51  ;;  %v416_v0 = vunpack.c.l.bf16 %v432_v58 }
  0x34   : > { %v215_v9 = vadd.f32 %v388_v1, %v214_v5  ;;  %v286_v17 = vadd.f32 %v285_v12, %v255_v7  ;;  %v268_v1 = vmul.f32 %v412_v55, %v412_v55  ;;  %v269_v5 = vmul.f32 %v413_v60, %v413_v60 }
  0x35   : > { %v270_v8 = vmul.f32 %v416_v0, %v416_v0 }
  0x36   : > { %v216_v14 = vadd.f32 %v389_v6, %v215_v9  ;;  %v287_v21 = vadd.f32 %v286_v17, %v256_v11  ;;  %v271_v11 = vmul.f32 %v417_v4, %v417_v4 }
  0x38   : > { %v217_v18 = vadd.f32 %v392_v10, %v216_v14  ;;  %v288_v26 = vadd.f32 %v287_v21, %v257_v16 }
  0x3a   : > { %v218_v23 = vadd.f32 %v393_v15, %v217_v18  ;;  %v289_v30 = vadd.f32 %v288_v26, %v258_v20 }
  0x3c   : > { %v219_v27 = vadd.f32 %v396_v19, %v218_v23  ;;  %v290_v35 = vadd.f32 %v289_v30, %v259_v25 }
  0x3e   : > { %v220_v32 = vadd.f32 %v397_v24, %v219_v27  ;;  %v291_v39 = vadd.f32 %v290_v35, %v260_v29 }
  0x40   : > { %v221_v36 = vadd.f32 %v400_v28, %v220_v32  ;;  %v292_v44 = vadd.f32 %v291_v39, %v261_v34  ;;  %v239_v28 = vld [vmem:[%s518_s2] sm:$0x1] }
  0x42   : > { %v222_v41 = vadd.f32 %v401_v33, %v221_v36  ;;  %v293_v48 = vadd.f32 %v292_v44, %v262_v38 }
  0x44   : > { %v223_v45 = vadd.f32 %v404_v37, %v222_v41  ;;  %v294_v53 = vadd.f32 %v293_v48, %v263_v43 }
  0x46   : > { %v224_v50 = vadd.f32 %v405_v42, %v223_v45  ;;  %v295_v57 = vadd.f32 %v294_v53, %v264_v47 }
  0x48   : > { %v225_v54 = vadd.f32 %v408_v46, %v224_v50  ;;  %v296_v62 = vadd.f32 %v295_v57, %v265_v52 }
  0x4a   : > { %v226_v59 = vadd.f32 %v409_v51, %v225_v54  ;;  %v297_v2 = vadd.f32 %v296_v62, %v266_v56 }
  0x4c   : > { %v227_v63 = vadd.f32 %v412_v55, %v226_v59  ;;  %v298_v6 = vadd.f32 %v297_v2, %v267_v61 }
  0x4e   : > { %v228_v3 = vadd.f32 %v413_v60, %v227_v63  ;;  %v299_v9 = vadd.f32 %v298_v6, %v268_v1 }
  0x50   : > { %v229_v7 = vadd.f32 %v416_v0, %v228_v3  ;;  %v300_v12 = vadd.f32 %v299_v9, %v269_v5 }
  0x52   : > { %v230_v10 = vadd.f32 %v417_v4, %v229_v7  ;;  %v301_v14 = vadd.f32 %v300_v12, %v270_v8 }
  0x54   : > { %v231_v13 = vrot.slane %v230_v10, 4  ;;  %v302_v16 = vadd.f32 %v301_v14, %v271_v11 }
  0x56   : > { %v232_v15 = vadd.f32 %v231_v13, %v230_v10  ;;  %v303_v18 = vrot.slane %v302_v16, 4 }
  0x58   : > { %v233_v17 = vrot.slane %v232_v15, 2  ;;  %v304_v20 = vadd.f32 %v303_v18, %v302_v16 }
  0x5a   : > { %v234_v19 = vadd.f32 %v233_v17, %v232_v15  ;;  %v305_v23 = vrot.slane %v304_v20, 2 }
  0x5c   : > { %v235_v21 = vrot.slane %v234_v19, 1  ;;  %v306_v25 = vadd.f32 %v305_v23, %v304_v20 }
  0x5e   : > { %v236_v24 = vadd.f32 %v235_v21, %v234_v19  ;;  %v307_v27 = vrot.slane %v306_v25, 1 }
  0x60   : > { %v237_v26 = vadd.f32 %v236_v24, %v199_v22  ;;  %v308_v29 = vadd.f32 %v307_v27, %v306_v25 }
  0x62   : > { %238 = vst [vmem:[%s517_s1] sm:$0x1] %v237_v26  ;;  %v309_v30 = vadd.f32 %v308_v29, %v239_v28 }
  0x64   : > { %310 = vst [vmem:[%s518_s2] sm:$0x1] %v309_v30 }
  0x65 PF: > { %s13_s9 = sadd.s32 1, %s448_s9  }
  0x66   : > { %p10_p5 = scmp.ge.s32.totalorder %s13_s9, 4  }
  0x68   :  { %12 = sbr.rel (!%p10_p5) target bundleno = 1 (0x1), region = 62 }

// kernel: expander_forward.6
= control target key start
LH: loop header
LB: loop body
LE: loop exit
PB: predicated region body
PF: predicated region fallthrough
CT: control target
= control target key end

     0   :  { %s549_s9 = smov 0   ;;  %s815_s0 = inlined_call_operand.vmem [shape: bf16[512,256], index: 0, kind: input, shape index: {}]   ;;  %s816_s1 = inlined_call_operand.vmem [shape: f32[1,256], index: 1, kind: output, shape index: {0}]   ;;  %s817_s2 = inlined_call_operand.vmem [shape: f32[1,256], index: 2, kind: output, shape index: {1}]  }
   0x1 LB: > { %s505_s10 = sadd.s32 4294967295, %s531_s9   ;;  %p508_p0 = scmp.ge.s32.totalorder %s531_s9, 1  ;;  %s531_s9 = sphi %s549_s9, %s13_s9  }
   0x2   : > { %p107_p1 = scmp.lt.s32.totalorder %s531_s9, 3 }
   0x4   : > { %p108_p2 = pnand %p508_p0, %p107_p1 }
   0x5   : > { %s509_s11 = sshll.u32 (!%p108_p2), %s505_s10, 5  ;;  %p512_p4 = scmp.ne.s32.totalorder (!%p108_p2), %s505_s10, 0 }
   0x6   : > { %111 = sbr.rel (%p108_p2) target bundleno = 112 (0x70), region = 24  ;;  %p126_p3 = scmp.lt.s32.totalorder (!%p108_p2), %s509_s11, 63 }
   0xb   : > { %s821_s11 = smov (!%p126_p3, %s509_s11), 63  ;;  %135 = sbr.rel (%p512_p4) target bundleno = 21 (0x15), region = 28 }
   0xc   : > { %s515_s12 = sshll.u32 %s821_s11, 3 }
   0xd   : > { %s560_s15 = scalar_lea.vmem %s815_s0, %s515_s12 }
  0x10   : > { %v136_v0 = vlaneseq  ;;  %v533_v1 = vmov 0.0  }
  0x12   : > { %vm138_vm0 = vcmp.lt.s32.totalorder %v136_v0, 256 }
  0x13   : > { %140 = vst.msk [vmem:[%s816_s1] sm:$0x3] %vm138_vm0, %v533_v1 }
  0x14   : > { %141 = vst.msk [vmem:[%s817_s2] sm:$0x3] %vm138_vm0, %v533_v1 }
  0x15 PF: > { %v142_v2 = vld [vmem:[%s560_s15] sm:$0xff]  ;;  %v143_v3 = vld [vmem:[%s560_s15 + $0x8] sm:$0xff]  ;;  %v144_v4 = vld [vmem:[%s560_s15 + $0x10] sm:$0xff]  ;;  %vm316_vm1 = vcmask 1040384  }
  0x16   : > { %v174_v5 = vunpack.c.l.bf16 %v142_v2  ;;  %v175_v6 = vunpack.c.h.bf16 %v142_v2  ;;  %v176_v7 = vunpack.c.l.bf16 %v143_v3  ;;  %v177_v8 = vunpack.c.h.bf16 %v143_v3  ;;  %v145_v9 = vld [vmem:[%s560_s15 + $0x18] sm:$0xff]  ;;  %v146_v14 = vld [vmem:[%s560_s15 + $0x20] sm:$0xff]  ;;  %v147_v19 = vld [vmem:[%s560_s15 + $0x28] sm:$0xff] }
  0x17   : > { %v178_v10 = vunpack.c.l.bf16 %v144_v4  ;;  %v179_v11 = vunpack.c.h.bf16 %v144_v4  ;;  %v180_v15 = vunpack.c.l.bf16 %v145_v9  ;;  %v181_v16 = vunpack.c.h.bf16 %v145_v9  ;;  %v148_v24 = vld [vmem:[%s560_s15 + $0x30] sm:$0xff]  ;;  %v149_v29 = vld [vmem:[%s560_s15 + $0x38] sm:$0xff]  ;;  %v150_v30 = vld [vmem:[%s560_s15 + $0x40] sm:$0xff] }
  0x18   : > { %v239_v12 = vadd.f32 %v176_v7, %v174_v5  ;;  %v276_v13 = vadd.f32 %v177_v8, %v175_v6  ;;  %v182_v20 = vunpack.c.l.bf16 %v146_v14  ;;  %v183_v21 = vunpack.c.h.bf16 %v146_v14  ;;  %v151_v39 = vld [vmem:[%s560_s15 + $0x48] sm:$0xff]  ;;  %v152_v42 = vld [vmem:[%s560_s15 + $0x50] sm:$0xff]  ;;  %v153_v50 = vld [vmem:[%s560_s15 + $0x58] sm:$0xff] }
  0x19   : > { %v184_v25 = vunpack.c.l.bf16 %v147_v19  ;;  %v185_v26 = vunpack.c.h.bf16 %v147_v19  ;;  %v186_v31 = vunpack.c.l.bf16 %v148_v24  ;;  %v187_v32 = vunpack.c.h.bf16 %v148_v24  ;;  %v154_v58 = vld [vmem:[%s560_s15 + $0x60] sm:$0xff]  ;;  %v155_v3 = vld [vmem:[%s560_s15 + $0x68] sm:$0xff] }
  0x1a   : > { %v240_v17 = vadd.f32 %v239_v12, %v178_v10  ;;  %v277_v18 = vadd.f32 %v276_v13, %v179_v11  ;;  %v188_v35 = vunpack.c.l.bf16 %v149_v29  ;;  %v577_v36 = vunpack.c.h.bf16 %v149_v29  ;;  %v156_v12 = vld [vmem:[%s560_s15 + $0x70] sm:$0xff] }
  0x1b   : > { %v580_v40 = vunpack.c.l.bf16 %v150_v30  ;;  %v582_v41 = vunpack.c.h.bf16 %v150_v30  ;;  %v326_v45 = vmul.f32 %v174_v5, %v174_v5  ;;  %v328_v46 = vmul.f32 %v176_v7, %v176_v7 }
  0x1c   : > { %v241_v22 = vadd.f32 %v240_v17, %v180_v15  ;;  %v278_v23 = vadd.f32 %v277_v18, %v181_v16  ;;  %v586_v47 = vunpack.c.l.bf16 %v151_v39  ;;  %v327_v48 = vmul.f32 %v175_v6, %v175_v6 }
  0x1d   : > { %v329_v49 = vmul.f32 %v177_v8, %v177_v8  ;;  %v589_v51 = vunpack.c.h.bf16 %v151_v39  ;;  %v330_v54 = vmul.f32 %v178_v10, %v178_v10  ;;  %v593_v55 = vunpack.c.l.bf16 %v152_v42 }
  0x1e   : > { %v242_v27 = vadd.f32 %v241_v22, %v182_v20  ;;  %v279_v28 = vadd.f32 %v278_v23, %v183_v21  ;;  %v595_v56 = vunpack.c.h.bf16 %v152_v42  ;;  %v331_v57 = vmul.f32 %v179_v11, %v179_v11  ;;  %v157_v22 = vld [vmem:[%s560_s15 + $0x78] sm:$0xff] }
  0x1f   : > { %v332_v61 = vmul.f32 %v180_v15, %v180_v15  ;;  %v390_v62 = vadd.f32 %v328_v46, %v326_v45  ;;  %v600_v63 = vunpack.c.l.bf16 %v153_v50  ;;  %v602_v0 = vunpack.c.h.bf16 %v153_v50 }
  0x20   : > { %v243_v33 = vadd.f32 %v242_v27, %v184_v25  ;;  %v280_v34 = vadd.f32 %v279_v28, %v185_v26  ;;  %v333_v1 = vmul.f32 %v181_v16, %v181_v16  ;;  %v427_v2 = vadd.f32 %v329_v49, %v327_v48 }
  0x21   : > { %v334_v6 = vmul.f32 %v182_v20, %v182_v20  ;;  %v391_v7 = vadd.f32 %v390_v62, %v330_v54  ;;  %v607_v8 = vunpack.c.l.bf16 %v154_v58  ;;  %v609_v9 = vunpack.c.h.bf16 %v154_v58 }
  0x22   : > { %v244_v37 = vadd.f32 %v243_v33, %v186_v31  ;;  %v281_v38 = vadd.f32 %v280_v34, %v187_v32  ;;  %v335_v10 = vmul.f32 %v183_v21, %v183_v21  ;;  %v428_v11 = vadd.f32 %v427_v2, %v331_v57  ;;  %v158_v33 = vld [vmem:[%s560_s15 + $0x80] sm:$0xff] }
  0x23   : > { %v336_v15 = vmul.f32 %v184_v25, %v184_v25  ;;  %v392_v16 = vadd.f32 %v391_v7, %v332_v61  ;;  %v614_v17 = vunpack.c.l.bf16 %v155_v3  ;;  %v616_v18 = vunpack.c.h.bf16 %v155_v3 }
  0x24   : > { %v245_v43 = vadd.f32 %v244_v37, %v188_v35  ;;  %v282_v44 = vadd.f32 %v281_v38, %v577_v36  ;;  %v337_v19 = vmul.f32 %v185_v26, %v185_v26  ;;  %v429_v20 = vadd.f32 %v428_v11, %v333_v1 }
  0x25   : > { %v338_v24 = vmul.f32 %v186_v31, %v186_v31  ;;  %v393_v27 = vadd.f32 %v392_v16, %v334_v6  ;;  %v621_v28 = vunpack.c.l.bf16 %v156_v12  ;;  %v623_v29 = vunpack.c.h.bf16 %v156_v12 }
  0x26   : > { %v246_v52 = vadd.f32 %v245_v43, %v580_v40  ;;  %v283_v53 = vadd.f32 %v282_v44, %v582_v41  ;;  %v339_v25 = vmul.f32 %v187_v32, %v187_v32  ;;  %v430_v30 = vadd.f32 %v429_v20, %v335_v10  ;;  %v159_v44 = vld [vmem:[%s560_s15 + $0x88] sm:$0xff] }
  0x27   : > { %v340_v37 = vmul.f32 %v188_v35, %v188_v35  ;;  %v394_v38 = vadd.f32 %v393_v27, %v336_v15  ;;  %v628_v39 = vunpack.c.l.bf16 %v157_v22  ;;  %v630_v42 = vunpack.c.h.bf16 %v157_v22 }
  0x28   : > { %v247_v59 = vadd.f32 %v246_v52, %v586_v47  ;;  %v284_v60 = vadd.f32 %v283_v53, %v589_v51  ;;  %v341_v31 = vmul.f32 %v577_v36, %v577_v36  ;;  %v431_v43 = vadd.f32 %v430_v30, %v337_v19  ;;  %v160_v36 = vld [vmem:[%s560_s15 + $0x90] sm:$0xff] }
  0x29   : > { %v342_v46 = vmul.f32 %v580_v40, %v580_v40  ;;  %v395_v48 = vadd.f32 %v394_v38, %v338_v24  ;;  %v639_v35 = vunpack.c.l.bf16 %v158_v33  ;;  %v641_v49 = vunpack.c.h.bf16 %v158_v33 }
  0x2a   : > { %v248_v4 = vadd.f32 %v247_v59, %v593_v55  ;;  %v285_v5 = vadd.f32 %v284_v60, %v595_v56  ;;  %v343_v50 = vmul.f32 %v582_v41, %v582_v41  ;;  %v432_v52 = vadd.f32 %v431_v43, %v339_v25  ;;  %v161_v41 = vld [vmem:[%s560_s15 + $0x98] sm:$0xff] }
  0x2b   : > { %v344_v57 = vmul.f32 %v586_v47, %v586_v47  ;;  %v396_v58 = vadd.f32 %v395_v48, %v340_v37  ;;  %v650_v40 = vunpack.c.l.bf16 %v159_v44  ;;  %v652_v59 = vunpack.c.h.bf16 %v159_v44 }
  0x2c   : > { %v249_v13 = vadd.f32 %v248_v4, %v600_v63  ;;  %v286_v14 = vadd.f32 %v285_v5, %v602_v0  ;;  %v345_v60 = vmul.f32 %v589_v51, %v589_v51  ;;  %v433_v61 = vadd.f32 %v432_v52, %v341_v31  ;;  %v162_v51 = vld [vmem:[%s560_s15 + $0xa0] sm:$0xff] }
  0x2d   : > { %v346_v2 = vmul.f32 %v593_v55, %v593_v55  ;;  %v397_v3 = vadd.f32 %v396_v58, %v342_v46  ;;  %v661_v47 = vunpack.c.l.bf16 %v160_v36  ;;  %v663_v4 = vunpack.c.h.bf16 %v160_v36 }
  0x2e   : > { %v250_v23 = vadd.f32 %v249_v13, %v607_v8  ;;  %v287_v21 = vadd.f32 %v286_v14, %v609_v9  ;;  %v347_v5 = vmul.f32 %v595_v56, %v595_v56  ;;  %v434_v6 = vadd.f32 %v433_v61, %v343_v50  ;;  %v163_v56 = vld [vmem:[%s560_s15 + $0xa8] sm:$0xff] }
  0x2f   : > { %v348_v11 = vmul.f32 %v600_v63, %v600_v63  ;;  %v398_v12 = vadd.f32 %v397_v3, %v344_v57  ;;  %v672_v55 = vunpack.c.l.bf16 %v161_v41  ;;  %v674_v13 = vunpack.c.h.bf16 %v161_v41 }
  0x30   : > { %v251_v34 = vadd.f32 %v250_v23, %v614_v17  ;;  %v288_v26 = vadd.f32 %v287_v21, %v616_v18  ;;  %v349_v14 = vmul.f32 %v602_v0, %v602_v0  ;;  %v435_v15 = vadd.f32 %v434_v6, %v345_v60  ;;  %v164_v0 = vld [vmem:[%s560_s15 + $0xb0] sm:$0xff] }
  0x31   : > { %v350_v20 = vmul.f32 %v607_v8, %v607_v8  ;;  %v399_v22 = vadd.f32 %v398_v12, %v346_v2  ;;  %v683_v63 = vunpack.c.l.bf16 %v162_v51  ;;  %v685_v23 = vunpack.c.h.bf16 %v162_v51 }
  0x32   : > { %v252_v32 = vadd.f32 %v251_v34, %v621_v28  ;;  %v289_v45 = vadd.f32 %v288_v26, %v623_v29  ;;  %v351_v21 = vmul.f32 %v609_v9, %v609_v9  ;;  %v436_v24 = vadd.f32 %v435_v15, %v347_v5  ;;  %v165_v9 = vld [vmem:[%s560_s15 + $0xb8] sm:$0xff] }
  0x33   : > { %v352_v30 = vmul.f32 %v614_v17, %v614_v17  ;;  %v400_v33 = vadd.f32 %v399_v22, %v348_v11  ;;  %v694_v8 = vunpack.c.l.bf16 %v163_v56  ;;  %v696_v34 = vunpack.c.h.bf16 %v163_v56  ;;  %v170_v22 = vld [vmem:[%s560_s15 + $0xe0] sm:$0xff] }
  0x34   : > { %v253_v53 = vadd.f32 %v252_v32, %v628_v39  ;;  %v290_v54 = vadd.f32 %v289_v45, %v630_v42  ;;  %v353_v26 = vmul.f32 %v616_v18, %v616_v18  ;;  %v437_v37 = vadd.f32 %v436_v24, %v349_v14  ;;  %v166_v18 = vld [vmem:[%s560_s15 + $0xc0] sm:$0xff] }
  0x35   : > { %v354_v43 = vmul.f32 %v621_v28, %v621_v28  ;;  %v401_v44 = vadd.f32 %v400_v33, %v350_v20  ;;  %v705_v17 = vunpack.c.l.bf16 %v164_v0  ;;  %v707_v32 = vunpack.c.h.bf16 %v164_v0  ;;  %v171_v33 = vld [vmem:[%s560_s15 + $0xe8] sm:$0xff] }
  0x36   : > { %v254_v62 = vadd.f32 %v253_v53, %v639_v35  ;;  %v291_v1 = vadd.f32 %v290_v54, %v641_v49  ;;  %v355_v45 = vmul.f32 %v623_v29, %v623_v29  ;;  %v438_v46 = vadd.f32 %v437_v37, %v351_v21  ;;  %v167_v29 = vld [vmem:[%s560_s15 + $0xc8] sm:$0xff] }
  0x37   : > { %v356_v52 = vmul.f32 %v628_v39, %v628_v39  ;;  %v402_v36 = vadd.f32 %v401_v44, %v352_v30  ;;  %v716_v28 = vunpack.c.l.bf16 %v165_v9  ;;  %v718_v53 = vunpack.c.h.bf16 %v165_v9  ;;  %v172_v44 = vld [vmem:[%s560_s15 + $0xf0] sm:$0xff] }
  0x38   : > { %v255_v7 = vadd.f32 %v254_v62, %v650_v40  ;;  %v292_v10 = vadd.f32 %v291_v1, %v652_v59  ;;  %v357_v54 = vmul.f32 %v630_v42, %v630_v42  ;;  %v439_v57 = vadd.f32 %v438_v46, %v353_v26  ;;  %v168_v42 = vld [vmem:[%s560_s15 + $0xd0] sm:$0xff] }
  0x39   : > { %v358_v61 = vmul.f32 %v639_v35, %v639_v35  ;;  %v403_v41 = vadd.f32 %v402_v36, %v354_v43  ;;  %v727_v39 = vunpack.c.l.bf16 %v166_v18  ;;  %v729_v62 = vunpack.c.h.bf16 %v166_v18  ;;  %v173_v36 = vld [vmem:[%s560_s15 + $0xf8] sm:$0xff] }
  0x3a   : > { %v256_v16 = vadd.f32 %v255_v7, %v661_v47  ;;  %v293_v19 = vadd.f32 %v292_v10, %v663_v4  ;;  %v359_v1 = vmul.f32 %v641_v49, %v641_v49  ;;  %v440_v2 = vadd.f32 %v439_v57, %v355_v45  ;;  %v169_v49 = vld [vmem:[%s560_s15 + $0xd8] sm:$0xff] }
  0x3b   : > { %v360_v6 = vmul.f32 %v650_v40, %v650_v40  ;;  %v404_v51 = vadd.f32 %v403_v41, %v356_v52  ;;  %v738_v35 = vunpack.c.l.bf16 %v167_v29  ;;  %v740_v7 = vunpack.c.h.bf16 %v167_v29 }
  0x3c   : > { %v257_v27 = vadd.f32 %v256_v16, %v672_v55  ;;  %v294_v25 = vadd.f32 %v293_v19, %v674_v13  ;;  %v361_v10 = vmul.f32 %v652_v59, %v652_v59  ;;  %v441_v11 = vadd.f32 %v440_v2, %v357_v54 }
  0x3d   : > { %v362_v15 = vmul.f32 %v661_v47, %v661_v47  ;;  %v405_v56 = vadd.f32 %v404_v51, %v358_v61  ;;  %v226_v40 = vunpack.c.l.bf16 %v168_v42  ;;  %v749_v16 = vunpack.c.h.bf16 %v168_v42 }
  0x3e   : > { %v258_v38 = vadd.f32 %v257_v27, %v683_v63  ;;  %v295_v31 = vadd.f32 %v294_v25, %v685_v23  ;;  %v363_v19 = vmul.f32 %v663_v4, %v663_v4  ;;  %v442_v20 = vadd.f32 %v441_v11, %v359_v1 }
  0x3f   : > { %v364_v24 = vmul.f32 %v672_v55, %v672_v55  ;;  %v406_v0 = vadd.f32 %v405_v56, %v360_v6  ;;  %v228_v27 = vunpack.c.l.bf16 %v169_v49  ;;  %v229_v47 = vunpack.c.h.bf16 %v169_v49 }
  0x40   : > { %v259_v48 = vadd.f32 %v258_v38, %v694_v8  ;;  %v296_v50 = vadd.f32 %v295_v31, %v696_v34  ;;  %v365_v25 = vmul.f32 %v674_v13, %v674_v13  ;;  %v443_v30 = vadd.f32 %v442_v20, %v361_v10 }
  0x41   : > { %v366_v37 = vmul.f32 %v683_v63, %v683_v63  ;;  %v407_v9 = vadd.f32 %v406_v0, %v362_v15  ;;  %v230_v38 = vunpack.c.l.bf16 %v170_v22  ;;  %v231_v31 = vunpack.c.h.bf16 %v170_v22 }
  0x42   : > { %v260_v58 = vadd.f32 %v259_v48, %v705_v17  ;;  %v297_v60 = vadd.f32 %v296_v50, %v707_v32  ;;  %v367_v55 = vmul.f32 %v685_v23, %v685_v23  ;;  %v444_v43 = vadd.f32 %v443_v30, %v363_v19 }
  0x43   : > { %v368_v13 = vmul.f32 %v694_v8, %v694_v8  ;;  %v408_v18 = vadd.f32 %v407_v9, %v364_v24  ;;  %v232_v48 = vunpack.c.l.bf16 %v171_v33  ;;  %v233_v50 = vunpack.c.h.bf16 %v171_v33 }
  0x44   : > { %v261_v3 = vadd.f32 %v260_v58, %v716_v28  ;;  %v298_v5 = vadd.f32 %v297_v60, %v718_v53  ;;  %v369_v52 = vmul.f32 %v696_v34, %v696_v34  ;;  %v445_v63 = vadd.f32 %v444_v43, %v365_v25 }
  0x45   : > { %v370_v23 = vmul.f32 %v705_v17, %v705_v17  ;;  %v409_v29 = vadd.f32 %v408_v18, %v366_v37  ;;  %v234_v58 = vunpack.c.l.bf16 %v172_v44  ;;  %v235_v60 = vunpack.c.h.bf16 %v172_v44 }
  0x46   : > { %v262_v12 = vadd.f32 %v261_v3, %v727_v39  ;;  %v299_v14 = vadd.f32 %v298_v5, %v729_v62  ;;  %v371_v61 = vmul.f32 %v707_v32, %v707_v32  ;;  %v446_v8 = vadd.f32 %v445_v63, %v367_v55 }
  0x47   : > { %v372_v2 = vmul.f32 %v716_v28, %v716_v28  ;;  %v410_v34 = vadd.f32 %v409_v29, %v368_v13  ;;  %v236_v42 = vunpack.c.l.bf16 %v173_v36  ;;  %v237_v3 = vunpack.c.h.bf16 %v173_v36 }
  0x48   : > { %v263_v59 = vadd.f32 %v262_v12, %v738_v35  ;;  %v300_v21 = vadd.f32 %v299_v14, %v740_v7  ;;  %v373_v5 = vmul.f32 %v718_v53, %v718_v53  ;;  %v447_v6 = vadd.f32 %v446_v8, %v369_v52 }
  0x49   : > { %v374_v10 = vmul.f32 %v727_v39, %v727_v39  ;;  %v411_v11 = vadd.f32 %v410_v34, %v370_v23  ;;  %v375_v32 = vmul.f32 %v729_v62, %v729_v62  ;;  %v376_v28 = vmul.f32 %v738_v35, %v738_v35 }
  0x4a   : > { %v264_v26 = vadd.f32 %v263_v59, %v226_v40  ;;  %v301_v4 = vadd.f32 %v300_v21, %v749_v16  ;;  %v448_v49 = vadd.f32 %v447_v6, %v371_v61  ;;  %v377_v53 = vmul.f32 %v740_v7, %v740_v7 }
  0x4b   : > { %v412_v15 = vadd.f32 %v411_v11, %v372_v2  ;;  %v378_v22 = vmul.f32 %v226_v40, %v226_v40  ;;  %v379_v39 = vmul.f32 %v749_v16, %v749_v16  ;;  %v380_v0 = vmul.f32 %v228_v27, %v228_v27 }
  0x4c   : > { %v265_v45 = vadd.f32 %v264_v26, %v228_v27  ;;  %v302_v46 = vadd.f32 %v301_v4, %v229_v47  ;;  %v449_v56 = vadd.f32 %v448_v49, %v373_v5  ;;  %v381_v30 = vmul.f32 %v229_v47, %v229_v47 }
  0x4d   : > { %v413_v59 = vadd.f32 %v412_v15, %v374_v10  ;;  %v382_v4 = vmul.f32 %v230_v38, %v230_v38  ;;  %v383_v7 = vmul.f32 %v231_v31, %v231_v31  ;;  %v384_v40 = vmul.f32 %v232_v48, %v232_v48 }
  0x4e   : > { %v266_v54 = vadd.f32 %v265_v45, %v230_v38  ;;  %v303_v57 = vadd.f32 %v302_v46, %v231_v31  ;;  %v450_v21 = vadd.f32 %v449_v56, %v375_v32  ;;  %v385_v45 = vmul.f32 %v233_v50, %v233_v50 }
  0x4f   : > { %v414_v25 = vadd.f32 %v413_v59, %v376_v28  ;;  %v386_v18 = vmul.f32 %v234_v58, %v234_v58  ;;  %v387_v27 = vmul.f32 %v235_v60, %v235_v60  ;;  %v388_v63 = vmul.f32 %v236_v42, %v236_v42 }
  0x50   : > { %v267_v41 = vadd.f32 %v266_v54, %v232_v48  ;;  %v304_v1 = vadd.f32 %v303_v57, %v233_v50  ;;  %v451_v33 = vadd.f32 %v450_v21, %v377_v53  ;;  %v320_v57 = vlaneseq  ;;  %v238_v48 = vld [vmem:[%s816_s1] sm:$0x3] }
  0x51   : > { %v415_v37 = vadd.f32 %v414_v25, %v378_v22  ;;  %v389_v31 = vmul.f32 %v237_v3, %v237_v3 }
  0x52   : > { %v268_v17 = vadd.f32 %v267_v41, %v234_v58  ;;  %v305_v51 = vadd.f32 %v304_v1, %v235_v60  ;;  %v452_v9 = vadd.f32 %v451_v33, %v379_v39  ;;  %vm794_vm2 = vcmp.lt.s32.totalorder %v320_v57, 256 }
  0x53   : > { %v416_v44 = vadd.f32 %v415_v37, %v380_v0 }
  0x54   : > { %v269_v12 = vadd.f32 %v268_v17, %v236_v42  ;;  %v306_v14 = vadd.f32 %v305_v51, %v237_v3  ;;  %v453_v46 = vadd.f32 %v452_v9, %v381_v30 }
  0x55   : > { %v417_v52 = vadd.f32 %v416_v44, %v382_v4 }
  0x56   : > { %v270_v19 = vrot.slane %v269_v12, 4  ;;  %v307_v20 = vrot.slane %v306_v14, 4  ;;  %v454_v47 = vadd.f32 %v453_v46, %v383_v7 }
  0x57   : > { %v418_v38 = vadd.f32 %v417_v52, %v384_v40 }
  0x58   : > { %v271_v62 = vadd.f32 %v270_v19, %v269_v12  ;;  %v308_v24 = vadd.f32 %v307_v20, %v306_v14  ;;  %v455_v23 = vadd.f32 %v454_v47, %v385_v45  ;;  %v325_v12 = vld [vmem:[%s817_s2] sm:$0x3] }
  0x59   : > { %v419_v29 = vadd.f32 %v418_v38, %v386_v18 }
  0x5a   : > { %v272_v35 = vrot.slane %v271_v62, 2  ;;  %v309_v26 = vrot.slane %v308_v24, 2  ;;  %v456_v61 = vadd.f32 %v455_v23, %v387_v27 }
  0x5b   : > { %v420_v8 = vadd.f32 %v419_v29, %v388_v63 }
  0x5c   : > { %v273_v55 = vadd.f32 %v272_v35, %v271_v62  ;;  %v310_v43 = vadd.f32 %v309_v26, %v308_v24  ;;  %v457_v1 = vadd.f32 %v456_v61, %v389_v31 }
  0x5d   : > { %v421_v2 = vrot.slane %v420_v8, 4 }
  0x5e   : > { %v274_v16 = vrot.slane %v273_v55, 1  ;;  %v311_v13 = vrot.slane %v310_v43, 1  ;;  %v458_v34 = vrot.slane %v457_v1, 4 }
  0x5f   : > { %v422_v42 = vadd.f32 %v421_v2, %v420_v8 }
  0x60   : > { %v275_v36 = vadd.f32 %v274_v16, %v273_v55  ;;  %v312_v54 = vadd.f32 %v311_v13, %v310_v43  ;;  %v459_v3 = vadd.f32 %v458_v34, %v457_v1 }
  0x61   : > { %v423_v5 = vrot.slane %v422_v42, 2 }
  0x62   : > { %v315_v50 = vrot.slane %v312_v54, 7  ;;  %v460_v6 = vrot.slane %v459_v3, 2 }
  0x63   : > { %v424_v17 = vadd.f32 %v423_v5, %v422_v42 }
  0x64   : > { %v317_v58 = vsel %vm316_vm1, %v275_v36, %v315_v50  ;;  %v461_v51 = vadd.f32 %v460_v6, %v459_v3 }
  0x65   : > { %v319_v41 = vadd.f32 %v317_v58, %v238_v48  ;;  %v425_v10 = vrot.slane %v424_v17, 1 }
  0x66   : > { %v462_v11 = vrot.slane %v461_v51, 1 }
  0x67   : > { %324 = vst.msk [vmem:[%s816_s1] sm:$0x3] %vm794_vm2, %v319_v41  ;;  %v426_v32 = vadd.f32 %v425_v10, %v424_v17 }
  0x68   : > { %v463_v49 = vadd.f32 %v462_v11, %v461_v51 }
  0x6a   : > { %v466_v14 = vrot.slane %v463_v49, 7 }
  0x6c   : > { %v467_v28 = vsel %vm316_vm1, %v426_v32, %v466_v14 }
  0x6d   : > { %v469_v15 = vadd.f32 %v467_v28, %v325_v12 }
  0x6f   : > { %470 = vst.msk [vmem:[%s817_s2] sm:$0x3] %vm794_vm2, %v469_v15 }
  0x70 PF: > { %s13_s9 = sadd.s32 1, %s531_s9  }
  0x71   : > { %p10_p5 = scmp.ge.s32.totalorder %s13_s9, 4  }
  0x73   :  { %12 = sbr.rel (!%p10_p5) target bundleno = 1 (0x1), region = 62 }

// kernel: expander_forward.5
= control target key start
LH: loop header
LB: loop body
LE: loop exit
PB: predicated region body
PF: predicated region fallthrough
CT: control target
= control target key end

     0   :  { %s1084_s18 = smov 0   ;;  %s1400_s0 = inlined_call_operand.vmem [shape: f32[1,128], index: 0, kind: input, shape index: {}]   ;;  %s1401_s1 = inlined_call_operand.vmem [shape: f32[1,128], index: 1, kind: input, shape index: {}]   ;;  %s1402_s2 = inlined_call_operand.vmem [shape: bf16[128,256], index: 2, kind: input, shape index: {}]   ;;  %s1403_s3 = inlined_call_operand.vmem [shape: f32[1,256], index: 3, kind: input, shape index: {}]   ;;  %s1404_s4 = inlined_call_operand.vmem [shape: bf16[512,128], index: 4, kind: input, shape index: {}]   ;;  %s1405_s5 = inlined_call_operand.vmem [shape: bf16[512,256], index: 5, kind: output, shape index: {}]  }
   0x1 LB: > { %s848_s19 = sadd.s32 4294967295, %s1052_s18   ;;  %p852_p0 = scmp.ge.s32.totalorder %s1052_s18, 1  ;;  %s1052_s18 = sphi %s1084_s18, %s15_s18  }
   0x2   : > { %p188_p1 = scmp.lt.s32.totalorder %s1052_s18, 3 }
   0x4   : > { %p189_p2 = pnand %p852_p0, %p188_p1 }
   0x5   : > { %s853_s29 = sshll.u32 (!%p189_p2), %s848_s19, 5 }
   0x6   : > { %192 = sbr.rel (%p189_p2) target bundleno = 305 (0x131), region = 40  ;;  %p218_p3 = scmp.lt.s32.totalorder (!%p189_p2), %s853_s29, 63 }
   0xb   : > { %v916_v0 = vld [vmem:[%s1402_s2 + $0x70] sm:$0xf]  ;;  %v940_v1 = vld [vmem:[%s1402_s2 + $0x74] sm:$0xf0]  ;;  %v939_v2 = vld [vmem:[%s1402_s2 + $0x74] sm:$0xf] }
   0xc   : > { %v917_v3 = vor.u32 %v940_v1, %v916_v0  ;;  %v918_v4 = vld [vmem:[%s1402_s2 + $0x78] sm:$0xf0]  ;;  %v908_v5 = vld [vmem:[%s1402_s2 + $0x60] sm:$0xf]  ;;  %v938_v6 = vld [vmem:[%s1402_s2 + $0x64] sm:$0xf0] }
   0xd   : > { %v921_v7 = vor.u32 %v939_v2, %v918_v4  ;;  %v937_v8 = vld [vmem:[%s1402_s2 + $0x64] sm:$0xf]  ;;  %v910_v9 = vld [vmem:[%s1402_s2 + $0x68] sm:$0xf0]  ;;  %v909_v10 = vor.u32 %v938_v6, %v908_v5  ;;  %v900_v12 = vld [vmem:[%s1402_s2 + $0x50] sm:$0xf] }
   0xe   : > { %484 = vmatpush.bf16.msra.mxu0 %v917_v3  ;;  %1020 = vmatpush.bf16.msra.mxu2 %v917_v3  ;;  %v913_v11 = vor.u32 %v937_v8, %v910_v9  ;;  %v936_v13 = vld [vmem:[%s1402_s2 + $0x54] sm:$0xf0]  ;;  %v935_v14 = vld [vmem:[%s1402_s2 + $0x54] sm:$0xf]  ;;  %v902_v15 = vld [vmem:[%s1402_s2 + $0x58] sm:$0xf0] }
   0xf   : > { %573 = vmatpush.bf16.msra.mxu1 %v921_v7  ;;  %1028 = vmatpush.bf16.msra.mxu3 %v921_v7  ;;  %v901_v16 = vor.u32 %v936_v13, %v900_v12  ;;  %v905_v17 = vor.u32 %v935_v14, %v902_v15  ;;  %v892_v18 = vld [vmem:[%s1402_s2 + $0x40] sm:$0xf]  ;;  %v934_v19 = vld [vmem:[%s1402_s2 + $0x44] sm:$0xf0]  ;;  %v933_v20 = vld [vmem:[%s1402_s2 + $0x44] sm:$0xf] }
  0x10   : > { %v894_v21 = vld [vmem:[%s1402_s2 + $0x48] sm:$0xf0]  ;;  %v893_v22 = vor.u32 %v934_v19, %v892_v18  ;;  %v884_v24 = vld [vmem:[%s1402_s2 + $0x30] sm:$0xf]  ;;  %v932_v25 = vld [vmem:[%s1402_s2 + $0x34] sm:$0xf0] }
  0x11   : > { %v897_v23 = vor.u32 %v933_v20, %v894_v21  ;;  %v931_v26 = vld [vmem:[%s1402_s2 + $0x34] sm:$0xf]  ;;  %v886_v27 = vld [vmem:[%s1402_s2 + $0x38] sm:$0xf0]  ;;  %s1407_s29 = smov (!%p218_p3, %s853_s29), 63  ;;  %v885_v28 = vor.u32 %v932_v25, %v884_v24 }
  0x12   : > { %485 = vmatpush.bf16.msra.mxu0 %v909_v10  ;;  %1021 = vmatpush.bf16.msra.mxu2 %v909_v10  ;;  %s854_s12 = sshll.u32 %s1407_s29, 2  ;;  %v889_v29 = vor.u32 %v931_v26, %v886_v27  ;;  %v876_v30 = vld [vmem:[%s1402_s2 + $0x20] sm:$0xf]  ;;  %v930_v31 = vld [vmem:[%s1402_s2 + $0x24] sm:$0xf0]  ;;  %s924_s25 = sshll.u32 %s1407_s29, 3 }
  0x13   : > { %574 = vmatpush.bf16.msra.mxu1 %v913_v11  ;;  %1029 = vmatpush.bf16.msra.mxu3 %v913_v11  ;;  %v929_v32 = vld [vmem:[%s1402_s2 + $0x24] sm:$0xf]  ;;  %s1169_s23 = scalar_lea.vmem %s1404_s4, %s854_s12  ;;  %v878_v33 = vld [vmem:[%s1402_s2 + $0x28] sm:$0xf0]  ;;  %v1179_v38 = vld [vmem:[%s1400_s0] ss:$0 sm:$0xff]  ;;  %v877_v41 = vor.u32 %v930_v31, %v876_v30  ;;  %s1301_s28 = scalar_lea.vmem %s1405_s5, %s924_s25 }
  0x14   : > { %v942_v34 = vld [vmem:[%s1169_s23] sm:$0xff]   ;;  %v881_v42 = vor.u32 %v929_v32, %v878_v33  ;;  %v868_v43 = vld [vmem:[%s1402_s2 + $0x10] sm:$0xf]  ;;  %v928_v44 = vld [vmem:[%s1402_s2 + $0x14] sm:$0xf0] }
  0x15   : > { %v1012_v35 = vld [vmem:[%s1169_s23 + $0x40] sm:$0xff]   ;;  %v943_v36 = vunpack.c.l.bf16 %v942_v34  ;;  %v944_v37 = vunpack.c.h.bf16 %v942_v34  ;;  %v927_v45 = vld [vmem:[%s1402_s2 + $0x14] sm:$0xf]  ;;  %v870_v46 = vld [vmem:[%s1402_s2 + $0x18] sm:$0xf0]  ;;  %v869_v52 = vor.u32 %v928_v44, %v868_v43 }
  0x16   : > { %486 = vmatpush.bf16.msra.mxu0 %v901_v16  ;;  %1022 = vmatpush.bf16.msra.mxu2 %v901_v16  ;;  %v975_v39 = vunpack.c.l.bf16 %v1012_v35  ;;  %v976_v40 = vunpack.c.h.bf16 %v1012_v35  ;;  %v1198_v49 = vld [vmem:[%s1401_s1] ss:$0 sm:$0xff]  ;;  %v873_v53 = vor.u32 %v927_v45, %v870_v46  ;;  %v926_v55 = vld [vmem:[%s1402_s2 + $0x4] sm:$0xf0]  ;;  %v925_v56 = vld [vmem:[%s1402_s2 + $0x4] sm:$0xf] }
  0x17   : > { %575 = vmatpush.bf16.msra.mxu1 %v905_v17  ;;  %1030 = vmatpush.bf16.msra.mxu3 %v905_v17  ;;  %v298_v47 = vmul.f32 %v1179_v38, %v943_v36  ;;  %v299_v48 = vmul.f32 %v1179_v38, %v944_v37  ;;  %v860_v54 = vld [vmem:[%s1402_s2] sm:$0xf]  ;;  %v862_v57 = vld [vmem:[%s1402_s2 + $0x8] sm:$0xf0]  ;;  %v1006_v18 = vld [vmem:[%s1169_s23 + $0x10] sm:$0xff]  }
  0x18   : > { %v314_v50 = vmul.f32 %v1179_v38, %v975_v39  ;;  %v315_v51 = vmul.f32 %v1179_v38, %v976_v40  ;;  %v861_v62 = vor.u32 %v926_v55, %v860_v54  ;;  %v865_v63 = vor.u32 %v925_v56, %v862_v57  ;;  %v1005_v2 = vld [vmem:[%s1169_s23 + $0x8] sm:$0xff]   ;;  %v1014_v19 = vld [vmem:[%s1169_s23 + $0x50] sm:$0xff]   ;;  %v1007_v34 = vld [vmem:[%s1169_s23 + $0x18] sm:$0xff]  }
  0x19   : > { %v334_v58 = vadd.f32 %v1198_v49, %v298_v47  ;;  %v335_v59 = vadd.f32 %v1198_v49, %v299_v48  ;;  %v1013_v3 = vld [vmem:[%s1169_s23 + $0x48] sm:$0xff]   ;;  %v947_v4 = vunpack.c.l.bf16 %v1005_v2  ;;  %v948_v5 = vunpack.c.h.bf16 %v1005_v2  ;;  %v1015_v35 = vld [vmem:[%s1169_s23 + $0x58] sm:$0xff]  }
  0x1a   : > { %487 = vmatpush.bf16.msra.mxu0 %v893_v22  ;;  %1023 = vmatpush.bf16.msra.mxu2 %v893_v22  ;;  %v350_v60 = vadd.f32 %v1198_v49, %v314_v50  ;;  %v351_v61 = vadd.f32 %v1198_v49, %v315_v51  ;;  %v979_v6 = vunpack.c.l.bf16 %v1013_v3  ;;  %v980_v7 = vunpack.c.h.bf16 %v1013_v3 }
  0x1b   : > { %576 = vmatpush.bf16.msra.mxu1 %v897_v23  ;;  %1031 = vmatpush.bf16.msra.mxu3 %v897_v23  ;;  %v366_v0 = vpack.c.bf16 %v335_v59, %v334_v58  ;;  %v300_v8 = vmul.f32 %v1179_v38, %v947_v4  ;;  %v301_v9 = vmul.f32 %v1179_v38, %v948_v5  ;;  %v951_v20 = vunpack.c.l.bf16 %v1006_v18  ;;  %v1009_v4 = vld [vmem:[%s1169_s23 + $0x28] sm:$0xff]  }
  0x1c   : > { %v374_v1 = vpack.c.bf16 %v351_v61, %v350_v60  ;;  %v316_v10 = vmul.f32 %v1179_v38, %v979_v6  ;;  %v317_v11 = vmul.f32 %v1179_v38, %v980_v7  ;;  %v952_v21 = vunpack.c.h.bf16 %v1006_v18  ;;  %v1017_v5 = vld [vmem:[%s1169_s23 + $0x68] sm:$0xff]  }
  0x1d   : > { %v336_v12 = vadd.f32 %v1198_v49, %v300_v8  ;;  %v337_v13 = vadd.f32 %v1198_v49, %v301_v9  ;;  %v983_v22 = vunpack.c.l.bf16 %v1014_v19  ;;  %v984_v23 = vunpack.c.h.bf16 %v1014_v19 }
  0x1e   : > { %488 = vmatpush.bf16.msra.mxu0 %v885_v28  ;;  %1024 = vmatpush.bf16.msra.mxu2 %v885_v28  ;;  %v352_v14 = vadd.f32 %v1198_v49, %v316_v10  ;;  %v353_v15 = vadd.f32 %v1198_v49, %v317_v11  ;;  %v302_v24 = vmul.f32 %v1179_v38, %v951_v20  ;;  %v955_v36 = vunpack.c.l.bf16 %v1007_v34  ;;  %v1010_v20 = vld [vmem:[%s1169_s23 + $0x30] sm:$0xff]  }
  0x1f   : > { %577 = vmatpush.bf16.msra.mxu1 %v889_v29  ;;  %1032 = vmatpush.bf16.msra.mxu3 %v889_v29  ;;  %v367_v16 = vpack.c.bf16 %v337_v13, %v336_v12  ;;  %v303_v25 = vmul.f32 %v1179_v38, %v952_v21  ;;  %v318_v26 = vmul.f32 %v1179_v38, %v983_v22  ;;  %v956_v37 = vunpack.c.h.bf16 %v1007_v34  ;;  %v1018_v21 = vld [vmem:[%s1169_s23 + $0x70] sm:$0xff]  }
  0x20   : > { %v375_v17 = vpack.c.bf16 %v353_v15, %v352_v14  ;;  %v319_v27 = vmul.f32 %v1179_v38, %v984_v23  ;;  %v338_v28 = vadd.f32 %v1198_v49, %v302_v24  ;;  %v987_v39 = vunpack.c.l.bf16 %v1015_v35 }
  0x21   : > { %v339_v29 = vadd.f32 %v1198_v49, %v303_v25  ;;  %v354_v30 = vadd.f32 %v1198_v49, %v318_v26  ;;  %v988_v40 = vunpack.c.h.bf16 %v1015_v35  ;;  %v963_v6 = vunpack.c.l.bf16 %v1009_v4 }
  0x22   : > { %489 = vmatpush.bf16.msra.mxu0 %v877_v41  ;;  %1025 = vmatpush.bf16.msra.mxu2 %v877_v41  ;;  %v355_v31 = vadd.f32 %v1198_v49, %v319_v27  ;;  %v304_v41 = vmul.f32 %v1179_v38, %v955_v36  ;;  %v320_v43 = vmul.f32 %v1179_v38, %v987_v39  ;;  %v964_v7 = vunpack.c.h.bf16 %v1009_v4  ;;  %v1011_v36 = vld [vmem:[%s1169_s23 + $0x38] sm:$0xff]  }
  0x23   : > { %578 = vmatpush.bf16.msra.mxu1 %v881_v42  ;;  %1033 = vmatpush.bf16.msra.mxu3 %v881_v42  ;;  %v368_v32 = vpack.c.bf16 %v339_v29, %v338_v28  ;;  %v305_v42 = vmul.f32 %v1179_v38, %v956_v37  ;;  %v321_v44 = vmul.f32 %v1179_v38, %v988_v40  ;;  %v995_v8 = vunpack.c.l.bf16 %v1017_v5  ;;  %v1019_v37 = vld [vmem:[%s1169_s23 + $0x78] sm:$0xff]  }
  0x24   : > { %v376_v33 = vpack.c.bf16 %v355_v31, %v354_v30  ;;  %v340_v45 = vadd.f32 %v1198_v49, %v304_v41  ;;  %v356_v47 = vadd.f32 %v1198_v49, %v320_v43  ;;  %v996_v9 = vunpack.c.h.bf16 %v1017_v5 }
  0x25   : > { %v341_v46 = vadd.f32 %v1198_v49, %v305_v42  ;;  %v357_v48 = vadd.f32 %v1198_v49, %v321_v44  ;;  %v308_v10 = vmul.f32 %v1179_v38, %v963_v6  ;;  %v309_v11 = vmul.f32 %v1179_v38, %v964_v7 }
  0x26   : > { %490 = vmatpush.bf16.msra.mxu0 %v869_v52  ;;  %1026 = vmatpush.bf16.msra.mxu2 %v869_v52  ;;  %v1008_v52 = vld [vmem:[%s1169_s23 + $0x20] sm:$0xff]   ;;  %v324_v12 = vmul.f32 %v1179_v38, %v995_v8  ;;  %v325_v13 = vmul.f32 %v1179_v38, %v996_v9  ;;  %v967_v22 = vunpack.c.l.bf16 %v1010_v20  ;;  %v968_v23 = vunpack.c.h.bf16 %v1010_v20 }
  0x27   : > { %579 = vmatpush.bf16.msra.mxu1 %v873_v53  ;;  %1034 = vmatpush.bf16.msra.mxu3 %v873_v53  ;;  %v369_v50 = vpack.c.bf16 %v341_v46, %v340_v45  ;;  %v377_v51 = vpack.c.bf16 %v357_v48, %v356_v47  ;;  %v1016_v53 = vld [vmem:[%s1169_s23 + $0x60] sm:$0xff]   ;;  %v959_v54 = vunpack.c.l.bf16 %v1008_v52  ;;  %v960_v55 = vunpack.c.h.bf16 %v1008_v52 }
  0x28   : > { %v991_v56 = vunpack.c.l.bf16 %v1016_v53  ;;  %v992_v57 = vunpack.c.h.bf16 %v1016_v53  ;;  %v344_v14 = vadd.f32 %v1198_v49, %v308_v10  ;;  %v345_v15 = vadd.f32 %v1198_v49, %v309_v11 }
  0x29   : > { %v306_v58 = vmul.f32 %v1179_v38, %v959_v54  ;;  %v307_v59 = vmul.f32 %v1179_v38, %v960_v55  ;;  %v999_v24 = vunpack.c.l.bf16 %v1018_v21  ;;  %v1000_v25 = vunpack.c.h.bf16 %v1018_v21  ;;  %v398_v54 = vld [vmem:[%s1403_s3] sm:$0x3] }
  0x2a   : > { %491 = vmatpush.bf16.msra.mxu0 %v861_v62  ;;  %1027 = vmatpush.bf16.msra.mxu2 %v861_v62  ;;  %v322_v60 = vmul.f32 %v1179_v38, %v991_v56  ;;  %v323_v61 = vmul.f32 %v1179_v38, %v992_v57  ;;  %v371_v18 = vpack.c.bf16 %v345_v15, %v344_v14  ;;  %v971_v39 = vunpack.c.l.bf16 %v1011_v36 }
  0x2b   : > { %580 = vmatpush.bf16.msra.mxu1 %v865_v63  ;;  %1035 = vmatpush.bf16.msra.mxu3 %v865_v63  ;;  %v342_v62 = vadd.f32 %v1198_v49, %v306_v58  ;;  %v343_v63 = vadd.f32 %v1198_v49, %v307_v59  ;;  %v310_v26 = vmul.f32 %v1179_v38, %v967_v22  ;;  %v972_v40 = vunpack.c.h.bf16 %v1011_v36 }
  0x2c   : > { %v311_v27 = vmul.f32 %v1179_v38, %v968_v23  ;;  %v326_v28 = vmul.f32 %v1179_v38, %v999_v24  ;;  %v327_v29 = vmul.f32 %v1179_v38, %v1000_v25  ;;  %v1003_v41 = vunpack.c.l.bf16 %v1019_v37 }
  0x2d   : > { %492 = vmatmul.bf16.vlgmr.msra.gmra.mxu0 %v366_v0  ;;  %532 = vmatmul.bf16.vlgmr.msra.gmra.mxu2 %v374_v1  ;;  %v370_v2 = vpack.c.bf16 %v343_v63, %v342_v62  ;;  %v346_v30 = vadd.f32 %v1198_v49, %v310_v26  ;;  %v1004_v42 = vunpack.c.h.bf16 %v1019_v37  ;;  %v312_v43 = vmul.f32 %v1179_v38, %v971_v39 }
  0x2e   : > { %581 = vmatmul.bf16.vlgmr.msra.gmra.mxu1 %v366_v0  ;;  %621 = vmatmul.bf16.vlgmr.msra.gmra.mxu3 %v374_v1  ;;  %v358_v0 = vadd.f32 %v1198_v49, %v322_v60  ;;  %v359_v1 = vadd.f32 %v1198_v49, %v323_v61  ;;  %v347_v31 = vadd.f32 %v1198_v49, %v311_v27  ;;  %v1293_v55 = vperm.slane %v398_v54, 1 }
  0x2f   : > { %v313_v44 = vmul.f32 %v1179_v38, %v972_v40  ;;  %v328_v45 = vmul.f32 %v1179_v38, %v1003_v41  ;;  %v329_v46 = vmul.f32 %v1179_v38, %v1004_v42  ;;  %v348_v47 = vadd.f32 %v1198_v49, %v312_v43 }
  0x30   : > { %v378_v3 = vpack.c.bf16 %v359_v1, %v358_v0  ;;  %v372_v34 = vpack.c.bf16 %v347_v31, %v346_v30  ;;  %v1291_v38 = vperm.slane %v398_v54, 0 }
  0x31   : > { %v349_v48 = vadd.f32 %v1198_v49, %v313_v44 }
  0x33   : > { %v373_v52 = vpack.c.bf16 %v349_v48, %v348_v47 }
  0x3d   : > { %497 = vmatmul.bf16.gmra.mxu0 %v367_v16  ;;  %537 = vmatmul.bf16.gmra.mxu2 %v375_v17 }
  0x3e   : > { %586 = vmatmul.bf16.gmra.mxu1 %v367_v16  ;;  %626 = vmatmul.bf16.gmra.mxu3 %v375_v17  ;;  %v360_v16 = vadd.f32 %v1198_v49, %v324_v12  ;;  %v361_v17 = vadd.f32 %v1198_v49, %v325_v13 }
  0x40   : > { %v379_v19 = vpack.c.bf16 %v361_v17, %v360_v16 }
  0x4d   : > { %502 = vmatmul.bf16.gmra.mxu0 %v368_v32  ;;  %542 = vmatmul.bf16.gmra.mxu2 %v376_v33 }
  0x4e   : > { %591 = vmatmul.bf16.gmra.mxu1 %v368_v32  ;;  %631 = vmatmul.bf16.gmra.mxu3 %v376_v33  ;;  %v362_v32 = vadd.f32 %v1198_v49, %v326_v28  ;;  %v363_v33 = vadd.f32 %v1198_v49, %v327_v29 }
  0x50   : > { %v380_v35 = vpack.c.bf16 %v363_v33, %v362_v32 }
  0x5d   : > { %507 = vmatmul.bf16.gmra.mxu0 %v369_v50  ;;  %547 = vmatmul.bf16.gmra.mxu2 %v377_v51 }
  0x5e   : > { %596 = vmatmul.bf16.gmra.mxu1 %v369_v50  ;;  %636 = vmatmul.bf16.gmra.mxu3 %v377_v51  ;;  %v364_v50 = vadd.f32 %v1198_v49, %v328_v45  ;;  %v365_v51 = vadd.f32 %v1198_v49, %v329_v46 }
  0x60   : > { %v381_v53 = vpack.c.bf16 %v365_v51, %v364_v50 }
  0x6d   : > { %512 = vmatmul.bf16.gmra.mxu0 %v370_v2  ;;  %552 = vmatmul.bf16.gmra.mxu2 %v378_v3 }
  0x6e   : > { %601 = vmatmul.bf16.gmra.mxu1 %v370_v2  ;;  %641 = vmatmul.bf16.gmra.mxu3 %v378_v3 }
  0x7d   : > { %517 = vmatmul.bf16.gmra.mxu0 %v371_v18  ;;  %557 = vmatmul.bf16.gmra.mxu2 %v379_v19 }
  0x7e   : > { %606 = vmatmul.bf16.gmra.mxu1 %v371_v18  ;;  %646 = vmatmul.bf16.gmra.mxu3 %v379_v19 }
  0x8d   : > { %522 = vmatmul.bf16.gmra.mxu0 %v372_v34  ;;  %562 = vmatmul.bf16.gmra.mxu2 %v380_v35 }
  0x8e   : > { %611 = vmatmul.bf16.gmra.mxu1 %v372_v34  ;;  %651 = vmatmul.bf16.gmra.mxu3 %v380_v35 }
  0x9d   : > { %527 = vmatmul.bf16.gmra.mxu0 %v373_v52  ;;  %567 = vmatmul.bf16.gmra.mxu2 %v381_v53 }
  0x9e   : > { %616 = vmatmul.bf16.gmra.mxu1 %v373_v52  ;;  %656 = vmatmul.bf16.gmra.mxu3 %v381_v53 }
  0xaa   : > { %v493_v56 = vpop.f32.mrf.mxu0 }
  0xab   : > { %v494_v57 = vadd.f32 %v493_v56, %v1291_v38  ;;  %v582_v58 = vpop.f32.mrf.mxu1 }
  0xac   : > { %v583_v49 = vadd.f32 %v582_v58, %v1293_v55 }
  0xad   : > { %v662_v59 = vmax.f32 %v494_v57, 0.0 }
  0xae   : > { %v663_v60 = vmax.f32 %v583_v49, 0.0 }
  0xb0   : > { %v726_v61 = vpack.c.bf16 %v663_v60, %v662_v59  ;;  %v533_v62 = vpop.f32.mrf.mxu2 }
  0xb1   : > { %v534_v63 = vadd.f32 %v533_v62, %v1291_v38  ;;  %v622_v0 = vpop.f32.mrf.mxu3 }
  0xb2   : > { %758 = vst [vmem:[%s1301_s28] sm:$0xff] %v726_v61  ;;  %v623_v1 = vadd.f32 %v622_v0, %v1293_v55  ;;  %v495_v2 = vpop.f32.mrf.mxu0 }
  0xb3   : > { %v694_v3 = vmax.f32 %v534_v63, 0.0  ;;  %v496_v4 = vadd.f32 %v495_v2, %v1291_v38  ;;  %v584_v5 = vpop.f32.mrf.mxu1 }
  0xb4   : > { %v695_v6 = vmax.f32 %v623_v1, 0.0  ;;  %v585_v7 = vadd.f32 %v584_v5, %v1293_v55 }
  0xb5   : > { %v664_v8 = vmax.f32 %v496_v4, 0.0 }
  0xb6   : > { %v742_v9 = vpack.c.bf16 %v695_v6, %v694_v3  ;;  %v665_v10 = vmax.f32 %v585_v7, 0.0 }
  0xb8   : > { %774 = vst [vmem:[%s1301_s28 + $0x80] sm:$0xff] %v742_v9  ;;  %v727_v11 = vpack.c.bf16 %v665_v10, %v664_v8  ;;  %v535_v12 = vpop.f32.mrf.mxu2 }
  0xb9   : > { %v536_v13 = vadd.f32 %v535_v12, %v1291_v38  ;;  %v624_v14 = vpop.f32.mrf.mxu3 }
  0xba   : > { %759 = vst [vmem:[%s1301_s28 + $0x8] sm:$0xff] %v727_v11  ;;  %v625_v15 = vadd.f32 %v624_v14, %v1293_v55  ;;  %v498_v16 = vpop.f32.mrf.mxu0 }
  0xbb   : > { %v696_v17 = vmax.f32 %v536_v13, 0.0  ;;  %v499_v18 = vadd.f32 %v498_v16, %v1291_v38  ;;  %v587_v19 = vpop.f32.mrf.mxu1 }
  0xbc   : > { %v697_v20 = vmax.f32 %v625_v15, 0.0  ;;  %v588_v21 = vadd.f32 %v587_v19, %v1293_v55 }
  0xbd   : > { %v666_v22 = vmax.f32 %v499_v18, 0.0 }
  0xbe   : > { %v743_v23 = vpack.c.bf16 %v697_v20, %v696_v17  ;;  %v667_v24 = vmax.f32 %v588_v21, 0.0 }
  0xc0   : > { %775 = vst [vmem:[%s1301_s28 + $0x88] sm:$0xff] %v743_v23  ;;  %v728_v25 = vpack.c.bf16 %v667_v24, %v666_v22  ;;  %v538_v26 = vpop.f32.mrf.mxu2 }
  0xc1   : > { %v539_v27 = vadd.f32 %v538_v26, %v1291_v38  ;;  %v627_v28 = vpop.f32.mrf.mxu3 }
  0xc2   : > { %760 = vst [vmem:[%s1301_s28 + $0x10] sm:$0xff] %v728_v25  ;;  %v628_v29 = vadd.f32 %v627_v28, %v1293_v55  ;;  %v500_v30 = vpop.f32.mrf.mxu0 }
  0xc3   : > { %v698_v31 = vmax.f32 %v539_v27, 0.0  ;;  %v501_v32 = vadd.f32 %v500_v30, %v1291_v38  ;;  %v589_v33 = vpop.f32.mrf.mxu1 }
  0xc4   : > { %v699_v34 = vmax.f32 %v628_v29, 0.0  ;;  %v590_v35 = vadd.f32 %v589_v33, %v1293_v55 }
  0xc5   : > { %v668_v36 = vmax.f32 %v501_v32, 0.0 }
  0xc6   : > { %v744_v37 = vpack.c.bf16 %v699_v34, %v698_v31  ;;  %v669_v39 = vmax.f32 %v590_v35, 0.0 }
  0xc8   : > { %776 = vst [vmem:[%s1301_s28 + $0x90] sm:$0xff] %v744_v37  ;;  %v729_v40 = vpack.c.bf16 %v669_v39, %v668_v36  ;;  %v540_v41 = vpop.f32.mrf.mxu2 }
  0xc9   : > { %v541_v42 = vadd.f32 %v540_v41, %v1291_v38  ;;  %v629_v43 = vpop.f32.mrf.mxu3 }
  0xca   : > { %761 = vst [vmem:[%s1301_s28 + $0x18] sm:$0xff] %v729_v40  ;;  %v630_v44 = vadd.f32 %v629_v43, %v1293_v55  ;;  %v503_v45 = vpop.f32.mrf.mxu0 }
  0xcb   : > { %v700_v46 = vmax.f32 %v541_v42, 0.0  ;;  %v504_v47 = vadd.f32 %v503_v45, %v1291_v38  ;;  %v592_v48 = vpop.f32.mrf.mxu1 }
  0xcc   : > { %v701_v50 = vmax.f32 %v630_v44, 0.0  ;;  %v593_v51 = vadd.f32 %v592_v48, %v1293_v55 }
  0xcd   : > { %v670_v52 = vmax.f32 %v504_v47, 0.0 }
  0xce   : > { %v745_v53 = vpack.c.bf16 %v701_v50, %v700_v46  ;;  %v671_v54 = vmax.f32 %v593_v51, 0.0 }
  0xd0   : > { %777 = vst [vmem:[%s1301_s28 + $0x98] sm:$0xff] %v745_v53  ;;  %v730_v56 = vpack.c.bf16 %v671_v54, %v670_v52  ;;  %v543_v57 = vpop.f32.mrf.mxu2 }
  0xd1   : > { %v544_v58 = vadd.f32 %v543_v57, %v1291_v38  ;;  %v632_v49 = vpop.f32.mrf.mxu3 }
  0xd2   : > { %762 = vst [vmem:[%s1301_s28 + $0x20] sm:$0xff] %v730_v56  ;;  %v633_v59 = vadd.f32 %v632_v49, %v1293_v55  ;;  %v505_v60 = vpop.f32.mrf.mxu0 }
  0xd3   : > { %v702_v61 = vmax.f32 %v544_v58, 0.0  ;;  %v506_v62 = vadd.f32 %v505_v60, %v1291_v38  ;;  %v594_v63 = vpop.f32.mrf.mxu1 }
  0xd4   : > { %v703_v0 = vmax.f32 %v633_v59, 0.0  ;;  %v595_v1 = vadd.f32 %v594_v63, %v1293_v55 }
  0xd5   : > { %v672_v2 = vmax.f32 %v506_v62, 0.0 }
  0xd6   : > { %v746_v3 = vpack.c.bf16 %v703_v0, %v702_v61  ;;  %v673_v4 = vmax.f32 %v595_v1, 0.0 }
  0xd8   : > { %778 = vst [vmem:[%s1301_s28 + $0xa0] sm:$0xff] %v746_v3  ;;  %v731_v5 = vpack.c.bf16 %v673_v4, %v672_v2  ;;  %v545_v6 = vpop.f32.mrf.mxu2 }
  0xd9   : > { %v546_v7 = vadd.f32 %v545_v6, %v1291_v38  ;;  %v634_v8 = vpop.f32.mrf.mxu3 }
  0xda   : > { %763 = vst [vmem:[%s1301_s28 + $0x28] sm:$0xff] %v731_v5  ;;  %v635_v9 = vadd.f32 %v634_v8, %v1293_v55  ;;  %v508_v10 = vpop.f32.mrf.mxu0 }
  0xdb   : > { %v704_v11 = vmax.f32 %v546_v7, 0.0  ;;  %v509_v12 = vadd.f32 %v508_v10, %v1291_v38  ;;  %v597_v13 = vpop.f32.mrf.mxu1 }
  0xdc   : > { %v705_v14 = vmax.f32 %v635_v9, 0.0  ;;  %v598_v15 = vadd.f32 %v597_v13, %v1293_v55 }
  0xdd   : > { %v674_v16 = vmax.f32 %v509_v12, 0.0 }
  0xde   : > { %v747_v17 = vpack.c.bf16 %v705_v14, %v704_v11  ;;  %v675_v18 = vmax.f32 %v598_v15, 0.0 }
  0xe0   : > { %779 = vst [vmem:[%s1301_s28 + $0xa8] sm:$0xff] %v747_v17  ;;  %v732_v19 = vpack.c.bf16 %v675_v18, %v674_v16  ;;  %v548_v20 = vpop.f32.mrf.mxu2 }
  0xe1   : > { %v549_v21 = vadd.f32 %v548_v20, %v1291_v38  ;;  %v637_v22 = vpop.f32.mrf.mxu3 }
  0xe2   : > { %764 = vst [vmem:[%s1301_s28 + $0x30] sm:$0xff] %v732_v19  ;;  %v638_v23 = vadd.f32 %v637_v22, %v1293_v55  ;;  %v510_v24 = vpop.f32.mrf.mxu0 }
  0xe3   : > { %v706_v25 = vmax.f32 %v549_v21, 0.0  ;;  %v511_v26 = vadd.f32 %v510_v24, %v1291_v38  ;;  %v599_v27 = vpop.f32.mrf.mxu1 }
  0xe4   : > { %v707_v28 = vmax.f32 %v638_v23, 0.0  ;;  %v600_v29 = vadd.f32 %v599_v27, %v1293_v55 }
  0xe5   : > { %v676_v30 = vmax.f32 %v511_v26, 0.0 }
  0xe6   : > { %v748_v31 = vpack.c.bf16 %v707_v28, %v706_v25  ;;  %v677_v32 = vmax.f32 %v600_v29, 0.0 }
  0xe8   : > { %780 = vst [vmem:[%s1301_s28 + $0xb0] sm:$0xff] %v748_v31  ;;  %v733_v33 = vpack.c.bf16 %v677_v32, %v676_v30  ;;  %v550_v34 = vpop.f32.mrf.mxu2 }
  0xe9   : > { %v551_v35 = vadd.f32 %v550_v34, %v1291_v38  ;;  %v639_v36 = vpop.f32.mrf.mxu3 }
  0xea   : > { %765 = vst [vmem:[%s1301_s28 + $0x38] sm:$0xff] %v733_v33  ;;  %v640_v37 = vadd.f32 %v639_v36, %v1293_v55  ;;  %v513_v39 = vpop.f32.mrf.mxu0 }
  0xeb   : > { %v708_v40 = vmax.f32 %v551_v35, 0.0  ;;  %v514_v41 = vadd.f32 %v513_v39, %v1291_v38  ;;  %v602_v42 = vpop.f32.mrf.mxu1 }
  0xec   : > { %v709_v43 = vmax.f32 %v640_v37, 0.0  ;;  %v603_v44 = vadd.f32 %v602_v42, %v1293_v55 }
  0xed   : > { %v678_v45 = vmax.f32 %v514_v41, 0.0 }
  0xee   : > { %v749_v46 = vpack.c.bf16 %v709_v43, %v708_v40  ;;  %v679_v47 = vmax.f32 %v603_v44, 0.0 }
  0xf0   : > { %781 = vst [vmem:[%s1301_s28 + $0xb8] sm:$0xff] %v749_v46  ;;  %v734_v48 = vpack.c.bf16 %v679_v47, %v678_v45  ;;  %v553_v50 = vpop.f32.mrf.mxu2 }
  0xf1   : > { %v554_v51 = vadd.f32 %v553_v50, %v1291_v38  ;;  %v642_v52 = vpop.f32.mrf.mxu3 }
  0xf2   : > { %766 = vst [vmem:[%s1301_s28 + $0x40] sm:$0xff] %v734_v48  ;;  %v643_v53 = vadd.f32 %v642_v52, %v1293_v55  ;;  %v515_v54 = vpop.f32.mrf.mxu0 }
  0xf3   : > { %v710_v56 = vmax.f32 %v554_v51, 0.0  ;;  %v516_v57 = vadd.f32 %v515_v54, %v1291_v38  ;;  %v604_v58 = vpop.f32.mrf.mxu1 }
  0xf4   : > { %v711_v49 = vmax.f32 %v643_v53, 0.0  ;;  %v605_v59 = vadd.f32 %v604_v58, %v1293_v55 }
  0xf5   : > { %v680_v60 = vmax.f32 %v516_v57, 0.0 }
  0xf6   : > { %v750_v61 = vpack.c.bf16 %v711_v49, %v710_v56  ;;  %v681_v62 = vmax.f32 %v605_v59, 0.0 }
  0xf8   : > { %782 = vst [vmem:[%s1301_s28 + $0xc0] sm:$0xff] %v750_v61  ;;  %v735_v63 = vpack.c.bf16 %v681_v62, %v680_v60  ;;  %v555_v0 = vpop.f32.mrf.mxu2 }
  0xf9   : > { %v556_v1 = vadd.f32 %v555_v0, %v1291_v38  ;;  %v644_v2 = vpop.f32.mrf.mxu3 }
  0xfa   : > { %767 = vst [vmem:[%s1301_s28 + $0x48] sm:$0xff] %v735_v63  ;;  %v645_v3 = vadd.f32 %v644_v2, %v1293_v55  ;;  %v518_v4 = vpop.f32.mrf.mxu0 }
  0xfb   : > { %v712_v5 = vmax.f32 %v556_v1, 0.0  ;;  %v519_v6 = vadd.f32 %v518_v4, %v1291_v38  ;;  %v607_v7 = vpop.f32.mrf.mxu1 }
  0xfc   : > { %v713_v8 = vmax.f32 %v645_v3, 0.0  ;;  %v608_v9 = vadd.f32 %v607_v7, %v1293_v55 }
  0xfd   : > { %v682_v10 = vmax.f32 %v519_v6, 0.0 }
  0xfe   : > { %v751_v11 = vpack.c.bf16 %v713_v8, %v712_v5  ;;  %v683_v12 = vmax.f32 %v608_v9, 0.0 }
 0x100   : > { %783 = vst [vmem:[%s1301_s28 + $0xc8] sm:$0xff] %v751_v11  ;;  %v736_v13 = vpack.c.bf16 %v683_v12, %v682_v10  ;;  %v558_v14 = vpop.f32.mrf.mxu2 }
 0x101   : > { %v559_v15 = vadd.f32 %v558_v14, %v1291_v38  ;;  %v647_v16 = vpop.f32.mrf.mxu3 }
 0x102   : > { %768 = vst [vmem:[%s1301_s28 + $0x50] sm:$0xff] %v736_v13  ;;  %v648_v17 = vadd.f32 %v647_v16, %v1293_v55  ;;  %v520_v18 = vpop.f32.mrf.mxu0 }
 0x103   : > { %v714_v19 = vmax.f32 %v559_v15, 0.0  ;;  %v521_v20 = vadd.f32 %v520_v18, %v1291_v38  ;;  %v609_v21 = vpop.f32.mrf.mxu1 }
 0x104   : > { %v715_v22 = vmax.f32 %v648_v17, 0.0  ;;  %v610_v23 = vadd.f32 %v609_v21, %v1293_v55 }
 0x105   : > { %v684_v24 = vmax.f32 %v521_v20, 0.0 }
 0x106   : > { %v752_v25 = vpack.c.bf16 %v715_v22, %v714_v19  ;;  %v685_v26 = vmax.f32 %v610_v23, 0.0 }
 0x108   : > { %784 = vst [vmem:[%s1301_s28 + $0xd0] sm:$0xff] %v752_v25  ;;  %v737_v27 = vpack.c.bf16 %v685_v26, %v684_v24  ;;  %v560_v28 = vpop.f32.mrf.mxu2 }
 0x109   : > { %v561_v29 = vadd.f32 %v560_v28, %v1291_v38  ;;  %v649_v30 = vpop.f32.mrf.mxu3 }
 0x10a   : > { %769 = vst [vmem:[%s1301_s28 + $0x58] sm:$0xff] %v737_v27  ;;  %v650_v31 = vadd.f32 %v649_v30, %v1293_v55  ;;  %v523_v32 = vpop.f32.mrf.mxu0 }
 0x10b   : > { %v716_v33 = vmax.f32 %v561_v29, 0.0  ;;  %v524_v34 = vadd.f32 %v523_v32, %v1291_v38  ;;  %v612_v35 = vpop.f32.mrf.mxu1 }
 0x10c   : > { %v717_v36 = vmax.f32 %v650_v31, 0.0  ;;  %v613_v37 = vadd.f32 %v612_v35, %v1293_v55 }
 0x10d   : > { %v686_v39 = vmax.f32 %v524_v34, 0.0 }
 0x10e   : > { %v753_v40 = vpack.c.bf16 %v717_v36, %v716_v33  ;;  %v687_v41 = vmax.f32 %v613_v37, 0.0 }
 0x110   : > { %785 = vst [vmem:[%s1301_s28 + $0xd8] sm:$0xff] %v753_v40  ;;  %v738_v42 = vpack.c.bf16 %v687_v41, %v686_v39  ;;  %v563_v43 = vpop.f32.mrf.mxu2 }
 0x111   : > { %v564_v44 = vadd.f32 %v563_v43, %v1291_v38  ;;  %v652_v45 = vpop.f32.mrf.mxu3 }
 0x112   : > { %770 = vst [vmem:[%s1301_s28 + $0x60] sm:$0xff] %v738_v42  ;;  %v653_v46 = vadd.f32 %v652_v45, %v1293_v55  ;;  %v525_v47 = vpop.f32.mrf.mxu0 }
 0x113   : > { %v718_v48 = vmax.f32 %v564_v44, 0.0  ;;  %v526_v50 = vadd.f32 %v525_v47, %v1291_v38  ;;  %v614_v51 = vpop.f32.mrf.mxu1 }
 0x114   : > { %v719_v52 = vmax.f32 %v653_v46, 0.0  ;;  %v615_v53 = vadd.f32 %v614_v51, %v1293_v55 }
 0x115   : > { %v688_v54 = vmax.f32 %v526_v50, 0.0 }
 0x116   : > { %v754_v56 = vpack.c.bf16 %v719_v52, %v718_v48  ;;  %v689_v57 = vmax.f32 %v615_v53, 0.0 }
 0x118   : > { %786 = vst [vmem:[%s1301_s28 + $0xe0] sm:$0xff] %v754_v56  ;;  %v739_v58 = vpack.c.bf16 %v689_v57, %v688_v54  ;;  %v565_v49 = vpop.f32.mrf.mxu2 }
 0x119   : > { %v566_v59 = vadd.f32 %v565_v49, %v1291_v38  ;;  %v654_v60 = vpop.f32.mrf.mxu3 }
 0x11a   : > { %771 = vst [vmem:[%s1301_s28 + $0x68] sm:$0xff] %v739_v58  ;;  %v655_v61 = vadd.f32 %v654_v60, %v1293_v55  ;;  %v528_v62 = vpop.f32.mrf.mxu0 }
 0x11b   : > { %v720_v63 = vmax.f32 %v566_v59, 0.0  ;;  %v529_v0 = vadd.f32 %v528_v62, %v1291_v38  ;;  %v617_v1 = vpop.f32.mrf.mxu1 }
 0x11c   : > { %v721_v2 = vmax.f32 %v655_v61, 0.0  ;;  %v618_v3 = vadd.f32 %v617_v1, %v1293_v55 }
 0x11d   : > { %v690_v4 = vmax.f32 %v529_v0, 0.0 }
 0x11e   : > { %v755_v5 = vpack.c.bf16 %v721_v2, %v720_v63  ;;  %v691_v6 = vmax.f32 %v618_v3, 0.0 }
 0x120   : > { %787 = vst [vmem:[%s1301_s28 + $0xe8] sm:$0xff] %v755_v5  ;;  %v740_v7 = vpack.c.bf16 %v691_v6, %v690_v4  ;;  %v568_v8 = vpop.f32.mrf.mxu2 }
 0x121   : > { %v569_v9 = vadd.f32 %v568_v8, %v1291_v38  ;;  %v657_v10 = vpop.f32.mrf.mxu3 }
 0x122   : > { %772 = vst [vmem:[%s1301_s28 + $0x70] sm:$0xff] %v740_v7  ;;  %v658_v11 = vadd.f32 %v657_v10, %v1293_v55  ;;  %v530_v12 = vpop.f32.mrf.mxu0 }
 0x123   : > { %v722_v13 = vmax.f32 %v569_v9, 0.0  ;;  %v531_v14 = vadd.f32 %v530_v12, %v1291_v38  ;;  %v619_v15 = vpop.f32.mrf.mxu1 }
 0x124   : > { %v723_v16 = vmax.f32 %v658_v11, 0.0  ;;  %v620_v17 = vadd.f32 %v619_v15, %v1293_v55 }
 0x125   : > { %v692_v18 = vmax.f32 %v531_v14, 0.0 }
 0x126   : > { %v756_v19 = vpack.c.bf16 %v723_v16, %v722_v13  ;;  %v693_v20 = vmax.f32 %v620_v17, 0.0 }
 0x128   : > { %788 = vst [vmem:[%s1301_s28 + $0xf0] sm:$0xff] %v756_v19  ;;  %v741_v21 = vpack.c.bf16 %v693_v20, %v692_v18  ;;  %v570_v22 = vpop.f32.mrf.mxu2 }
 0x129   : > { %v571_v23 = vadd.f32 %v570_v22, %v1291_v38  ;;  %v659_v24 = vpop.f32.mrf.mxu3 }
 0x12a   : > { %773 = vst [vmem:[%s1301_s28 + $0x78] sm:$0xff] %v741_v21  ;;  %v660_v25 = vadd.f32 %v659_v24, %v1293_v55 }
 0x12b   : > { %v724_v26 = vmax.f32 %v571_v23, 0.0 }
 0x12c   : > { %v725_v27 = vmax.f32 %v660_v25, 0.0 }
 0x12e   : > { %v757_v28 = vpack.c.bf16 %v725_v27, %v724_v26 }
 0x130   : > { %789 = vst [vmem:[%s1301_s28 + $0xf8] sm:$0xff] %v757_v28 }
 0x131 PF: > { %s15_s18 = sadd.s32 1, %s1052_s18  }
 0x132   : > { %p12_p4 = scmp.ge.s32.totalorder %s15_s18, 4  }
 0x134   :  { %14 = sbr.rel (!%p12_p4) target bundleno = 1 (0x1), region = 70 }

// kernel: expander_forward.7
= control target key start
LH: loop header
LB: loop body
LE: loop exit
PB: predicated region body
PF: predicated region fallthrough
CT: control target
= control target key end

     0   :  { %12 = vsyncpa [#allocation3], 0  ;;  %s3367_s0 = inlined_call_operand.vmem [shape: f32[1,256], index: 0, kind: input, shape index: {}]   ;;  %s3368_s1 = inlined_call_operand.vmem [shape: f32[1,256], index: 1, kind: input, shape index: {}]   ;;  %s3369_s2 = inlined_call_operand.vmem [shape: bf16[256,256], index: 2, kind: input, shape index: {}]   ;;  %s3370_s3 = inlined_call_operand.vmem [shape: f32[1,256], index: 3, kind: input, shape index: {}]   ;;  %s3371_s4 = inlined_call_operand.vmem [shape: bf16[256,256], index: 4, kind: input, shape index: {}]   ;;  %s3372_s5 = inlined_call_operand.vmem [shape: f32[1,256], index: 5, kind: input, shape index: {}]   ;;  %s3373_s6 = inlined_call_operand.vmem [shape: bf16[512,256], index: 6, kind: input, shape index: {}]   ;;  %s3374_s7 = inlined_call_operand.hbm [shape: f32[512,256], index: 7, kind: output, shape index: {}]  }
   0x1   :  { %14 = vsyncpa [#allocation3 + $0x1], 0  ;;  %s2382_s24 = smov 0   ;;  %s2384_s25 = smov 0  }
   0x2   :  { %s2386_s26 = smov 0   ;;  %s2388_s27 = smov 0  }
   0x3 LB: > { %s2403_s28 = sadd.s32 4294967295, %s2338_s27   ;;  %s1898_s29 = sadd.s32 4294967294, %s2338_s27   ;;  %s2338_s27 = sphi %s2388_s27, %s3380_s27   ;;  %s2334_s26 = sphi %s2386_s26, %s3379_s26   ;;  %s2330_s25 = sphi %s2384_s25, %s3378_s25   ;;  %s2326_s24 = sphi %s2382_s24, %s3377_s24  }
   0x4   : > { %s2407_s30 = sadd.s32 1, %s2338_s27   ;;  %s179_s8 = sadd.s32 1, %s2334_s26 }
   0x5   : > { %s176_s9 = ssub.s32 %s2338_s27, %s2407_s30  ;;  %p189_p0 = scmp.ne.s32.totalorder %s2334_s26, %s2330_s25 }
   0x6   : > { %p177_p1 = scmp.eq.s32.totalorder %s176_s9, 0  ;;  %p190_p2 = scmp.eq.s32.totalorder %s2403_s28, 1 }
   0x7   : > { %p195_p3 = scmp.ne.s32.totalorder %s2330_s25, %s2326_s24  ;;  %p196_p4 = scmp.eq.s32.totalorder %s1898_s29, 1 }
   0x8   : > { %s2418_s10 = scalar_select %p177_p1, %s2334_s26, %s179_s8  }
   0x9   : > { %p2420_p5 = por %p190_p2, %p189_p0  ;;  %p2424_p6 = por %p196_p4, %p195_p3 }
   0xa   : > { %p1901_p7 = scmp.ge.s32.totalorder %s2338_s27, 1  ;;  %p242_p8 = scmp.lt.s32.totalorder %s2338_s27, 3 }
   0xc   : > { %p243_p9 = pnand %p1901_p7, %p242_p8 }
   0xd   : > { %s1903_s13 = sshll.u32 (!%p243_p9), %s2403_s28, 5  ;;  %s272_s8 = sand.u32 (!%p243_p9), 1, %s2330_s25  }
   0xe   : > { %246 = sbr.rel (%p243_p9) target bundleno = 701 (0x2bd), region = 48  ;;  %p276_p10 = scmp.lt.s32.totalorder (!%p243_p9), %s1903_s13, 63 }
   0xf   : > { %s1902_s9 = sshll.u32 (!%p243_p9), %s272_s8, 9  ;;  %s2234_s15 = sshll.u32 (!%p243_p9), %s2403_s28, 9 }
  0x10   : > { %s1832_s18 = scalar_lea.hbm (!%p243_p9), %s3374_s7, %s2234_s15  ;;  %s1820_s28 = scalar_lea.sflag (!%p243_p9), [#allocation3], %s272_s8 }
  0x11   : > { %s1835_s20 = sshll.u32 (!%p243_p9), %s1832_s18, 4  ;;  %s2296_s29 = scalar_lea.hbm (!%p243_p9), %s3374_s7, 1024  ;;  %s1836_s20 = int_to_ptr.hbm [resolvable:$true] %s1835_s20 }
  0x12   : > { %s2290_s22 = sshra.s32 (!%p243_p9), %s1836_s20, 4  ;;  %s2291_s22 = int_to_ptr.hbm [resolvable:$true] %s2290_s22 }
  0x13   : > { %v1964_v0 = vld [vmem:[%s3369_s2 + $0x70] sm:$0xf]  ;;  %v2184_v1 = vld [vmem:[%s3369_s2 + $0x74] sm:$0xf0]  ;;  %v2183_v5 = vld [vmem:[%s3369_s2 + $0x74] sm:$0xf]  ;;  %p2297_p0 = scmp.lt.s32.totalorder %s2291_s22, %s3374_s7 }
  0x14   : > { %v2028_v2 = vld [vmem:[%s3369_s2 + $0xf0] sm:$0xf]  ;;  %v1965_v3 = vor.u32 %v2184_v1, %v1964_v0  ;;  %v2200_v4 = vld [vmem:[%s3369_s2 + $0xf4] sm:$0xf0]  ;;  %v1966_v6 = vld [vmem:[%s3369_s2 + $0x78] sm:$0xf0] }
  0x15   : > { %v2029_v7 = vor.u32 %v2200_v4, %v2028_v2  ;;  %v1969_v8 = vor.u32 %v2183_v5, %v1966_v6  ;;  %v2199_v9 = vld [vmem:[%s3369_s2 + $0xf4] sm:$0xf]  ;;  %v2030_v10 = vld [vmem:[%s3369_s2 + $0xf8] sm:$0xf0]  ;;  %v1956_v11 = vld [vmem:[%s3369_s2 + $0x60] sm:$0xf] }
  0x16   : > { %749 = vmatpush.bf16.msra.mxu0 %v1965_v3  ;;  %v2033_v12 = vor.u32 %v2199_v9, %v2030_v10  ;;  %v2182_v13 = vld [vmem:[%s3369_s2 + $0x64] sm:$0xf0]  ;;  %v2020_v14 = vld [vmem:[%s3369_s2 + $0xe0] sm:$0xf]  ;;  %v2181_v18 = vld [vmem:[%s3369_s2 + $0x64] sm:$0xf] }
  0x17   : > { %v2198_v15 = vld [vmem:[%s3369_s2 + $0xe4] sm:$0xf0]  ;;  %838 = vmatpush.bf16.msra.mxu1 %v2029_v7  ;;  %927 = vmatpush.bf16.msra.mxu2 %v1969_v8  ;;  %v1957_v16 = vor.u32 %v2182_v13, %v1956_v11  ;;  %v1958_v19 = vld [vmem:[%s3369_s2 + $0x68] sm:$0xf0]  ;;  %v2197_v20 = vld [vmem:[%s3369_s2 + $0xe4] sm:$0xf] }
  0x18   : > { %v2021_v17 = vor.u32 %v2198_v15, %v2020_v14  ;;  %1016 = vmatpush.bf16.msra.mxu3 %v2033_v12  ;;  %v1961_v21 = vor.u32 %v2181_v18, %v1958_v19  ;;  %v2022_v22 = vld [vmem:[%s3369_s2 + $0xe8] sm:$0xf0]  ;;  %v1948_v23 = vld [vmem:[%s3369_s2 + $0x50] sm:$0xf]  ;;  %v2180_v24 = vld [vmem:[%s3369_s2 + $0x54] sm:$0xf0] }
  0x19   : > { %v2025_v25 = vor.u32 %v2197_v20, %v2022_v22  ;;  %v2012_v26 = vld [vmem:[%s3369_s2 + $0xd0] sm:$0xf]  ;;  %v2196_v27 = vld [vmem:[%s3369_s2 + $0xd4] sm:$0xf0]  ;;  %v2179_v28 = vld [vmem:[%s3369_s2 + $0x54] sm:$0xf]  ;;  %v1949_v29 = vor.u32 %v2180_v24, %v1948_v23 }
  0x1a   : > { %750 = vmatpush.bf16.msra.mxu0 %v1957_v16  ;;  %v1950_v30 = vld [vmem:[%s3369_s2 + $0x58] sm:$0xf0]  ;;  %v2195_v31 = vld [vmem:[%s3369_s2 + $0xd4] sm:$0xf]  ;;  %v2013_v33 = vor.u32 %v2196_v27, %v2012_v26  ;;  %v1940_v35 = vld [vmem:[%s3369_s2 + $0x40] sm:$0xf] }
  0x1b   : > { %v2014_v32 = vld [vmem:[%s3369_s2 + $0xd8] sm:$0xf0]  ;;  %839 = vmatpush.bf16.msra.mxu1 %v2021_v17  ;;  %928 = vmatpush.bf16.msra.mxu2 %v1961_v21  ;;  %v1953_v34 = vor.u32 %v2179_v28, %v1950_v30  ;;  %v2178_v36 = vld [vmem:[%s3369_s2 + $0x44] sm:$0xf0]  ;;  %v2004_v37 = vld [vmem:[%s3369_s2 + $0xc0] sm:$0xf] }
  0x1c   : > { %1017 = vmatpush.bf16.msra.mxu3 %v2025_v25  ;;  %v2017_v38 = vor.u32 %v2195_v31, %v2014_v32  ;;  %v2194_v39 = vld [vmem:[%s3369_s2 + $0xc4] sm:$0xf0]  ;;  %v2177_v40 = vld [vmem:[%s3369_s2 + $0x44] sm:$0xf]  ;;  %v1942_v41 = vld [vmem:[%s3369_s2 + $0x48] sm:$0xf0]  ;;  %v1941_v44 = vor.u32 %v2178_v36, %v1940_v35 }
  0x1d   : > { %v2193_v42 = vld [vmem:[%s3369_s2 + $0xc4] sm:$0xf]  ;;  %v2006_v43 = vld [vmem:[%s3369_s2 + $0xc8] sm:$0xf0]  ;;  %v2005_v45 = vor.u32 %v2194_v39, %v2004_v37  ;;  %v1945_v46 = vor.u32 %v2177_v40, %v1942_v41  ;;  %v1932_v47 = vld [vmem:[%s3369_s2 + $0x30] sm:$0xf] }
  0x1e   : > { %751 = vmatpush.bf16.msra.mxu0 %v1949_v29  ;;  %v2176_v48 = vld [vmem:[%s3369_s2 + $0x34] sm:$0xf0]  ;;  %v1996_v49 = vld [vmem:[%s3369_s2 + $0xb0] sm:$0xf]  ;;  %v2009_v50 = vor.u32 %v2193_v42, %v2006_v43  ;;  %v2175_v52 = vld [vmem:[%s3369_s2 + $0x34] sm:$0xf] }
  0x1f   : > { %840 = vmatpush.bf16.msra.mxu1 %v2013_v33  ;;  %929 = vmatpush.bf16.msra.mxu2 %v1953_v34  ;;  %v2192_v51 = vld [vmem:[%s3369_s2 + $0xb4] sm:$0xf0]  ;;  %v1934_v53 = vld [vmem:[%s3369_s2 + $0x38] sm:$0xf0]  ;;  %v2191_v54 = vld [vmem:[%s3369_s2 + $0xb4] sm:$0xf]  ;;  %v1933_v56 = vor.u32 %v2176_v48, %v1932_v47 }
  0x20   : > { %1018 = vmatpush.bf16.msra.mxu3 %v2017_v38  ;;  %v1998_v55 = vld [vmem:[%s3369_s2 + $0xb8] sm:$0xf0]  ;;  %v1997_v57 = vor.u32 %v2192_v51, %v1996_v49  ;;  %v1937_v58 = vor.u32 %v2175_v52, %v1934_v53  ;;  %v1924_v59 = vld [vmem:[%s3369_s2 + $0x20] sm:$0xf]  ;;  %v2174_v60 = vld [vmem:[%s3369_s2 + $0x24] sm:$0xf0] }
  0x21   : > { %v1988_v61 = vld [vmem:[%s3369_s2 + $0xa0] sm:$0xf]  ;;  %v2001_v62 = vor.u32 %v2191_v54, %v1998_v55  ;;  %v2190_v63 = vld [vmem:[%s3369_s2 + $0xa4] sm:$0xf0]  ;;  %v2173_v0 = vld [vmem:[%s3369_s2 + $0x24] sm:$0xf]  ;;  %v1925_v5 = vor.u32 %v2174_v60, %v1924_v59 }
  0x22   : > { %752 = vmatpush.bf16.msra.mxu0 %v1941_v44  ;;  %v1926_v1 = vld [vmem:[%s3369_s2 + $0x28] sm:$0xf0]  ;;  %v2189_v2 = vld [vmem:[%s3369_s2 + $0xa4] sm:$0xf]  ;;  %v1916_v4 = vld [vmem:[%s3369_s2 + $0x10] sm:$0xf]  ;;  %v1989_v9 = vor.u32 %v2190_v63, %v1988_v61 }
  0x23   : > { %841 = vmatpush.bf16.msra.mxu1 %v2005_v45  ;;  %930 = vmatpush.bf16.msra.mxu2 %v1945_v46  ;;  %v1990_v3 = vld [vmem:[%s3369_s2 + $0xa8] sm:$0xf0]  ;;  %v2172_v6 = vld [vmem:[%s3369_s2 + $0x14] sm:$0xf0]  ;;  %v1980_v7 = vld [vmem:[%s3369_s2 + $0x90] sm:$0xf]  ;;  %v1929_v10 = vor.u32 %v2173_v0, %v1926_v1 }
  0x24   : > { %1019 = vmatpush.bf16.msra.mxu3 %v2009_v50  ;;  %v2188_v8 = vld [vmem:[%s3369_s2 + $0x94] sm:$0xf0]  ;;  %v2171_v11 = vld [vmem:[%s3369_s2 + $0x14] sm:$0xf]  ;;  %v1918_v12 = vld [vmem:[%s3369_s2 + $0x18] sm:$0xf0]  ;;  %v1993_v14 = vor.u32 %v2189_v2, %v1990_v3  ;;  %v1917_v21 = vor.u32 %v2172_v6, %v1916_v4 }
  0x25   : > { %v2187_v13 = vld [vmem:[%s3369_s2 + $0x94] sm:$0xf]  ;;  %v1982_v15 = vld [vmem:[%s3369_s2 + $0x98] sm:$0xf0]  ;;  %v379_v16 = vld [vmem:[%s3367_s0] sm:$0x3]  ;;  %v1981_v25 = vor.u32 %v2188_v8, %v1980_v7  ;;  %v1921_v26 = vor.u32 %v2171_v11, %v1918_v12 }
  0x26   : > { %753 = vmatpush.bf16.msra.mxu0 %v1933_v56  ;;  %v1908_v17 = vld [vmem:[%s3369_s2] sm:$0xf]  ;;  %v2170_v18 = vld [vmem:[%s3369_s2 + $0x4] sm:$0xf0]  ;;  %v2169_v22 = vld [vmem:[%s3369_s2 + $0x4] sm:$0xf]  ;;  %v1985_v30 = vor.u32 %v2187_v13, %v1982_v15 }
  0x27   : > { %842 = vmatpush.bf16.msra.mxu1 %v1997_v57  ;;  %931 = vmatpush.bf16.msra.mxu2 %v1937_v58  ;;  %v1972_v19 = vld [vmem:[%s3369_s2 + $0x80] sm:$0xf]  ;;  %v2186_v20 = vld [vmem:[%s3369_s2 + $0x84] sm:$0xf0]  ;;  %v1910_v23 = vld [vmem:[%s3369_s2 + $0x8] sm:$0xf0]  ;;  %v1909_v37 = vor.u32 %v2170_v18, %v1908_v17 }
  0x28   : > { %1020 = vmatpush.bf16.msra.mxu3 %v2001_v62  ;;  %v2185_v24 = vld [vmem:[%s3369_s2 + $0x84] sm:$0xf]  ;;  %v1974_v27 = vld [vmem:[%s3369_s2 + $0x88] sm:$0xf0]  ;;  %s3382_s13 = smov (!%p276_p10, %s1903_s13), 63  ;;  %v2626_v28 = vperm.slane %v379_v16, 0  ;;  %v1973_v38 = vor.u32 %v2186_v20, %v1972_v19  ;;  %v1913_v42 = vor.u32 %v2169_v22, %v1910_v23 }
  0x29   : > { %v449_v29 = vld [vmem:[%s3368_s1] sm:$0x3]  ;;  %v2215_v31 = vld [vmem:[%s3371_s4 + $0x74] sm:$0xf]  ;;  %v2094_v32 = vld [vmem:[%s3371_s4 + $0x78] sm:$0xf0]  ;;  %v1977_v43 = vor.u32 %v2185_v24, %v1974_v27 }
  0x2a   : > { %754 = vmatpush.bf16.msra.mxu0 %v1925_v5  ;;  %v2231_v33 = vld [vmem:[%s3371_s4 + $0xf4] sm:$0xf]  ;;  %s2168_s14 = sshll.u32 %s3382_s13, 3  ;;  %v2640_v34 = vperm.slane %v379_v16, 1  ;;  %v2158_v35 = vld [vmem:[%s3371_s4 + $0xf8] sm:$0xf0]  ;;  %v2097_v52 = vor.u32 %v2215_v31, %v2094_v32 }
  0x2b   : > { %843 = vmatpush.bf16.msra.mxu1 %v1989_v9  ;;  %932 = vmatpush.bf16.msra.mxu2 %v1929_v10  ;;  %v2092_v36 = vld [vmem:[%s3371_s4 + $0x70] sm:$0xf]  ;;  %s2651_s21 = scalar_lea.vmem %s3373_s6, %s2168_s14  ;;  %v2216_v39 = vld [vmem:[%s3371_s4 + $0x74] sm:$0xf0]  ;;  %v2664_v46 = vperm.slane %v449_v29, 0  ;;  %v2666_v47 = vperm.slane %v449_v29, 1  ;;  %v2161_v53 = vor.u32 %v2231_v33, %v2158_v35 }
  0x2c   : > { %1021 = vmatpush.bf16.msra.mxu3 %v1993_v14  ;;  %v2156_v40 = vld [vmem:[%s3371_s4 + $0xf0] sm:$0xf]  ;;  %v2232_v41 = vld [vmem:[%s3371_s4 + $0xf4] sm:$0xf0]  ;;  %v283_v44 = vld [vmem:[%s2651_s21] sm:$0xff]  ;;  %v2093_v54 = vor.u32 %v2216_v39, %v2092_v36  ;;  %s3174_s14 = scalar_lea.vmem [#allocation2], %s1902_s9 }
  0x2d   : > { %v284_v45 = vld [vmem:[%s2651_s21 + $0x8] sm:$0xff]  ;;  %v315_v48 = vunpack.c.l.bf16 %v283_v44  ;;  %v316_v50 = vunpack.c.h.bf16 %v283_v44  ;;  %v2157_v55 = vor.u32 %v2232_v41, %v2156_v40  ;;  %v285_v0 = vld [vmem:[%s2651_s21 + $0x10] sm:$0xff]  ;;  %v286_v1 = vld [vmem:[%s2651_s21 + $0x18] sm:$0xff]  ;;  %s1833_s19 = sshll.u32 %s3174_s14, 4  ;;  %s2292_s13 = scalar_lea.hbm %s2291_s22, 512  ;;  %s1834_s19 = int_to_ptr.vmem [resolvable:$true] %s1833_s19 }
  0x2e   : > { %755 = vmatpush.bf16.msra.mxu0 %v1917_v21  ;;  %v317_v49 = vunpack.c.l.bf16 %v284_v45  ;;  %v318_v51 = vunpack.c.h.bf16 %v284_v45  ;;  %v319_v4 = vunpack.c.l.bf16 %v285_v0  ;;  %v321_v5 = vunpack.c.l.bf16 %v286_v1  ;;  %v2213_v8 = vld [vmem:[%s3371_s4 + $0x64] sm:$0xf]  ;;  %v2086_v9 = vld [vmem:[%s3371_s4 + $0x68] sm:$0xf0]  ;;  %v2084_v13 = vld [vmem:[%s3371_s4 + $0x60] sm:$0xf]  ;;  %p2293_p11 = scmp.ne.s32.totalorder %s2291_s22, %s2292_s13  ;;  %p2298_p1 = scmp.lt.s32.totalorder %s2296_s29, %s2292_s13 }
  0x2f   : > { %844 = vmatpush.bf16.msra.mxu1 %v1981_v25  ;;  %933 = vmatpush.bf16.msra.mxu2 %v1921_v26  ;;  %v385_v56 = vmul.f32 %v2626_v28, %v315_v48  ;;  %v386_v58 = vmul.f32 %v2640_v34, %v316_v50  ;;  %v320_v6 = vunpack.c.h.bf16 %v285_v0  ;;  %v322_v7 = vunpack.c.h.bf16 %v286_v1  ;;  %v2229_v10 = vld [vmem:[%s3371_s4 + $0xe4] sm:$0xf]  ;;  %v2150_v12 = vld [vmem:[%s3371_s4 + $0xe8] sm:$0xf0]  ;;  %v2214_v14 = vld [vmem:[%s3371_s4 + $0x64] sm:$0xf0] }
  0x30   : > { %1022 = vmatpush.bf16.msra.mxu3 %v1985_v30  ;;  %v387_v57 = vmul.f32 %v2626_v28, %v317_v49  ;;  %v388_v59 = vmul.f32 %v2640_v34, %v318_v51  ;;  %v2089_v11 = vor.u32 %v2213_v8, %v2086_v9  ;;  %v389_v15 = vmul.f32 %v2626_v28, %v319_v4  ;;  %v2148_v18 = vld [vmem:[%s3371_s4 + $0xe0] sm:$0xf]  ;;  %v2230_v19 = vld [vmem:[%s3371_s4 + $0xe4] sm:$0xf0]  ;;  %v289_v50 = vld [vmem:[%s2651_s21 + $0x30] sm:$0xff]  ;;  %p2294_p12 = pnand %p2293_p11, %p2420_p5  ;;  %p2299_p2 = por %p2298_p1, %p2297_p0 }
  0x31   : > { %v455_v60 = vadd.f32 %v2664_v46, %v385_v56  ;;  %v456_v62 = vadd.f32 %v2666_v47, %v386_v58  ;;  %v2153_v16 = vor.u32 %v2229_v10, %v2150_v12  ;;  %v2085_v17 = vor.u32 %v2214_v14, %v2084_v13  ;;  %v287_v31 = vld [vmem:[%s2651_s21 + $0x20] sm:$0xff]  ;;  %v288_v32 = vld [vmem:[%s2651_s21 + $0x28] sm:$0xff]  ;;  %v290_v51 = vld [vmem:[%s2651_s21 + $0x38] sm:$0xff] }
  0x32   : > { %756 = vmatpush.bf16.msra.mxu0 %v1909_v37  ;;  %v457_v61 = vadd.f32 %v2664_v46, %v387_v57  ;;  %v458_v63 = vadd.f32 %v2666_v47, %v388_v59  ;;  %v391_v20 = vmul.f32 %v2626_v28, %v321_v5  ;;  %v390_v21 = vmul.f32 %v2640_v34, %v320_v6  ;;  %v2211_v56 = vld [vmem:[%s3371_s4 + $0x54] sm:$0xf]  ;;  %v2078_v57 = vld [vmem:[%s3371_s4 + $0x58] sm:$0xf0]  ;;  %v291_v14 = vld [vmem:[%s2651_s21 + $0x40] sm:$0xff]  ;;  %p2295_p13 = pneg %p2294_p12 }
  0x33   : > { %845 = vmatpush.bf16.msra.mxu1 %v1973_v38  ;;  %934 = vmatpush.bf16.msra.mxu2 %v1913_v42  ;;  %v392_v22 = vmul.f32 %v2640_v34, %v322_v7  ;;  %v2149_v23 = vor.u32 %v2230_v19, %v2148_v18  ;;  %v459_v24 = vadd.f32 %v2664_v46, %v389_v15  ;;  %v323_v33 = vunpack.c.l.bf16 %v287_v31  ;;  %v2227_v58 = vld [vmem:[%s3371_s4 + $0xd4] sm:$0xf]  ;;  %v292_v15 = vld [vmem:[%s2651_s21 + $0x48] sm:$0xff] }
  0x34   : > { %1023 = vmatpush.bf16.msra.mxu3 %v1977_v43  ;;  %v519_v2 = vpack.c.bf16 %v457_v61, %v455_v60  ;;  %v520_v3 = vpack.c.bf16 %v458_v63, %v456_v62  ;;  %v461_v25 = vadd.f32 %v2664_v46, %v391_v20  ;;  %v460_v26 = vadd.f32 %v2666_v47, %v390_v21  ;;  %v2142_v60 = vld [vmem:[%s3371_s4 + $0xd8] sm:$0xf0]  ;;  %v2076_v61 = vld [vmem:[%s3371_s4 + $0x50] sm:$0xf]  ;;  %v2212_v62 = vld [vmem:[%s3371_s4 + $0x54] sm:$0xf0]  ;;  %p2300_p3 = pnand %p2299_p2, %p2295_p13 }
  0x35   : > { %v462_v27 = vadd.f32 %v2666_v47, %v392_v22  ;;  %v325_v35 = vunpack.c.l.bf16 %v288_v32  ;;  %v324_v36 = vunpack.c.h.bf16 %v287_v31  ;;  %v326_v37 = vunpack.c.h.bf16 %v288_v32  ;;  %v293_v31 = vld [vmem:[%s2651_s21 + $0x50] sm:$0xff]  ;;  %v294_v32 = vld [vmem:[%s2651_s21 + $0x58] sm:$0xff] }
  0x36   : > { %1399 = vmatpush.bf16.msrb.mxu0 %v2093_v54  ;;  %846 = vmatmul.bf16.vlgmr.msra.gmra.mxu1 %v520_v3  ;;  %v521_v29 = vpack.c.bf16 %v461_v25, %v459_v24  ;;  %v393_v38 = vmul.f32 %v2626_v28, %v323_v33  ;;  %v328_v54 = vunpack.c.h.bf16 %v289_v50  ;;  %v2081_v59 = vor.u32 %v2211_v56, %v2078_v57 }
  0x37   : > { %1577 = vmatpush.bf16.msrb.mxu2 %v2097_v52  ;;  %1488 = vmatpush.bf16.msrb.mxu1 %v2157_v55  ;;  %v522_v30 = vpack.c.bf16 %v462_v27, %v460_v26  ;;  %v395_v39 = vmul.f32 %v2626_v28, %v325_v35  ;;  %v394_v40 = vmul.f32 %v2640_v34, %v324_v36  ;;  %v327_v52 = vunpack.c.l.bf16 %v289_v50  ;;  %v2132_v50 = vld [vmem:[%s3371_s4 + $0xc0] sm:$0xf] }
  0x38   : > { %1666 = vmatpush.bf16.msrb.mxu3 %v2161_v53  ;;  %757 = vmatmul.bf16.vlgmr.msra.gmra.mxu0 %v519_v2  ;;  %v396_v41 = vmul.f32 %v2640_v34, %v326_v37  ;;  %v463_v42 = vadd.f32 %v2664_v46, %v393_v38  ;;  %v329_v53 = vunpack.c.l.bf16 %v290_v51  ;;  %v330_v55 = vunpack.c.h.bf16 %v290_v51  ;;  %v2209_v38 = vld [vmem:[%s3371_s4 + $0x44] sm:$0xf]  ;;  %v2226_v51 = vld [vmem:[%s3371_s4 + $0xc4] sm:$0xf0] }
  0x39   : > { %935 = vmatmul.bf16.vlgmr.msra.gmra.mxu2 %v519_v2  ;;  %1024 = vmatmul.bf16.vlgmr.msra.gmra.mxu3 %v520_v3  ;;  %v465_v43 = vadd.f32 %v2664_v46, %v395_v39  ;;  %v464_v44 = vadd.f32 %v2666_v47, %v394_v40  ;;  %v397_v63 = vmul.f32 %v2626_v28, %v327_v52  ;;  %v2140_v2 = vld [vmem:[%s3371_s4 + $0xd0] sm:$0xf]  ;;  %v2228_v3 = vld [vmem:[%s3371_s4 + $0xd4] sm:$0xf0]  ;;  %v332_v18 = vunpack.c.h.bf16 %v291_v14  ;;  %v2070_v39 = vld [vmem:[%s3371_s4 + $0x48] sm:$0xf0] }
  0x3a   : > { %1400 = vmatpush.bf16.msrb.mxu0 %v2085_v17  ;;  %v466_v45 = vadd.f32 %v2666_v47, %v396_v41  ;;  %v2145_v0 = vor.u32 %v2227_v58, %v2142_v60  ;;  %v2077_v1 = vor.u32 %v2212_v62, %v2076_v61  ;;  %v399_v4 = vmul.f32 %v2626_v28, %v329_v53  ;;  %v2225_v40 = vld [vmem:[%s3371_s4 + $0xc4] sm:$0xf] }
  0x3b   : > { %1578 = vmatpush.bf16.msrb.mxu2 %v2089_v11  ;;  %1489 = vmatpush.bf16.msrb.mxu1 %v2149_v23  ;;  %v523_v48 = vpack.c.bf16 %v465_v43, %v463_v42  ;;  %v398_v5 = vmul.f32 %v2640_v34, %v328_v54  ;;  %v400_v6 = vmul.f32 %v2640_v34, %v330_v55  ;;  %v333_v17 = vunpack.c.l.bf16 %v292_v15  ;;  %v2134_v42 = vld [vmem:[%s3371_s4 + $0xc8] sm:$0xf0]  ;;  %v2068_v43 = vld [vmem:[%s3371_s4 + $0x40] sm:$0xf] }
  0x3c   : > { %1667 = vmatpush.bf16.msrb.mxu3 %v2153_v16  ;;  %v524_v49 = vpack.c.bf16 %v466_v45, %v464_v44  ;;  %v2141_v7 = vor.u32 %v2228_v3, %v2140_v2  ;;  %v467_v8 = vadd.f32 %v2664_v46, %v397_v63  ;;  %v469_v9 = vadd.f32 %v2664_v46, %v399_v4  ;;  %v2210_v44 = vld [vmem:[%s3371_s4 + $0x44] sm:$0xf0]  ;;  %v295_v62 = vld [vmem:[%s2651_s21 + $0x60] sm:$0xff] }
  0x3d   : > { %v468_v10 = vadd.f32 %v2666_v47, %v398_v5  ;;  %v470_v11 = vadd.f32 %v2666_v47, %v400_v6  ;;  %v331_v16 = vunpack.c.l.bf16 %v291_v14  ;;  %v334_v19 = vunpack.c.h.bf16 %v292_v15  ;;  %v296_v63 = vld [vmem:[%s2651_s21 + $0x68] sm:$0xff]  ;;  %v297_v14 = vld [vmem:[%s2651_s21 + $0x70] sm:$0xff]  ;;  %v298_v15 = vld [vmem:[%s2651_s21 + $0x78] sm:$0xff] }
  0x3e   : > { %1401 = vmatpush.bf16.msrb.mxu0 %v2077_v1  ;;  %v525_v12 = vpack.c.bf16 %v469_v9, %v467_v8  ;;  %v403_v21 = vmul.f32 %v2626_v28, %v333_v17  ;;  %v402_v22 = vmul.f32 %v2640_v34, %v332_v18  ;;  %v335_v33 = vunpack.c.l.bf16 %v293_v31 }
  0x3f   : > { %1579 = vmatpush.bf16.msrb.mxu2 %v2081_v59  ;;  %1490 = vmatpush.bf16.msrb.mxu1 %v2141_v7  ;;  %v526_v13 = vpack.c.bf16 %v470_v11, %v468_v10  ;;  %v401_v20 = vmul.f32 %v2626_v28, %v331_v16  ;;  %v404_v23 = vmul.f32 %v2640_v34, %v334_v19  ;;  %v337_v35 = vunpack.c.l.bf16 %v294_v32 }
  0x40   : > { %1668 = vmatpush.bf16.msrb.mxu3 %v2145_v0  ;;  %v473_v25 = vadd.f32 %v2664_v46, %v403_v21  ;;  %v472_v26 = vadd.f32 %v2666_v47, %v402_v22  ;;  %v336_v36 = vunpack.c.h.bf16 %v293_v31  ;;  %v338_v37 = vunpack.c.h.bf16 %v294_v32  ;;  %v2062_v21 = vld [vmem:[%s3371_s4 + $0x38] sm:$0xf0]  ;;  %v2223_v22 = vld [vmem:[%s3371_s4 + $0xb4] sm:$0xf] }
  0x41   : > { %v471_v24 = vadd.f32 %v2664_v46, %v401_v20  ;;  %v474_v27 = vadd.f32 %v2666_v47, %v404_v23  ;;  %v2073_v41 = vor.u32 %v2209_v38, %v2070_v39  ;;  %v405_v45 = vmul.f32 %v2626_v28, %v335_v33  ;;  %v2207_v20 = vld [vmem:[%s3371_s4 + $0x34] sm:$0xf]  ;;  %v2060_v38 = vld [vmem:[%s3371_s4 + $0x30] sm:$0xf]  ;;  %v2208_v39 = vld [vmem:[%s3371_s4 + $0x34] sm:$0xf0] }
  0x42   : > { %v407_v52 = vmul.f32 %v2626_v28, %v337_v35  ;;  %v406_v53 = vmul.f32 %v2640_v34, %v336_v36  ;;  %v408_v54 = vmul.f32 %v2640_v34, %v338_v37  ;;  %v2133_v55 = vor.u32 %v2226_v51, %v2132_v50 }
  0x43   : > { %1580 = vmatpush.bf16.msrb.mxu2 %v2073_v41  ;;  %v475_v56 = vadd.f32 %v2664_v46, %v405_v45  ;;  %v339_v0 = vunpack.c.l.bf16 %v295_v62  ;;  %v341_v1 = vunpack.c.l.bf16 %v296_v63  ;;  %v340_v2 = vunpack.c.h.bf16 %v295_v62  ;;  %v299_v41 = vld [vmem:[%s2651_s21 + $0x80] sm:$0xff] }
  0x44   : > { %1491 = vmatpush.bf16.msrb.mxu1 %v2133_v55  ;;  %v477_v57 = vadd.f32 %v2664_v46, %v407_v52  ;;  %v476_v58 = vadd.f32 %v2666_v47, %v406_v53  ;;  %v478_v59 = vadd.f32 %v2666_v47, %v408_v54  ;;  %v342_v3 = vunpack.c.h.bf16 %v296_v63 }
  0x45   : > { %v409_v4 = vmul.f32 %v2626_v28, %v339_v0  ;;  %v411_v5 = vmul.f32 %v2626_v28, %v341_v1  ;;  %v410_v6 = vmul.f32 %v2640_v34, %v340_v2  ;;  %v343_v16 = vunpack.c.l.bf16 %v297_v14  ;;  %v301_v0 = vld [vmem:[%s2651_s21 + $0x90] sm:$0xff] }
  0x46   : > { %851 = vmatmul.bf16.gmra.mxu1 %v522_v30  ;;  %v529_v60 = vpack.c.bf16 %v477_v57, %v475_v56  ;;  %v530_v61 = vpack.c.bf16 %v478_v59, %v476_v58  ;;  %v412_v7 = vmul.f32 %v2640_v34, %v342_v3  ;;  %v345_v17 = vunpack.c.l.bf16 %v298_v15  ;;  %v583_v56 = vld [vmem:[%s3370_s3] sm:$0x3]  ;;  %v302_v3 = vld [vmem:[%s2651_s21 + $0x98] sm:$0xff] }
  0x47   : > { %v479_v8 = vadd.f32 %v2664_v46, %v409_v4  ;;  %v481_v9 = vadd.f32 %v2664_v46, %v411_v5  ;;  %v480_v10 = vadd.f32 %v2666_v47, %v410_v6  ;;  %v344_v18 = vunpack.c.h.bf16 %v297_v14 }
  0x48   : > { %762 = vmatmul.bf16.gmra.mxu0 %v521_v29  ;;  %v482_v11 = vadd.f32 %v2666_v47, %v412_v7  ;;  %v346_v19 = vunpack.c.h.bf16 %v298_v15  ;;  %v413_v23 = vmul.f32 %v2626_v28, %v343_v16  ;;  %v348_v50 = vunpack.c.h.bf16 %v299_v41  ;;  %v2221_v15 = vld [vmem:[%s3371_s4 + $0xa4] sm:$0xf]  ;;  %v2118_v16 = vld [vmem:[%s3371_s4 + $0xa8] sm:$0xf0] }
  0x49   : > { %940 = vmatmul.bf16.gmra.mxu2 %v521_v29  ;;  %1029 = vmatmul.bf16.gmra.mxu3 %v522_v30  ;;  %v527_v29 = vpack.c.bf16 %v473_v25, %v471_v24  ;;  %v528_v30 = vpack.c.bf16 %v474_v27, %v472_v26  ;;  %v2065_v24 = vor.u32 %v2207_v20, %v2062_v21  ;;  %v2126_v25 = vld [vmem:[%s3371_s4 + $0xb8] sm:$0xf0]  ;;  %v351_v5 = vunpack.c.l.bf16 %v301_v0 }
  0x4a   : > { %v415_v26 = vmul.f32 %v2626_v28, %v345_v17  ;;  %v414_v27 = vmul.f32 %v2640_v34, %v344_v18  ;;  %v483_v31 = vadd.f32 %v2664_v46, %v413_v23  ;;  %v418_v54 = vmul.f32 %v2640_v34, %v348_v50 }
  0x4b   : > { %1581 = vmatpush.bf16.msrb.mxu2 %v2065_v24  ;;  %v353_v7 = vunpack.c.l.bf16 %v302_v3 }
  0x4c   : > { %v485_v32 = vadd.f32 %v2664_v46, %v415_v26  ;;  %v484_v33 = vadd.f32 %v2666_v47, %v414_v27  ;;  %v488_v59 = vadd.f32 %v2666_v47, %v418_v54  ;;  %v304_v54 = vld [vmem:[%s2651_s21 + $0xa8] sm:$0xff] }
  0x4e   : > { %v533_v36 = vpack.c.bf16 %v485_v32, %v483_v31 }
  0x56   : > { %856 = vmatmul.bf16.gmra.mxu1 %v524_v49 }
  0x58   : > { %767 = vmatmul.bf16.gmra.mxu0 %v523_v48 }
  0x59   : > { %945 = vmatmul.bf16.gmra.mxu2 %v523_v48  ;;  %1034 = vmatmul.bf16.gmra.mxu3 %v524_v49  ;;  %v2137_v48 = vor.u32 %v2225_v40, %v2134_v42  ;;  %v2069_v49 = vor.u32 %v2210_v44, %v2068_v43  ;;  %v2124_v40 = vld [vmem:[%s3371_s4 + $0xb0] sm:$0xf]  ;;  %v300_v42 = vld [vmem:[%s2651_s21 + $0x88] sm:$0xff]  ;;  %v2061_v43 = vor.u32 %v2208_v39, %v2060_v38  ;;  %v2224_v44 = vld [vmem:[%s3371_s4 + $0xb4] sm:$0xf0] }
  0x5a   : > { %v2125_v45 = vor.u32 %v2224_v44, %v2124_v40  ;;  %v350_v51 = vunpack.c.h.bf16 %v300_v42  ;;  %v2206_v38 = vld [vmem:[%s3371_s4 + $0x24] sm:$0xf0]  ;;  %v2116_v40 = vld [vmem:[%s3371_s4 + $0xa0] sm:$0xf] }
  0x5b   : > { %1669 = vmatpush.bf16.msrb.mxu3 %v2137_v48  ;;  %1402 = vmatpush.bf16.msrb.mxu0 %v2069_v49  ;;  %v347_v48 = vunpack.c.l.bf16 %v299_v41  ;;  %v349_v49 = vunpack.c.l.bf16 %v300_v42  ;;  %v2222_v41 = vld [vmem:[%s3371_s4 + $0xa4] sm:$0xf0] }
  0x5c   : > { %1492 = vmatpush.bf16.msrb.mxu1 %v2125_v45  ;;  %v420_v55 = vmul.f32 %v2640_v34, %v350_v51  ;;  %v2117_v50 = vor.u32 %v2222_v41, %v2116_v40 }
  0x5d   : > { %v417_v52 = vmul.f32 %v2626_v28, %v347_v48  ;;  %v419_v53 = vmul.f32 %v2626_v28, %v349_v49  ;;  %v303_v49 = vld [vmem:[%s2651_s21 + $0xa0] sm:$0xff] }
  0x5f   : > { %1403 = vmatpush.bf16.msrb.mxu0 %v2061_v43  ;;  %v487_v57 = vadd.f32 %v2664_v46, %v417_v52  ;;  %v489_v58 = vadd.f32 %v2664_v46, %v419_v53 }
  0x60   : > { %1493 = vmatpush.bf16.msrb.mxu1 %v2117_v50  ;;  %v2110_v50 = vld [vmem:[%s3371_s4 + $0x98] sm:$0xf0] }
  0x61   : > { %v535_v62 = vpack.c.bf16 %v489_v58, %v487_v57  ;;  %v355_v57 = vunpack.c.l.bf16 %v303_v49 }
  0x66   : > { %861 = vmatmul.bf16.gmra.mxu1 %v526_v13 }
  0x68   : > { %772 = vmatmul.bf16.gmra.mxu0 %v525_v12 }
  0x69   : > { %950 = vmatmul.bf16.gmra.mxu2 %v525_v12  ;;  %1039 = vmatmul.bf16.gmra.mxu3 %v526_v13  ;;  %v531_v12 = vpack.c.bf16 %v481_v9, %v479_v8  ;;  %v532_v13 = vpack.c.bf16 %v482_v11, %v480_v10  ;;  %v352_v8 = vunpack.c.h.bf16 %v301_v0  ;;  %v354_v9 = vunpack.c.h.bf16 %v302_v3  ;;  %v2205_v11 = vld [vmem:[%s3371_s4 + $0x24] sm:$0xf] }
  0x6a   : > { %v2860_v10 = vperm.slane %v583_v56, 1 }
  0x6b   : > { %v422_v20 = vmul.f32 %v2640_v34, %v352_v8  ;;  %v424_v21 = vmul.f32 %v2640_v34, %v354_v9 }
  0x6d   : > { %v492_v32 = vadd.f32 %v2666_v47, %v422_v20 }
  0x76   : > { %866 = vmatmul.bf16.gmra.mxu1 %v528_v30 }
  0x78   : > { %777 = vmatmul.bf16.gmra.mxu0 %v527_v29 }
  0x79   : > { %955 = vmatmul.bf16.gmra.mxu2 %v527_v29  ;;  %1044 = vmatmul.bf16.gmra.mxu3 %v528_v30  ;;  %v416_v29 = vmul.f32 %v2640_v34, %v346_v19  ;;  %v2129_v30 = vor.u32 %v2223_v22, %v2126_v25  ;;  %v423_v19 = vmul.f32 %v2626_v28, %v353_v7 }
  0x7a   : > { %v2121_v22 = vor.u32 %v2221_v15, %v2118_v16 }
  0x7b   : > { %1670 = vmatpush.bf16.msrb.mxu3 %v2129_v30  ;;  %v486_v35 = vadd.f32 %v2666_v47, %v416_v29  ;;  %v493_v31 = vadd.f32 %v2664_v46, %v423_v19 }
  0x7d   : > { %v534_v37 = vpack.c.bf16 %v486_v35, %v484_v33  ;;  %v494_v33 = vadd.f32 %v2666_v47, %v424_v21 }
  0x7f   : > { %1671 = vmatpush.bf16.msrb.mxu3 %v2121_v22  ;;  %v538_v48 = vpack.c.bf16 %v494_v33, %v492_v32 }
  0x86   : > { %871 = vmatmul.bf16.gmra.mxu1 %v530_v61 }
  0x88   : > { %782 = vmatmul.bf16.gmra.mxu0 %v529_v60 }
  0x89   : > { %960 = vmatmul.bf16.gmra.mxu2 %v529_v60  ;;  %1049 = vmatmul.bf16.gmra.mxu3 %v530_v61  ;;  %v490_v60 = vadd.f32 %v2666_v47, %v420_v55  ;;  %v2855_v61 = vperm.slane %v583_v56, 0 }
  0x8b   : > { %v536_v63 = vpack.c.bf16 %v490_v60, %v488_v59  ;;  %v357_v59 = vunpack.c.l.bf16 %v304_v54  ;;  %v356_v60 = vunpack.c.h.bf16 %v303_v49  ;;  %v2219_v49 = vld [vmem:[%s3371_s4 + $0x94] sm:$0xf] }
  0x96   : > { %876 = vmatmul.bf16.gmra.mxu1 %v532_v13 }
  0x98   : > { %787 = vmatmul.bf16.gmra.mxu0 %v531_v12 }
  0x99   : > { %965 = vmatmul.bf16.gmra.mxu2 %v531_v12  ;;  %1054 = vmatmul.bf16.gmra.mxu3 %v532_v13  ;;  %v2054_v12 = vld [vmem:[%s3371_s4 + $0x28] sm:$0xf0]  ;;  %v421_v13 = vmul.f32 %v2626_v28, %v351_v5  ;;  %v427_v5 = vmul.f32 %v2626_v28, %v357_v59 }
  0x9a   : > { %v2057_v14 = vor.u32 %v2205_v11, %v2054_v12 }
  0x9b   : > { %v491_v29 = vadd.f32 %v2664_v46, %v421_v13  ;;  %v497_v16 = vadd.f32 %v2664_v46, %v427_v5 }
  0x9c   : > { %1582 = vmatpush.bf16.msrb.mxu2 %v2057_v14 }
  0x9d   : > { %v537_v45 = vpack.c.bf16 %v493_v31, %v491_v29  ;;  %v306_v31 = vld [vmem:[%s2651_s21 + $0xb8] sm:$0xff] }
  0xa6   : > { %881 = vmatmul.bf16.gmra.mxu1 %v534_v37 }
  0xa8   : > { %792 = vmatmul.bf16.gmra.mxu0 %v533_v36 }
  0xa9   : > { %970 = vmatmul.bf16.gmra.mxu2 %v533_v36  ;;  %1059 = vmatmul.bf16.gmra.mxu3 %v534_v37  ;;  %v2052_v37 = vld [vmem:[%s3371_s4 + $0x20] sm:$0xf] }
  0xaa   : > { %v2053_v39 = vor.u32 %v2206_v38, %v2052_v37  ;;  %v361_v37 = vunpack.c.l.bf16 %v306_v31 }
  0xac   : > { %1404 = vmatpush.bf16.msrb.mxu0 %v2053_v39  ;;  %v362_v39 = vunpack.c.h.bf16 %v306_v31 }
  0xb3   : > { %v847_v2 = vpop.f32.mrf.mxu1 }
  0xb5   : > { %v758_v1 = vpop.f32.mrf.mxu0 }
  0xb6   : > { %v759_v4 = vadd.f32 %v758_v1, %v2855_v61  ;;  %886 = vmatmul.bf16.gmra.mxu1 %v536_v63 }
  0xb8   : > { %v848_v6 = vadd.f32 %v847_v2, %v759_v4  ;;  %797 = vmatmul.bf16.gmra.mxu0 %v535_v62  ;;  %v425_v2 = vmul.f32 %v2626_v28, %v355_v57  ;;  %v2113_v57 = vor.u32 %v2219_v49, %v2110_v50 }
  0xb9   : > { %975 = vmatmul.bf16.gmra.mxu2 %v535_v62  ;;  %1064 = vmatmul.bf16.gmra.mxu3 %v536_v63  ;;  %v358_v62 = vunpack.c.h.bf16 %v304_v54  ;;  %v431_v54 = vmul.f32 %v2626_v28, %v361_v37 }
  0xba   : > { %v1105_v35 = vmax.f32 %v848_v6, 0.0  ;;  %v426_v6 = vmul.f32 %v2640_v34, %v356_v60  ;;  %v495_v14 = vadd.f32 %v2664_v46, %v425_v2  ;;  %1672 = vmatpush.bf16.msrb.mxu3 %v2113_v57 }
  0xbb   : > { %v849_v25 = vpop.f32.mrf.mxu1  ;;  %v428_v7 = vmul.f32 %v2640_v34, %v358_v62 }
  0xbc   : > { %v936_v17 = vpop.f32.mrf.mxu2  ;;  %v1025_v18 = vpop.f32.mrf.mxu3 }
  0xbd   : > { %v937_v23 = vadd.f32 %v936_v17, %v2860_v10  ;;  %v760_v24 = vpop.f32.mrf.mxu0  ;;  %v496_v17 = vadd.f32 %v2666_v47, %v426_v6 }
  0xbe   : > { %v761_v26 = vadd.f32 %v760_v24, %v2855_v61 }
  0xbf   : > { %v1026_v27 = vadd.f32 %v1025_v18, %v937_v23  ;;  %v498_v18 = vadd.f32 %v2666_v47, %v428_v7  ;;  %v539_v23 = vpack.c.bf16 %v497_v16, %v495_v14 }
  0xc0   : > { %v850_v30 = vadd.f32 %v849_v25, %v761_v26  ;;  %v305_v25 = vld [vmem:[%s2651_s21 + $0xb0] sm:$0xff] }
  0xc1   : > { %v1106_v63 = vmax.f32 %v1026_v27, 0.0  ;;  %v540_v24 = vpack.c.bf16 %v498_v18, %v496_v17  ;;  %v360_v38 = vunpack.c.h.bf16 %v305_v25  ;;  %v307_v18 = vld [vmem:[%s2651_s21 + $0xc0] sm:$0xff] }
  0xc2   : > { %v1107_v36 = vmax.f32 %v850_v30, 0.0 }
  0xc3   : > { %v852_v53 = vpop.f32.mrf.mxu1 }
  0xc4   : > { %v2896_v42 = vpack.c.bf16 %v1107_v36, %v1105_v35  ;;  %v938_v43 = vpop.f32.mrf.mxu2  ;;  %v1027_v44 = vpop.f32.mrf.mxu3  ;;  %v359_v35 = vunpack.c.l.bf16 %v305_v25 }
  0xc5   : > { %v939_v51 = vadd.f32 %v938_v43, %v2860_v10  ;;  %v763_v52 = vpop.f32.mrf.mxu0  ;;  %v2203_v43 = vld [vmem:[%s3371_s4 + $0x14] sm:$0xf] }
  0xc6   : > { %v764_v55 = vadd.f32 %v763_v52, %v2855_v61  ;;  %891 = vmatmul.bf16.gmra.mxu1 %v538_v48 }
  0xc7   : > { %v1028_v56 = vadd.f32 %v1027_v44, %v939_v51  ;;  %v2046_v44 = vld [vmem:[%s3371_s4 + $0x18] sm:$0xf0] }
  0xc8   : > { %v853_v58 = vadd.f32 %v852_v53, %v764_v55  ;;  %802 = vmatmul.bf16.gmra.mxu0 %v537_v45  ;;  %v430_v55 = vmul.f32 %v2640_v34, %v360_v38 }
  0xc9   : > { %v1108_v0 = vmax.f32 %v1028_v56, 0.0  ;;  %980 = vmatmul.bf16.gmra.mxu2 %v537_v45  ;;  %1069 = vmatmul.bf16.gmra.mxu3 %v538_v48  ;;  %v429_v45 = vmul.f32 %v2626_v28, %v359_v35  ;;  %v2049_v48 = vor.u32 %v2203_v43, %v2046_v44  ;;  %v432_v56 = vmul.f32 %v2640_v34, %v362_v39 }
  0xca   : > { %v1109_v19 = vmax.f32 %v853_v58, 0.0 }
  0xcb   : > { %v2902_v1 = vpack.c.bf16 %v1108_v0, %v1106_v63  ;;  %v854_v11 = vpop.f32.mrf.mxu1  ;;  %1583 = vmatpush.bf16.msrb.mxu2 %v2049_v48  ;;  %v499_v0 = vadd.f32 %v2664_v46, %v429_v45  ;;  %v502_v5 = vadd.f32 %v2666_v47, %v432_v56 }
  0xcc   : > { %v941_v3 = vpop.f32.mrf.mxu2  ;;  %v1030_v4 = vpop.f32.mrf.mxu3 }
  0xcd   : > { %v942_v8 = vadd.f32 %v941_v3, %v2860_v10  ;;  %v765_v9 = vpop.f32.mrf.mxu0  ;;  %v501_v3 = vadd.f32 %v2664_v46, %v431_v54 }
  0xce   : > { %v766_v12 = vadd.f32 %v765_v9, %v2855_v61  ;;  %v2204_v9 = vld [vmem:[%s3371_s4 + $0x14] sm:$0xf0] }
  0xcf   : > { %v1031_v13 = vadd.f32 %v1030_v4, %v942_v8  ;;  %v500_v4 = vadd.f32 %v2666_v47, %v430_v55  ;;  %v2044_v8 = vld [vmem:[%s3371_s4 + $0x10] sm:$0xf]  ;;  %v541_v16 = vpack.c.bf16 %v501_v3, %v499_v0 }
  0xd0   : > { %v855_v15 = vadd.f32 %v854_v11, %v766_v12  ;;  %v2045_v11 = vor.u32 %v2204_v9, %v2044_v8  ;;  %v2108_v12 = vld [vmem:[%s3371_s4 + $0x90] sm:$0xf] }
  0xd1   : > { %v1110_v40 = vmax.f32 %v1031_v13, 0.0  ;;  %v2220_v13 = vld [vmem:[%s3371_s4 + $0x94] sm:$0xf0]  ;;  %v542_v17 = vpack.c.bf16 %v502_v5, %v500_v4 }
  0xd2   : > { %v1111_v20 = vmax.f32 %v855_v15, 0.0  ;;  %1405 = vmatpush.bf16.msrb.mxu0 %v2045_v11 }
  0xd3   : > { %v857_v30 = vpop.f32.mrf.mxu1 }
  0xd4   : > { %v943_v21 = vpop.f32.mrf.mxu2  ;;  %v1032_v22 = vpop.f32.mrf.mxu3  ;;  %v2915_v26 = vpack.c.bf16 %v1111_v20, %v1109_v19  ;;  %v2109_v19 = vor.u32 %v2220_v13, %v2108_v12 }
  0xd5   : > { %v944_v27 = vadd.f32 %v943_v21, %v2860_v10  ;;  %v768_v29 = vpop.f32.mrf.mxu0 }
  0xd6   : > { %v769_v32 = vadd.f32 %v768_v29, %v2855_v61  ;;  %896 = vmatmul.bf16.gmra.mxu1 %v540_v24  ;;  %v363_v29 = vunpack.c.l.bf16 %v307_v18 }
  0xd7   : > { %v1033_v33 = vadd.f32 %v1032_v22, %v944_v27  ;;  %1494 = vmatpush.bf16.msrb.mxu1 %v2109_v19  ;;  %v2038_v19 = vld [vmem:[%s3371_s4 + $0x8] sm:$0xf0] }
  0xd8   : > { %v858_v36 = vadd.f32 %v857_v30, %v769_v32  ;;  %807 = vmatmul.bf16.gmra.mxu0 %v539_v23  ;;  %v364_v32 = vunpack.c.h.bf16 %v307_v18  ;;  %v433_v37 = vmul.f32 %v2626_v28, %v363_v29  ;;  %v2201_v18 = vld [vmem:[%s3371_s4 + $0x4] sm:$0xf] }
  0xd9   : > { %v1112_v41 = vmax.f32 %v1033_v33, 0.0  ;;  %985 = vmatmul.bf16.gmra.mxu2 %v539_v23  ;;  %1074 = vmatmul.bf16.gmra.mxu3 %v540_v24  ;;  %v308_v24 = vld [vmem:[%s2651_s21 + $0xc8] sm:$0xff] }
  0xda   : > { %v1113_v6 = vmax.f32 %v858_v36, 0.0  ;;  %v365_v31 = vunpack.c.l.bf16 %v308_v24  ;;  %v366_v33 = vunpack.c.h.bf16 %v308_v24  ;;  %v434_v43 = vmul.f32 %v2640_v34, %v364_v32  ;;  %v2102_v24 = vld [vmem:[%s3371_s4 + $0x88] sm:$0xf0] }
  0xdb   : > { %v2933_v51 = vpack.c.bf16 %v1112_v41, %v1110_v40  ;;  %v859_v60 = vpop.f32.mrf.mxu1 }
  0xdc   : > { %v946_v52 = vpop.f32.mrf.mxu2  ;;  %v1035_v53 = vpop.f32.mrf.mxu3  ;;  %v435_v41 = vmul.f32 %v2626_v28, %v365_v31  ;;  %v436_v44 = vmul.f32 %v2640_v34, %v366_v33  ;;  %v504_v56 = vadd.f32 %v2666_v47, %v434_v43 }
  0xdd   : > { %v947_v58 = vadd.f32 %v946_v52, %v2860_v10  ;;  %v770_v59 = vpop.f32.mrf.mxu0 }
  0xde   : > { %v771_v62 = vadd.f32 %v770_v59, %v2855_v61  ;;  %v505_v55 = vadd.f32 %v2664_v46, %v435_v41  ;;  %v506_v57 = vadd.f32 %v2666_v47, %v436_v44 }
  0xdf   : > { %v1036_v63 = vadd.f32 %v1035_v53, %v947_v58  ;;  %v503_v53 = vadd.f32 %v2664_v46, %v433_v37 }
  0xe0   : > { %v860_v2 = vadd.f32 %v859_v60, %v771_v62  ;;  %v544_v0 = vpack.c.bf16 %v506_v57, %v504_v56  ;;  %v2218_v56 = vld [vmem:[%s3371_s4 + $0x84] sm:$0xf0] }
  0xe1   : > { %v1114_v35 = vmax.f32 %v1036_v63, 0.0  ;;  %v543_v63 = vpack.c.bf16 %v505_v55, %v503_v53  ;;  %v2202_v53 = vld [vmem:[%s3371_s4 + $0x4] sm:$0xf0]  ;;  %v2100_v55 = vld [vmem:[%s3371_s4 + $0x80] sm:$0xf] }
  0xe2   : > { %v1115_v7 = vmax.f32 %v860_v2, 0.0  ;;  %v309_v2 = vld [vmem:[%s2651_s21 + $0xd0] sm:$0xff] }
  0xe3   : > { %v862_v23 = vpop.f32.mrf.mxu1  ;;  %v367_v11 = vunpack.c.l.bf16 %v309_v2 }
  0xe4   : > { %v948_v14 = vpop.f32.mrf.mxu2  ;;  %v1037_v15 = vpop.f32.mrf.mxu3  ;;  %v2957_v20 = vpack.c.bf16 %v1115_v7, %v1113_v6  ;;  %v310_v7 = vld [vmem:[%s2651_s21 + $0xd8] sm:$0xff] }
  0xe5   : > { %v949_v21 = vadd.f32 %v948_v14, %v2860_v10  ;;  %v773_v22 = vpop.f32.mrf.mxu0  ;;  %v369_v13 = vunpack.c.l.bf16 %v310_v7  ;;  %v368_v14 = vunpack.c.h.bf16 %v309_v2 }
  0xe6   : > { %v774_v25 = vadd.f32 %v773_v22, %v2855_v61  ;;  %901 = vmatmul.bf16.gmra.mxu1 %v542_v17  ;;  %v2041_v22 = vor.u32 %v2201_v18, %v2038_v19 }
  0xe7   : > { %v1038_v27 = vadd.f32 %v1037_v15, %v949_v21  ;;  %v370_v15 = vunpack.c.h.bf16 %v310_v7  ;;  %v437_v21 = vmul.f32 %v2626_v28, %v367_v11  ;;  %v438_v31 = vmul.f32 %v2640_v34, %v368_v14 }
  0xe8   : > { %v863_v30 = vadd.f32 %v862_v23, %v774_v25  ;;  %812 = vmatmul.bf16.gmra.mxu0 %v541_v16  ;;  %v2217_v23 = vld [vmem:[%s3371_s4 + $0x84] sm:$0xf]  ;;  %1584 = vmatpush.bf16.msrb.mxu2 %v2041_v22 }
  0xe9   : > { %v1116_v36 = vmax.f32 %v1038_v27, 0.0  ;;  %990 = vmatmul.bf16.gmra.mxu2 %v541_v16  ;;  %1079 = vmatmul.bf16.gmra.mxu3 %v542_v17  ;;  %v440_v32 = vmul.f32 %v2640_v34, %v370_v15  ;;  %v2105_v33 = vor.u32 %v2217_v23, %v2102_v24  ;;  %v507_v41 = vadd.f32 %v2664_v46, %v437_v21 }
  0xea   : > { %v1117_v58 = vmax.f32 %v863_v30, 0.0  ;;  %v439_v30 = vmul.f32 %v2626_v28, %v369_v13 }
  0xeb   : > { %v2963_v38 = vpack.c.bf16 %v1116_v36, %v1114_v35  ;;  %v864_v49 = vpop.f32.mrf.mxu1  ;;  %1673 = vmatpush.bf16.msrb.mxu3 %v2105_v33 }
  0xec   : > { %v951_v39 = vpop.f32.mrf.mxu2  ;;  %v1040_v40 = vpop.f32.mrf.mxu3  ;;  %v509_v44 = vadd.f32 %v2664_v46, %v439_v30 }
  0xed   : > { %v952_v45 = vadd.f32 %v951_v39, %v2860_v10  ;;  %v775_v48 = vpop.f32.mrf.mxu0 }
  0xee   : > { %v776_v50 = vadd.f32 %v775_v48, %v2855_v61  ;;  %v510_v48 = vadd.f32 %v2666_v47, %v440_v32 }
  0xef   : > { %v1041_v52 = vadd.f32 %v1040_v40, %v952_v45  ;;  %v508_v45 = vadd.f32 %v2666_v47, %v438_v31 }
  0xf0   : > { %v865_v54 = vadd.f32 %v864_v49, %v776_v50 }
  0xf1   : > { %v1118_v16 = vmax.f32 %v1041_v52, 0.0  ;;  %v2036_v52 = vld [vmem:[%s3371_s4] sm:$0xf] }
  0xf2   : > { %v1119_v59 = vmax.f32 %v865_v54, 0.0  ;;  %v2037_v54 = vor.u32 %v2202_v53, %v2036_v52 }
  0xf3   : > { %v867_v6 = vpop.f32.mrf.mxu1 }
  0xf4   : > { %v953_v60 = vpop.f32.mrf.mxu2  ;;  %v1042_v62 = vpop.f32.mrf.mxu3  ;;  %v2975_v3 = vpack.c.bf16 %v1119_v59, %v1117_v58  ;;  %v545_v59 = vpack.c.bf16 %v509_v44, %v507_v41  ;;  %1406 = vmatpush.bf16.msrb.mxu0 %v2037_v54 }
  0xf5   : > { %v954_v4 = vadd.f32 %v953_v60, %v2860_v10  ;;  %v778_v5 = vpop.f32.mrf.mxu0  ;;  %v546_v60 = vpack.c.bf16 %v510_v48, %v508_v45 }
  0xf6   : > { %v779_v8 = vadd.f32 %v778_v5, %v2855_v61  ;;  %906 = vmatmul.bf16.gmra.mxu1 %v544_v0 }
  0xf7   : > { %v1043_v9 = vadd.f32 %v1042_v62, %v954_v4  ;;  %v311_v62 = vld [vmem:[%s2651_s21 + $0xe0] sm:$0xff] }
  0xf8   : > { %v868_v12 = vadd.f32 %v867_v6, %v779_v8  ;;  %817 = vmatmul.bf16.gmra.mxu0 %v543_v63  ;;  %v312_v6 = vld [vmem:[%s2651_s21 + $0xe8] sm:$0xff]  ;;  %v372_v13 = vunpack.c.h.bf16 %v311_v62 }
  0xf9   : > { %v1120_v17 = vmax.f32 %v1043_v9, 0.0  ;;  %995 = vmatmul.bf16.gmra.mxu2 %v543_v63  ;;  %1084 = vmatmul.bf16.gmra.mxu3 %v544_v0  ;;  %v2101_v63 = vor.u32 %v2218_v56, %v2100_v55  ;;  %v371_v9 = vunpack.c.l.bf16 %v311_v62  ;;  %v374_v14 = vunpack.c.h.bf16 %v312_v6  ;;  %v314_v55 = vld [vmem:[%s2651_s21 + $0xf8] sm:$0xff] }
  0xfa   : > { %v1121_v49 = vmax.f32 %v868_v12, 0.0  ;;  %v373_v12 = vunpack.c.l.bf16 %v312_v6  ;;  %v442_v23 = vmul.f32 %v2640_v34, %v372_v13 }
  0xfb   : > { %v2993_v25 = vpack.c.bf16 %v1120_v17, %v1118_v16  ;;  %v869_v37 = vpop.f32.mrf.mxu1  ;;  %1495 = vmatpush.bf16.msrb.mxu1 %v2101_v63  ;;  %v441_v17 = vmul.f32 %v2626_v28, %v371_v9  ;;  %v444_v24 = vmul.f32 %v2640_v34, %v374_v14  ;;  %v378_v63 = vunpack.c.h.bf16 %v314_v55 }
  0xfc   : > { %v956_v27 = vpop.f32.mrf.mxu2  ;;  %v1045_v29 = vpop.f32.mrf.mxu3  ;;  %v443_v22 = vmul.f32 %v2626_v28, %v373_v12 }
  0xfd   : > { %v957_v35 = vadd.f32 %v956_v27, %v2860_v10  ;;  %v780_v36 = vpop.f32.mrf.mxu0  ;;  %v511_v33 = vadd.f32 %v2664_v46, %v441_v17  ;;  %v448_v12 = vmul.f32 %v2640_v34, %v378_v63 }
  0xfe   : > { %v781_v39 = vadd.f32 %v780_v36, %v2855_v61  ;;  %v513_v36 = vadd.f32 %v2664_v46, %v443_v22 }
  0xff   : > { %v1046_v40 = vadd.f32 %v1045_v29, %v957_v35 }
 0x100   : > { %v870_v43 = vadd.f32 %v869_v37, %v781_v39  ;;  %v512_v37 = vadd.f32 %v2666_v47, %v442_v23  ;;  %v514_v39 = vadd.f32 %v2666_v47, %v444_v24  ;;  %v547_v45 = vpack.c.bf16 %v513_v36, %v511_v33 }
 0x101   : > { %v1122_v15 = vmax.f32 %v1046_v40, 0.0 }
 0x102   : > { %v1123_v50 = vmax.f32 %v870_v43, 0.0  ;;  %v548_v48 = vpack.c.bf16 %v514_v39, %v512_v37 }
 0x103   : > { %v872_v5 = vpop.f32.mrf.mxu1 }
 0x104   : > { %v958_v57 = vpop.f32.mrf.mxu2  ;;  %v1047_v58 = vpop.f32.mrf.mxu3  ;;  %v3017_v0 = vpack.c.bf16 %v1123_v50, %v1121_v49  ;;  %v313_v49 = vld [vmem:[%s2651_s21 + $0xf0] sm:$0xff] }
 0x105   : > { %v959_v2 = vadd.f32 %v958_v57, %v2860_v10  ;;  %v783_v4 = vpop.f32.mrf.mxu0  ;;  %v376_v62 = vunpack.c.h.bf16 %v313_v49 }
 0x106   : > { %v784_v7 = vadd.f32 %v783_v4, %v2855_v61  ;;  %911 = vmatmul.bf16.gmra.mxu1 %v546_v60 }
 0x107   : > { %v1048_v8 = vadd.f32 %v1047_v58, %v959_v2  ;;  %v375_v58 = vunpack.c.l.bf16 %v313_v49 }
 0x108   : > { %v873_v11 = vadd.f32 %v872_v5, %v784_v7  ;;  %822 = vmatmul.bf16.gmra.mxu0 %v545_v59 }
 0x109   : > { %v1124_v16 = vmax.f32 %v1048_v8, 0.0  ;;  %1000 = vmatmul.bf16.gmra.mxu2 %v545_v59  ;;  %1089 = vmatmul.bf16.gmra.mxu3 %v546_v60  ;;  %v377_v60 = vunpack.c.l.bf16 %v314_v55  ;;  %v445_v5 = vmul.f32 %v2626_v28, %v375_v58 }
 0x10a   : > { %v1125_v40 = vmax.f32 %v873_v11, 0.0  ;;  %v446_v11 = vmul.f32 %v2640_v34, %v376_v62 }
 0x10b   : > { %v3023_v18 = vpack.c.bf16 %v1124_v16, %v1122_v15  ;;  %v874_v30 = vpop.f32.mrf.mxu1  ;;  %v447_v9 = vmul.f32 %v2626_v28, %v377_v60  ;;  %v518_v28 = vadd.f32 %v2666_v47, %v448_v12 }
 0x10c   : > { %v961_v19 = vpop.f32.mrf.mxu2  ;;  %v1050_v21 = vpop.f32.mrf.mxu3  ;;  %v516_v23 = vadd.f32 %v2666_v47, %v446_v11 }
 0x10d   : > { %v962_v27 = vadd.f32 %v961_v19, %v2860_v10  ;;  %v785_v29 = vpop.f32.mrf.mxu0  ;;  %v515_v19 = vadd.f32 %v2664_v46, %v445_v5  ;;  %v517_v22 = vadd.f32 %v2664_v46, %v447_v9 }
 0x10e   : > { %v786_v31 = vadd.f32 %v785_v29, %v2855_v61 }
 0x10f   : > { %v1051_v32 = vadd.f32 %v1050_v21, %v962_v27 }
 0x110   : > { %v875_v35 = vadd.f32 %v874_v30, %v786_v31  ;;  %v549_v30 = vpack.c.bf16 %v517_v22, %v515_v19  ;;  %v550_v31 = vpack.c.bf16 %v518_v28, %v516_v23 }
 0x111   : > { %v1126_v2 = vmax.f32 %v1051_v32, 0.0 }
 0x112   : > { %v1127_v41 = vmax.f32 %v875_v35, 0.0 }
 0x113   : > { %v877_v54 = vpop.f32.mrf.mxu1 }
 0x114   : > { %v963_v43 = vpop.f32.mrf.mxu2  ;;  %v1052_v44 = vpop.f32.mrf.mxu3  ;;  %v3035_v50 = vpack.c.bf16 %v1127_v41, %v1125_v40 }
 0x115   : > { %v964_v52 = vadd.f32 %v963_v43, %v2860_v10  ;;  %v788_v53 = vpop.f32.mrf.mxu0 }
 0x116   : > { %v789_v56 = vadd.f32 %v788_v53, %v2855_v61  ;;  %916 = vmatmul.bf16.gmra.mxu1 %v548_v48 }
 0x117   : > { %v1053_v57 = vadd.f32 %v1052_v44, %v964_v52 }
 0x118   : > { %v878_v59 = vadd.f32 %v877_v54, %v789_v56  ;;  %827 = vmatmul.bf16.gmra.mxu0 %v547_v45 }
 0x119   : > { %v1128_v4 = vmax.f32 %v1053_v57, 0.0  ;;  %1005 = vmatmul.bf16.gmra.mxu2 %v547_v45  ;;  %1094 = vmatmul.bf16.gmra.mxu3 %v548_v48 }
 0x11a   : > { %v1129_v24 = vmax.f32 %v878_v59, 0.0 }
 0x11b   : > { %v3041_v6 = vpack.c.bf16 %v1128_v4, %v1126_v2  ;;  %v879_v15 = vpop.f32.mrf.mxu1 }
 0x11c   : > { %v966_v7 = vpop.f32.mrf.mxu2  ;;  %v1055_v8 = vpop.f32.mrf.mxu3 }
 0x11d   : > { %v967_v13 = vadd.f32 %v966_v7, %v2860_v10  ;;  %v790_v14 = vpop.f32.mrf.mxu0 }
 0x11e   : > { %v791_v16 = vadd.f32 %v790_v14, %v2855_v61 }
 0x11f   : > { %v1056_v17 = vadd.f32 %v1055_v8, %v967_v13 }
 0x120   : > { %v880_v21 = vadd.f32 %v879_v15, %v791_v16 }
 0x121   : > { %v1130_v40 = vmax.f32 %v1056_v17, 0.0 }
 0x122   : > { %v1131_v27 = vmax.f32 %v880_v21, 0.0 }
 0x123   : > { %v882_v36 = vpop.f32.mrf.mxu1 }
 0x124   : > { %v968_v29 = vpop.f32.mrf.mxu2  ;;  %v1057_v34 = vpop.f32.mrf.mxu3  ;;  %v3052_v32 = vpack.c.bf16 %v1131_v27, %v1129_v24 }
 0x125   : > { %v969_v33 = vadd.f32 %v968_v29, %v2860_v10  ;;  %v793_v35 = vpop.f32.mrf.mxu0 }
 0x126   : > { %v794_v37 = vadd.f32 %v793_v35, %v2855_v61  ;;  %921 = vmatmul.bf16.gmra.mxu1 %v550_v31 }
 0x127   : > { %v1058_v39 = vadd.f32 %v1057_v34, %v969_v33 }
 0x128   : > { %v883_v46 = vadd.f32 %v882_v36, %v794_v37  ;;  %832 = vmatmul.bf16.gmra.mxu0 %v549_v30 }
 0x129   : > { %v1132_v47 = vmax.f32 %v1058_v39, 0.0  ;;  %1010 = vmatmul.bf16.gmra.mxu2 %v549_v30  ;;  %1099 = vmatmul.bf16.gmra.mxu3 %v550_v31 }
 0x12a   : > { %v1133_v55 = vmax.f32 %v883_v46, 0.0 }
 0x12b   : > { %v3056_v41 = vpack.c.bf16 %v1132_v47, %v1130_v40  ;;  %v884_v49 = vpop.f32.mrf.mxu1 }
 0x12c   : > { %v971_v43 = vpop.f32.mrf.mxu2  ;;  %v1060_v44 = vpop.f32.mrf.mxu3 }
 0x12d   : > { %v972_v45 = vadd.f32 %v971_v43, %v2860_v10  ;;  %v795_v48 = vpop.f32.mrf.mxu0 }
 0x12e   : > { %v796_v52 = vadd.f32 %v795_v48, %v2855_v61 }
 0x12f   : > { %v1061_v53 = vadd.f32 %v1060_v44, %v972_v45 }
 0x130   : > { %v885_v54 = vadd.f32 %v884_v49, %v796_v52 }
 0x131   : > { %v1134_v7 = vmax.f32 %v1061_v53, 0.0 }
 0x132   : > { %v1135_v56 = vmax.f32 %v885_v54, 0.0 }
 0x133   : > { %v887_v63 = vpop.f32.mrf.mxu1 }
 0x134   : > { %v973_v57 = vpop.f32.mrf.mxu2  ;;  %v1062_v58 = vpop.f32.mrf.mxu3  ;;  %v3060_v59 = vpack.c.bf16 %v1135_v56, %v1133_v55 }
 0x135   : > { %v974_v60 = vadd.f32 %v973_v57, %v2860_v10  ;;  %v798_v62 = vpop.f32.mrf.mxu0 }
 0x136   : > { %v799_v2 = vadd.f32 %v798_v62, %v2855_v61  ;;  %1496 = vmatmul.bf16.vlgmr.msrb.gmra.mxu1 %v2902_v1 }
 0x137   : > { %v1063_v4 = vadd.f32 %v1062_v58, %v974_v60 }
 0x138   : > { %v888_v5 = vadd.f32 %v887_v63, %v799_v2  ;;  %1407 = vmatmul.bf16.vlgmr.msrb.gmra.mxu0 %v2896_v42 }
 0x139   : > { %v1136_v8 = vmax.f32 %v1063_v4, 0.0  ;;  %1585 = vmatmul.bf16.vlgmr.msrb.gmra.mxu2 %v2896_v42  ;;  %1674 = vmatmul.bf16.vlgmr.msrb.gmra.mxu3 %v2902_v1 }
 0x13a   : > { %v1137_v21 = vmax.f32 %v888_v5, 0.0 }
 0x13b   : > { %v3068_v9 = vpack.c.bf16 %v1136_v8, %v1134_v7  ;;  %v889_v15 = vpop.f32.mrf.mxu1 }
 0x13c   : > { %v976_v11 = vpop.f32.mrf.mxu2  ;;  %v1065_v12 = vpop.f32.mrf.mxu3 }
 0x13d   : > { %v977_v13 = vadd.f32 %v976_v11, %v2860_v10  ;;  %v800_v14 = vpop.f32.mrf.mxu0 }
 0x13e   : > { %v801_v16 = vadd.f32 %v800_v14, %v2855_v61 }
 0x13f   : > { %v1066_v17 = vadd.f32 %v1065_v12, %v977_v13 }
 0x140   : > { %v890_v19 = vadd.f32 %v889_v15, %v801_v16 }
 0x141   : > { %v1138_v31 = vmax.f32 %v1066_v17, 0.0 }
 0x142   : > { %v1139_v22 = vmax.f32 %v890_v19, 0.0 }
 0x143   : > { %v892_v27 = vpop.f32.mrf.mxu1 }
 0x144   : > { %v978_v23 = vpop.f32.mrf.mxu2  ;;  %v1067_v28 = vpop.f32.mrf.mxu3  ;;  %v3072_v24 = vpack.c.bf16 %v1139_v22, %v1137_v21 }
 0x145   : > { %v979_v42 = vadd.f32 %v978_v23, %v2860_v10  ;;  %v803_v1 = vpop.f32.mrf.mxu0 }
 0x146   : > { %v804_v29 = vadd.f32 %v803_v1, %v2855_v61  ;;  %1501 = vmatmul.bf16.gmra.mxu1 %v2933_v51 }
 0x147   : > { %v1068_v34 = vadd.f32 %v1067_v28, %v979_v42 }
 0x148   : > { %v893_v30 = vadd.f32 %v892_v27, %v804_v29  ;;  %1412 = vmatmul.bf16.gmra.mxu0 %v2915_v26 }
 0x149   : > { %v1140_v33 = vmax.f32 %v1068_v34, 0.0  ;;  %1590 = vmatmul.bf16.gmra.mxu2 %v2915_v26  ;;  %1679 = vmatmul.bf16.gmra.mxu3 %v2933_v51 }
 0x14a   : > { %v1141_v45 = vmax.f32 %v893_v30, 0.0 }
 0x14b   : > { %v3080_v35 = vpack.c.bf16 %v1140_v33, %v1138_v31  ;;  %v894_v40 = vpop.f32.mrf.mxu1 }
 0x14c   : > { %v981_v36 = vpop.f32.mrf.mxu2  ;;  %v1070_v37 = vpop.f32.mrf.mxu3 }
 0x14d   : > { %v982_v39 = vadd.f32 %v981_v36, %v2860_v10  ;;  %v805_v46 = vpop.f32.mrf.mxu0 }
 0x14e   : > { %v806_v47 = vadd.f32 %v805_v46, %v2855_v61 }
 0x14f   : > { %v1071_v43 = vadd.f32 %v1070_v37, %v982_v39 }
 0x150   : > { %v895_v44 = vadd.f32 %v894_v40, %v806_v47 }
 0x151   : > { %v1142_v58 = vmax.f32 %v1071_v43, 0.0 }
 0x152   : > { %v1143_v48 = vmax.f32 %v895_v44, 0.0 }
 0x153   : > { %v897_v54 = vpop.f32.mrf.mxu1 }
 0x154   : > { %v983_v49 = vpop.f32.mrf.mxu2  ;;  %v1072_v52 = vpop.f32.mrf.mxu3  ;;  %v3084_v53 = vpack.c.bf16 %v1143_v48, %v1141_v45 }
 0x155   : > { %v984_v26 = vadd.f32 %v983_v49, %v2860_v10  ;;  %v808_v51 = vpop.f32.mrf.mxu0 }
 0x156   : > { %v809_v55 = vadd.f32 %v808_v51, %v2855_v61  ;;  %1506 = vmatmul.bf16.gmra.mxu1 %v2963_v38 }
 0x157   : > { %v1073_v56 = vadd.f32 %v1072_v52, %v984_v26 }
 0x158   : > { %v898_v57 = vadd.f32 %v897_v54, %v809_v55  ;;  %1417 = vmatmul.bf16.gmra.mxu0 %v2957_v20 }
 0x159   : > { %v1144_v60 = vmax.f32 %v1073_v56, 0.0  ;;  %1595 = vmatmul.bf16.gmra.mxu2 %v2957_v20  ;;  %1684 = vmatmul.bf16.gmra.mxu3 %v2963_v38 }
 0x15a   : > { %v1145_v13 = vmax.f32 %v898_v57, 0.0 }
 0x15b   : > { %v3092_v62 = vpack.c.bf16 %v1144_v60, %v1142_v58  ;;  %v899_v7 = vpop.f32.mrf.mxu1 }
 0x15c   : > { %v986_v63 = vpop.f32.mrf.mxu2  ;;  %v1075_v2 = vpop.f32.mrf.mxu3 }
 0x15d   : > { %v987_v4 = vadd.f32 %v986_v63, %v2860_v10  ;;  %v810_v5 = vpop.f32.mrf.mxu0 }
 0x15e   : > { %v811_v8 = vadd.f32 %v810_v5, %v2855_v61 }
 0x15f   : > { %v1076_v11 = vadd.f32 %v1075_v2, %v987_v4 }
 0x160   : > { %v900_v12 = vadd.f32 %v899_v7, %v811_v8 }
 0x161   : > { %v1146_v28 = vmax.f32 %v1076_v11, 0.0 }
 0x162   : > { %v1147_v14 = vmax.f32 %v900_v12, 0.0 }
 0x163   : > { %v902_v19 = vpop.f32.mrf.mxu1 }
 0x164   : > { %v988_v15 = vpop.f32.mrf.mxu2  ;;  %v1077_v16 = vpop.f32.mrf.mxu3  ;;  %v3096_v17 = vpack.c.bf16 %v1147_v14, %v1145_v13 }
 0x165   : > { %v989_v20 = vadd.f32 %v988_v15, %v2860_v10  ;;  %v813_v38 = vpop.f32.mrf.mxu0 }
 0x166   : > { %v814_v21 = vadd.f32 %v813_v38, %v2855_v61  ;;  %1511 = vmatmul.bf16.gmra.mxu1 %v2993_v25 }
 0x167   : > { %v1078_v22 = vadd.f32 %v1077_v16, %v989_v20 }
 0x168   : > { %v903_v23 = vadd.f32 %v902_v19, %v814_v21  ;;  %1422 = vmatmul.bf16.gmra.mxu0 %v2975_v3 }
 0x169   : > { %v1148_v42 = vmax.f32 %v1078_v22, 0.0  ;;  %1600 = vmatmul.bf16.gmra.mxu2 %v2975_v3  ;;  %1689 = vmatmul.bf16.gmra.mxu3 %v2993_v25 }
 0x16a   : > { %v1149_v39 = vmax.f32 %v903_v23, 0.0 }
 0x16b   : > { %v3104_v1 = vpack.c.bf16 %v1148_v42, %v1146_v28  ;;  %v904_v31 = vpop.f32.mrf.mxu1 }
 0x16c   : > { %v991_v27 = vpop.f32.mrf.mxu2  ;;  %v1080_v29 = vpop.f32.mrf.mxu3 }
 0x16d   : > { %v992_v34 = vadd.f32 %v991_v27, %v2860_v10  ;;  %v815_v30 = vpop.f32.mrf.mxu0 }
 0x16e   : > { %v816_v33 = vadd.f32 %v815_v30, %v2855_v61 }
 0x16f   : > { %v1081_v36 = vadd.f32 %v1080_v29, %v992_v34 }
 0x170   : > { %v905_v37 = vadd.f32 %v904_v31, %v816_v33 }
 0x171   : > { %v1150_v52 = vmax.f32 %v1081_v36, 0.0 }
 0x172   : > { %v1151_v46 = vmax.f32 %v905_v37, 0.0 }
 0x173   : > { %v907_v44 = vpop.f32.mrf.mxu1 }
 0x174   : > { %v993_v40 = vpop.f32.mrf.mxu2  ;;  %v1082_v47 = vpop.f32.mrf.mxu3  ;;  %v3108_v43 = vpack.c.bf16 %v1151_v46, %v1149_v39 }
 0x175   : > { %v994_v3 = vadd.f32 %v993_v40, %v2860_v10  ;;  %v818_v25 = vpop.f32.mrf.mxu0 }
 0x176   : > { %v819_v45 = vadd.f32 %v818_v25, %v2855_v61  ;;  %1516 = vmatmul.bf16.gmra.mxu1 %v3023_v18 }
 0x177   : > { %v1083_v48 = vadd.f32 %v1082_v47, %v994_v3 }
 0x178   : > { %v908_v49 = vadd.f32 %v907_v44, %v819_v45  ;;  %1427 = vmatmul.bf16.gmra.mxu0 %v3017_v0 }
 0x179   : > { %v1152_v26 = vmax.f32 %v1083_v48, 0.0  ;;  %1605 = vmatmul.bf16.gmra.mxu2 %v3017_v0  ;;  %1694 = vmatmul.bf16.gmra.mxu3 %v3023_v18 }
 0x17a   : > { %v1153_v4 = vmax.f32 %v908_v49, 0.0 }
 0x17b   : > { %v3116_v51 = vpack.c.bf16 %v1152_v26, %v1150_v52  ;;  %v909_v58 = vpop.f32.mrf.mxu1 }
 0x17c   : > { %v996_v54 = vpop.f32.mrf.mxu2  ;;  %v1085_v55 = vpop.f32.mrf.mxu3 }
 0x17d   : > { %v997_v56 = vadd.f32 %v996_v54, %v2860_v10  ;;  %v820_v57 = vpop.f32.mrf.mxu0 }
 0x17e   : > { %v821_v60 = vadd.f32 %v820_v57, %v2855_v61 }
 0x17f   : > { %v1086_v63 = vadd.f32 %v1085_v55, %v997_v56 }
 0x180   : > { %v910_v2 = vadd.f32 %v909_v58, %v821_v60 }
 0x181   : > { %v1154_v16 = vmax.f32 %v1086_v63, 0.0 }
 0x182   : > { %v1155_v5 = vmax.f32 %v910_v2, 0.0 }
 0x183   : > { %v912_v12 = vpop.f32.mrf.mxu1 }
 0x184   : > { %v998_v7 = vpop.f32.mrf.mxu2  ;;  %v1087_v8 = vpop.f32.mrf.mxu3  ;;  %v3120_v11 = vpack.c.bf16 %v1155_v5, %v1153_v4 }
 0x185   : > { %v999_v0 = vadd.f32 %v998_v7, %v2860_v10  ;;  %v823_v18 = vpop.f32.mrf.mxu0 }
 0x186   : > { %v824_v13 = vadd.f32 %v823_v18, %v2855_v61  ;;  %1521 = vmatmul.bf16.gmra.mxu1 %v3041_v6 }
 0x187   : > { %v1088_v14 = vadd.f32 %v1087_v8, %v999_v0 }
 0x188   : > { %v913_v15 = vadd.f32 %v912_v12, %v824_v13  ;;  %1432 = vmatmul.bf16.gmra.mxu0 %v3035_v50 }
 0x189   : > { %v1156_v20 = vmax.f32 %v1088_v14, 0.0  ;;  %1610 = vmatmul.bf16.gmra.mxu2 %v3035_v50  ;;  %1699 = vmatmul.bf16.gmra.mxu3 %v3041_v6 }
 0x18a   : > { %v1157_v34 = vmax.f32 %v913_v15, 0.0 }
 0x18b   : > { %v3128_v38 = vpack.c.bf16 %v1156_v20, %v1154_v16  ;;  %v914_v28 = vpop.f32.mrf.mxu1 }
 0x18c   : > { %v1001_v19 = vpop.f32.mrf.mxu2  ;;  %v1090_v21 = vpop.f32.mrf.mxu3 }
 0x18d   : > { %v1002_v22 = vadd.f32 %v1001_v19, %v2860_v10  ;;  %v825_v23 = vpop.f32.mrf.mxu0 }
 0x18e   : > { %v826_v42 = vadd.f32 %v825_v23, %v2855_v61 }
 0x18f   : > { %v1091_v27 = vadd.f32 %v1090_v21, %v1002_v22  ;;  %v1233_v21 = vld [vmem:[%s3372_s5] sm:$0x3] }
 0x190   : > { %v915_v29 = vadd.f32 %v914_v28, %v826_v42  ;;  %v3160_v23 = vperm.slane %v1233_v21, 0 }
 0x191   : > { %v1158_v47 = vmax.f32 %v1091_v27, 0.0 }
 0x192   : > { %v1159_v30 = vmax.f32 %v915_v29, 0.0 }
 0x193   : > { %v917_v37 = vpop.f32.mrf.mxu1 }
 0x194   : > { %v1003_v31 = vpop.f32.mrf.mxu2  ;;  %v1092_v33 = vpop.f32.mrf.mxu3  ;;  %v3132_v36 = vpack.c.bf16 %v1159_v30, %v1157_v34 }
 0x195   : > { %v1004_v50 = vadd.f32 %v1003_v31, %v2860_v10  ;;  %v828_v6 = vpop.f32.mrf.mxu0 }
 0x196   : > { %v829_v39 = vadd.f32 %v828_v6, %v2855_v61  ;;  %1526 = vmatmul.bf16.gmra.mxu1 %v3056_v41 }
 0x197   : > { %v1093_v46 = vadd.f32 %v1092_v33, %v1004_v50 }
 0x198   : > { %v918_v40 = vadd.f32 %v917_v37, %v829_v39  ;;  %1437 = vmatmul.bf16.gmra.mxu0 %v3052_v32  ;;  %v3172_v37 = vperm.slane %v1233_v21, 1 }
 0x199   : > { %v1160_v3 = vmax.f32 %v1093_v46, 0.0  ;;  %1615 = vmatmul.bf16.gmra.mxu2 %v3052_v32  ;;  %1704 = vmatmul.bf16.gmra.mxu3 %v3056_v41 }
 0x19a   : > { %v1161_v56 = vmax.f32 %v918_v40, 0.0 }
 0x19b   : > { %v3140_v25 = vpack.c.bf16 %v1160_v3, %v1158_v47  ;;  %v919_v52 = vpop.f32.mrf.mxu1 }
 0x19c   : > { %v1006_v44 = vpop.f32.mrf.mxu2  ;;  %v1095_v45 = vpop.f32.mrf.mxu3 }
 0x19d   : > { %v1007_v48 = vadd.f32 %v1006_v44, %v2860_v10  ;;  %v830_v49 = vpop.f32.mrf.mxu0 }
 0x19e   : > { %v831_v26 = vadd.f32 %v830_v49, %v2855_v61 }
 0x19f   : > { %v1096_v54 = vadd.f32 %v1095_v45, %v1007_v48 }
 0x1a0   : > { %v920_v55 = vadd.f32 %v919_v52, %v831_v26 }
 0x1a1   : > { %v1162_v8 = vmax.f32 %v1096_v54, 0.0 }
 0x1a2   : > { %v1163_v57 = vmax.f32 %v920_v55, 0.0 }
 0x1a3   : > { %v922_v2 = vpop.f32.mrf.mxu1 }
 0x1a4   : > { %v1008_v58 = vpop.f32.mrf.mxu2  ;;  %v1097_v60 = vpop.f32.mrf.mxu3  ;;  %v3144_v63 = vpack.c.bf16 %v1163_v57, %v1161_v56 }
 0x1a5   : > { %v1009_v32 = vadd.f32 %v1008_v58, %v2860_v10  ;;  %v833_v41 = vpop.f32.mrf.mxu0 }
 0x1a6   : > { %v834_v4 = vadd.f32 %v833_v41, %v2855_v61  ;;  %1531 = vmatmul.bf16.gmra.mxu1 %v3068_v9 }
 0x1a7   : > { %v1098_v5 = vadd.f32 %v1097_v60, %v1009_v32 }
 0x1a8   : > { %v923_v7 = vadd.f32 %v922_v2, %v834_v4  ;;  %1442 = vmatmul.bf16.gmra.mxu0 %v3060_v59 }
 0x1a9   : > { %v1164_v0 = vmax.f32 %v1098_v5, 0.0  ;;  %1620 = vmatmul.bf16.gmra.mxu2 %v3060_v59  ;;  %1709 = vmatmul.bf16.gmra.mxu3 %v3068_v9 }
 0x1aa   : > { %v1165_v59 = vmax.f32 %v923_v7, 0.0 }
 0x1ab   : > { %v3152_v18 = vpack.c.bf16 %v1164_v0, %v1162_v8  ;;  %v924_v16 = vpop.f32.mrf.mxu1 }
 0x1ac   : > { %v1011_v12 = vpop.f32.mrf.mxu2  ;;  %v1100_v13 = vpop.f32.mrf.mxu3 }
 0x1ad   : > { %v1012_v14 = vadd.f32 %v1011_v12, %v2860_v10  ;;  %v835_v15 = vpop.f32.mrf.mxu0 }
 0x1ae   : > { %v836_v20 = vadd.f32 %v835_v15, %v2855_v61 }
 0x1af   : > { %v1101_v19 = vadd.f32 %v1100_v13, %v1012_v14 }
 0x1b0   : > { %v925_v22 = vadd.f32 %v924_v16, %v836_v20 }
 0x1b1   : > { %v1166_v50 = vmax.f32 %v1101_v19, 0.0 }
 0x1b2   : > { %v1167_v9 = vmax.f32 %v925_v22, 0.0 }
 0x1b3   : > { %v1497_v34 = vpop.f32.mrf.mxu1 }
 0x1b4   : > { %v1013_v28 = vpop.f32.mrf.mxu2  ;;  %v1102_v42 = vpop.f32.mrf.mxu3  ;;  %v3164_v27 = vpack.c.bf16 %v1167_v9, %v1165_v59 }
 0x1b5   : > { %v1014_v29 = vadd.f32 %v1013_v28, %v2860_v10  ;;  %v1408_v61 = vpop.f32.mrf.mxu0 }
 0x1b6   : > { %v1409_v30 = vadd.f32 %v1408_v61, %v3160_v23  ;;  %1536 = vmatmul.bf16.gmra.mxu1 %v3080_v35 }
 0x1b7   : > { %v1103_v31 = vadd.f32 %v1102_v42, %v1014_v29 }
 0x1b8   : > { %v1498_v33 = vadd.f32 %v1497_v34, %v1409_v30  ;;  %1447 = vmatmul.bf16.gmra.mxu0 %v3072_v24 }
 0x1b9   : > { %v1168_v6 = vmax.f32 %v1103_v31, 0.0  ;;  %1625 = vmatmul.bf16.gmra.mxu2 %v3072_v24  ;;  %1714 = vmatmul.bf16.gmra.mxu3 %v3080_v35 }
 0x1ba   : > { %1755 = vst [vmem:[%s3174_s14] sm:$0xff] %v1498_v33 }
 0x1bb   : > { %v3177_v10 = vpack.c.bf16 %v1168_v6, %v1166_v50  ;;  %v1499_v3 = vpop.f32.mrf.mxu1 }
 0x1bc   : > { %v1586_v39 = vpop.f32.mrf.mxu2  ;;  %v1675_v46 = vpop.f32.mrf.mxu3 }
 0x1bd   : > { %v1587_v40 = vadd.f32 %v1586_v39, %v3172_v37  ;;  %v1410_v47 = vpop.f32.mrf.mxu0 }
 0x1be   : > { %v1411_v24 = vadd.f32 %v1410_v47, %v3160_v23 }
 0x1bf   : > { %v1676_v35 = vadd.f32 %v1675_v46, %v1587_v40 }
 0x1c0   : > { %v1500_v44 = vadd.f32 %v1499_v3, %v1411_v24 }
 0x1c1   : > { %1756 = vst [vmem:[%s3174_s14 + $0x8] sm:$0xff] %v1676_v35 }
 0x1c2   : > { %1757 = vst [vmem:[%s3174_s14 + $0x10] sm:$0xff] %v1500_v44 }
 0x1c3   : > { %v1502_v26 = vpop.f32.mrf.mxu1 }
 0x1c4   : > { %v1588_v45 = vpop.f32.mrf.mxu2  ;;  %v1677_v48 = vpop.f32.mrf.mxu3 }
 0x1c5   : > { %v1589_v49 = vadd.f32 %v1588_v45, %v3172_v37  ;;  %v1413_v52 = vpop.f32.mrf.mxu0 }
 0x1c6   : > { %v1414_v54 = vadd.f32 %v1413_v52, %v3160_v23  ;;  %1541 = vmatmul.bf16.gmra.mxu1 %v3092_v62 }
 0x1c7   : > { %v1678_v55 = vadd.f32 %v1677_v48, %v1589_v49 }
 0x1c8   : > { %v1503_v56 = vadd.f32 %v1502_v26, %v1414_v54  ;;  %1452 = vmatmul.bf16.gmra.mxu0 %v3084_v53 }
 0x1c9   : > { %1758 = vst [vmem:[%s3174_s14 + $0x18] sm:$0xff] %v1678_v55  ;;  %1630 = vmatmul.bf16.gmra.mxu2 %v3084_v53  ;;  %1719 = vmatmul.bf16.gmra.mxu3 %v3092_v62 }
 0x1ca   : > { %1759 = vst [vmem:[%s3174_s14 + $0x20] sm:$0xff] %v1503_v56 }
 0x1cb   : > { %v1504_v41 = vpop.f32.mrf.mxu1 }
 0x1cc   : > { %v1591_v57 = vpop.f32.mrf.mxu2  ;;  %v1680_v58 = vpop.f32.mrf.mxu3 }
 0x1cd   : > { %v1592_v60 = vadd.f32 %v1591_v57, %v3172_v37  ;;  %v1415_v32 = vpop.f32.mrf.mxu0 }
 0x1ce   : > { %v1416_v2 = vadd.f32 %v1415_v32, %v3160_v23 }
 0x1cf   : > { %v1681_v4 = vadd.f32 %v1680_v58, %v1592_v60 }
 0x1d0   : > { %v1505_v5 = vadd.f32 %v1504_v41, %v1416_v2 }
 0x1d1   : > { %1760 = vst [vmem:[%s3174_s14 + $0x28] sm:$0xff] %v1681_v4 }
 0x1d2   : > { %1761 = vst [vmem:[%s3174_s14 + $0x30] sm:$0xff] %v1505_v5 }
 0x1d3   : > { %v1507_v0 = vpop.f32.mrf.mxu1 }
 0x1d4   : > { %v1593_v7 = vpop.f32.mrf.mxu2  ;;  %v1682_v8 = vpop.f32.mrf.mxu3 }
 0x1d5   : > { %v1594_v53 = vadd.f32 %v1593_v7, %v3172_v37  ;;  %v1418_v62 = vpop.f32.mrf.mxu0 }
 0x1d6   : > { %v1419_v12 = vadd.f32 %v1418_v62, %v3160_v23  ;;  %1546 = vmatmul.bf16.gmra.mxu1 %v3104_v1 }
 0x1d7   : > { %v1683_v13 = vadd.f32 %v1682_v8, %v1594_v53 }
 0x1d8   : > { %v1508_v14 = vadd.f32 %v1507_v0, %v1419_v12  ;;  %1457 = vmatmul.bf16.gmra.mxu0 %v3096_v17 }
 0x1d9   : > { %1762 = vst [vmem:[%s3174_s14 + $0x38] sm:$0xff] %v1683_v13  ;;  %1635 = vmatmul.bf16.gmra.mxu2 %v3096_v17  ;;  %1724 = vmatmul.bf16.gmra.mxu3 %v3104_v1 }
 0x1da   : > { %1763 = vst [vmem:[%s3174_s14 + $0x40] sm:$0xff] %v1508_v14 }
 0x1db   : > { %v1509_v21 = vpop.f32.mrf.mxu1 }
 0x1dc   : > { %v1596_v15 = vpop.f32.mrf.mxu2  ;;  %v1685_v16 = vpop.f32.mrf.mxu3 }
 0x1dd   : > { %v1597_v20 = vadd.f32 %v1596_v15, %v3172_v37  ;;  %v1420_v19 = vpop.f32.mrf.mxu0 }
 0x1de   : > { %v1421_v22 = vadd.f32 %v1420_v19, %v3160_v23 }
 0x1df   : > { %v1686_v59 = vadd.f32 %v1685_v16, %v1597_v20 }
 0x1e0   : > { %v1510_v9 = vadd.f32 %v1509_v21, %v1421_v22 }
 0x1e1   : > { %1764 = vst [vmem:[%s3174_s14 + $0x48] sm:$0xff] %v1686_v59 }
 0x1e2   : > { %1765 = vst [vmem:[%s3174_s14 + $0x50] sm:$0xff] %v1510_v9 }
 0x1e3   : > { %v1512_v29 = vpop.f32.mrf.mxu1 }
 0x1e4   : > { %v1598_v28 = vpop.f32.mrf.mxu2  ;;  %v1687_v42 = vpop.f32.mrf.mxu3 }
 0x1e5   : > { %v1599_v17 = vadd.f32 %v1598_v28, %v3172_v37  ;;  %v1423_v1 = vpop.f32.mrf.mxu0 }
 0x1e6   : > { %v1424_v61 = vadd.f32 %v1423_v1, %v3160_v23  ;;  %1551 = vmatmul.bf16.gmra.mxu1 %v3116_v51 }
 0x1e7   : > { %v1688_v34 = vadd.f32 %v1687_v42, %v1599_v17 }
 0x1e8   : > { %v1513_v30 = vadd.f32 %v1512_v29, %v1424_v61  ;;  %1462 = vmatmul.bf16.gmra.mxu0 %v3108_v43 }
 0x1e9   : > { %1766 = vst [vmem:[%s3174_s14 + $0x58] sm:$0xff] %v1688_v34  ;;  %1640 = vmatmul.bf16.gmra.mxu2 %v3108_v43  ;;  %1729 = vmatmul.bf16.gmra.mxu3 %v3116_v51 }
 0x1ea   : > { %1767 = vst [vmem:[%s3174_s14 + $0x60] sm:$0xff] %v1513_v30 }
 0x1eb   : > { %v1514_v39 = vpop.f32.mrf.mxu1 }
 0x1ec   : > { %v1601_v31 = vpop.f32.mrf.mxu2  ;;  %v1690_v33 = vpop.f32.mrf.mxu3 }
 0x1ed   : > { %v1602_v50 = vadd.f32 %v1601_v31, %v3172_v37  ;;  %v1425_v6 = vpop.f32.mrf.mxu0 }
 0x1ee   : > { %v1426_v46 = vadd.f32 %v1425_v6, %v3160_v23 }
 0x1ef   : > { %v1691_v40 = vadd.f32 %v1690_v33, %v1602_v50 }
 0x1f0   : > { %v1515_v47 = vadd.f32 %v1514_v39, %v1426_v46 }
 0x1f1   : > { %1768 = vst [vmem:[%s3174_s14 + $0x68] sm:$0xff] %v1691_v40 }
 0x1f2   : > { %1769 = vst [vmem:[%s3174_s14 + $0x70] sm:$0xff] %v1515_v47 }
 0x1f3   : > { %v1517_v35 = vpop.f32.mrf.mxu1 }
 0x1f4   : > { %v1603_v3 = vpop.f32.mrf.mxu2  ;;  %v1692_v24 = vpop.f32.mrf.mxu3 }
 0x1f5   : > { %v1604_v43 = vadd.f32 %v1603_v3, %v3172_v37  ;;  %v1428_v51 = vpop.f32.mrf.mxu0 }
 0x1f6   : > { %v1429_v44 = vadd.f32 %v1428_v51, %v3160_v23  ;;  %1556 = vmatmul.bf16.gmra.mxu1 %v3128_v38 }
 0x1f7   : > { %v1693_v45 = vadd.f32 %v1692_v24, %v1604_v43 }
 0x1f8   : > { %v1518_v48 = vadd.f32 %v1517_v35, %v1429_v44  ;;  %1467 = vmatmul.bf16.gmra.mxu0 %v3120_v11 }
 0x1f9   : > { %1770 = vst [vmem:[%s3174_s14 + $0x78] sm:$0xff] %v1693_v45  ;;  %1645 = vmatmul.bf16.gmra.mxu2 %v3120_v11  ;;  %1734 = vmatmul.bf16.gmra.mxu3 %v3128_v38 }
 0x1fa   : > { %1771 = vst [vmem:[%s3174_s14 + $0x80] sm:$0xff] %v1518_v48 }
 0x1fb   : > { %v1519_v55 = vpop.f32.mrf.mxu1 }
 0x1fc   : > { %v1606_v49 = vpop.f32.mrf.mxu2  ;;  %v1695_v52 = vpop.f32.mrf.mxu3 }
 0x1fd   : > { %v1607_v26 = vadd.f32 %v1606_v49, %v3172_v37  ;;  %v1430_v54 = vpop.f32.mrf.mxu0 }
 0x1fe   : > { %v1431_v56 = vadd.f32 %v1430_v54, %v3160_v23 }
 0x1ff   : > { %v1696_v57 = vadd.f32 %v1695_v52, %v1607_v26 }
 0x200   : > { %v1520_v58 = vadd.f32 %v1519_v55, %v1431_v56 }
 0x201   : > { %1772 = vst [vmem:[%s3174_s14 + $0x88] sm:$0xff] %v1696_v57 }
 0x202   : > { %1773 = vst [vmem:[%s3174_s14 + $0x90] sm:$0xff] %v1520_v58 }
 0x203   : > { %v1522_v41 = vpop.f32.mrf.mxu1 }
 0x204   : > { %v1608_v60 = vpop.f32.mrf.mxu2  ;;  %v1697_v32 = vpop.f32.mrf.mxu3 }
 0x205   : > { %v1609_v11 = vadd.f32 %v1608_v60, %v3172_v37  ;;  %v1433_v38 = vpop.f32.mrf.mxu0 }
 0x206   : > { %v1434_v2 = vadd.f32 %v1433_v38, %v3160_v23  ;;  %1561 = vmatmul.bf16.gmra.mxu1 %v3140_v25 }
 0x207   : > { %v1698_v4 = vadd.f32 %v1697_v32, %v1609_v11 }
 0x208   : > { %v1523_v5 = vadd.f32 %v1522_v41, %v1434_v2  ;;  %1472 = vmatmul.bf16.gmra.mxu0 %v3132_v36 }
 0x209   : > { %1774 = vst [vmem:[%s3174_s14 + $0x98] sm:$0xff] %v1698_v4  ;;  %1650 = vmatmul.bf16.gmra.mxu2 %v3132_v36  ;;  %1739 = vmatmul.bf16.gmra.mxu3 %v3140_v25 }
 0x20a   : > { %1775 = vst [vmem:[%s3174_s14 + $0xa0] sm:$0xff] %v1523_v5 }
 0x20b   : > { %v1524_v0 = vpop.f32.mrf.mxu1 }
 0x20c   : > { %v1611_v7 = vpop.f32.mrf.mxu2  ;;  %v1700_v8 = vpop.f32.mrf.mxu3 }
 0x20d   : > { %v1612_v53 = vadd.f32 %v1611_v7, %v3172_v37  ;;  %v1435_v62 = vpop.f32.mrf.mxu0 }
 0x20e   : > { %v1436_v12 = vadd.f32 %v1435_v62, %v3160_v23 }
 0x20f   : > { %v1701_v13 = vadd.f32 %v1700_v8, %v1612_v53 }
 0x210   : > { %v1525_v14 = vadd.f32 %v1524_v0, %v1436_v12 }
 0x211   : > { %1776 = vst [vmem:[%s3174_s14 + $0xa8] sm:$0xff] %v1701_v13 }
 0x212   : > { %1777 = vst [vmem:[%s3174_s14 + $0xb0] sm:$0xff] %v1525_v14 }
 0x213   : > { %v1527_v20 = vpop.f32.mrf.mxu1 }
 0x214   : > { %v1613_v15 = vpop.f32.mrf.mxu2  ;;  %v1702_v16 = vpop.f32.mrf.mxu3 }
 0x215   : > { %v1614_v36 = vadd.f32 %v1613_v15, %v3172_v37  ;;  %v1438_v25 = vpop.f32.mrf.mxu0 }
 0x216   : > { %v1439_v19 = vadd.f32 %v1438_v25, %v3160_v23  ;;  %1566 = vmatmul.bf16.gmra.mxu1 %v3152_v18 }
 0x217   : > { %v1703_v21 = vadd.f32 %v1702_v16, %v1614_v36 }
 0x218   : > { %v1528_v22 = vadd.f32 %v1527_v20, %v1439_v19  ;;  %1477 = vmatmul.bf16.gmra.mxu0 %v3144_v63 }
 0x219   : > { %1778 = vst [vmem:[%s3174_s14 + $0xb8] sm:$0xff] %v1703_v21  ;;  %1655 = vmatmul.bf16.gmra.mxu2 %v3144_v63  ;;  %1744 = vmatmul.bf16.gmra.mxu3 %v3152_v18 }
 0x21a   : > { %1779 = vst [vmem:[%s3174_s14 + $0xc0] sm:$0xff] %v1528_v22 }
 0x21b   : > { %v1529_v17 = vpop.f32.mrf.mxu1 }
 0x21c   : > { %v1616_v59 = vpop.f32.mrf.mxu2  ;;  %v1705_v9 = vpop.f32.mrf.mxu3 }
 0x21d   : > { %v1617_v28 = vadd.f32 %v1616_v59, %v3172_v37  ;;  %v1440_v42 = vpop.f32.mrf.mxu0 }
 0x21e   : > { %v1441_v1 = vadd.f32 %v1440_v42, %v3160_v23 }
 0x21f   : > { %v1706_v29 = vadd.f32 %v1705_v9, %v1617_v28 }
 0x220   : > { %v1530_v61 = vadd.f32 %v1529_v17, %v1441_v1 }
 0x221   : > { %1780 = vst [vmem:[%s3174_s14 + $0xc8] sm:$0xff] %v1706_v29 }
 0x222   : > { %1781 = vst [vmem:[%s3174_s14 + $0xd0] sm:$0xff] %v1530_v61 }
 0x223   : > { %v1532_v31 = vpop.f32.mrf.mxu1 }
 0x224   : > { %v1618_v34 = vpop.f32.mrf.mxu2  ;;  %v1707_v30 = vpop.f32.mrf.mxu3 }
 0x225   : > { %v1619_v63 = vadd.f32 %v1618_v34, %v3172_v37  ;;  %v1443_v18 = vpop.f32.mrf.mxu0 }
 0x226   : > { %v1444_v33 = vadd.f32 %v1443_v18, %v3160_v23  ;;  %1571 = vmatmul.bf16.gmra.mxu1 %v3177_v10 }
 0x227   : > { %v1708_v50 = vadd.f32 %v1707_v30, %v1619_v63 }
 0x228   : > { %v1533_v6 = vadd.f32 %v1532_v31, %v1444_v33  ;;  %1482 = vmatmul.bf16.gmra.mxu0 %v3164_v27 }
 0x229   : > { %1782 = vst [vmem:[%s3174_s14 + $0xd8] sm:$0xff] %v1708_v50  ;;  %1660 = vmatmul.bf16.gmra.mxu2 %v3164_v27  ;;  %1749 = vmatmul.bf16.gmra.mxu3 %v3177_v10 }
 0x22a   : > { %1783 = vst [vmem:[%s3174_s14 + $0xe0] sm:$0xff] %v1533_v6 }
 0x22b   : > { %v1534_v3 = vpop.f32.mrf.mxu1 }
 0x22c   : > { %v1621_v39 = vpop.f32.mrf.mxu2  ;;  %v1710_v46 = vpop.f32.mrf.mxu3 }
 0x22d   : > { %v1622_v40 = vadd.f32 %v1621_v39, %v3172_v37  ;;  %v1445_v47 = vpop.f32.mrf.mxu0 }
 0x22e   : > { %v1446_v24 = vadd.f32 %v1445_v47, %v3160_v23 }
 0x22f   : > { %v1711_v43 = vadd.f32 %v1710_v46, %v1622_v40 }
 0x230   : > { %v1535_v51 = vadd.f32 %v1534_v3, %v1446_v24 }
 0x231   : > { %1784 = vst [vmem:[%s3174_s14 + $0xe8] sm:$0xff] %v1711_v43 }
 0x232   : > { %1785 = vst [vmem:[%s3174_s14 + $0xf0] sm:$0xff] %v1535_v51 }
 0x233   : > { %v1537_v45 = vpop.f32.mrf.mxu1 }
 0x234   : > { %v1623_v35 = vpop.f32.mrf.mxu2  ;;  %v1712_v44 = vpop.f32.mrf.mxu3 }
 0x235   : > { %v1624_v27 = vadd.f32 %v1623_v35, %v3172_v37  ;;  %v1448_v10 = vpop.f32.mrf.mxu0 }
 0x236   : > { %v1449_v48 = vadd.f32 %v1448_v10, %v3160_v23 }
 0x237   : > { %v1713_v49 = vadd.f32 %v1712_v44, %v1624_v27 }
 0x238   : > { %v1538_v52 = vadd.f32 %v1537_v45, %v1449_v48 }
 0x239   : > { %1786 = vst [vmem:[%s3174_s14 + $0xf8] sm:$0xff] %v1713_v49 }
 0x23a   : > { %1787 = vst [vmem:[%s3174_s14 + $0x100] sm:$0xff] %v1538_v52 }
 0x23b   : > { %v1539_v57 = vpop.f32.mrf.mxu1 }
 0x23c   : > { %v1626_v26 = vpop.f32.mrf.mxu2  ;;  %v1715_v54 = vpop.f32.mrf.mxu3 }
 0x23d   : > { %v1627_v55 = vadd.f32 %v1626_v26, %v3172_v37  ;;  %v1450_v56 = vpop.f32.mrf.mxu0 }
 0x23e   : > { %v1451_v58 = vadd.f32 %v1450_v56, %v3160_v23 }
 0x23f   : > { %v1716_v60 = vadd.f32 %v1715_v54, %v1627_v55 }
 0x240   : > { %v1540_v32 = vadd.f32 %v1539_v57, %v1451_v58 }
 0x241   : > { %1788 = vst [vmem:[%s3174_s14 + $0x108] sm:$0xff] %v1716_v60 }
 0x242   : > { %1789 = vst [vmem:[%s3174_s14 + $0x110] sm:$0xff] %v1540_v32 }
 0x243   : > { %v1542_v4 = vpop.f32.mrf.mxu1 }
 0x244   : > { %v1628_v11 = vpop.f32.mrf.mxu2  ;;  %v1717_v38 = vpop.f32.mrf.mxu3 }
 0x245   : > { %v1629_v41 = vadd.f32 %v1628_v11, %v3172_v37  ;;  %v1453_v2 = vpop.f32.mrf.mxu0 }
 0x246   : > { %v1454_v5 = vadd.f32 %v1453_v2, %v3160_v23 }
 0x247   : > { %v1718_v7 = vadd.f32 %v1717_v38, %v1629_v41 }
 0x248   : > { %v1543_v8 = vadd.f32 %v1542_v4, %v1454_v5 }
 0x249   : > { %1790 = vst [vmem:[%s3174_s14 + $0x118] sm:$0xff] %v1718_v7 }
 0x24a   : > { %1791 = vst [vmem:[%s3174_s14 + $0x120] sm:$0xff] %v1543_v8 }
 0x24b   : > { %v1544_v13 = vpop.f32.mrf.mxu1 }
 0x24c   : > { %v1631_v53 = vpop.f32.mrf.mxu2  ;;  %v1720_v62 = vpop.f32.mrf.mxu3 }
 0x24d   : > { %v1632_v0 = vadd.f32 %v1631_v53, %v3172_v37  ;;  %v1455_v12 = vpop.f32.mrf.mxu0 }
 0x24e   : > { %v1456_v14 = vadd.f32 %v1455_v12, %v3160_v23 }
 0x24f   : > { %v1721_v15 = vadd.f32 %v1720_v62, %v1632_v0 }
 0x250   : > { %v1545_v16 = vadd.f32 %v1544_v13, %v1456_v14 }
 0x251   : > { %1792 = vst [vmem:[%s3174_s14 + $0x128] sm:$0xff] %v1721_v15 }
 0x252   : > { %1793 = vst [vmem:[%s3174_s14 + $0x130] sm:$0xff] %v1545_v16 }
 0x253   : > { %v1547_v21 = vpop.f32.mrf.mxu1 }
 0x254   : > { %v1633_v36 = vpop.f32.mrf.mxu2  ;;  %v1722_v25 = vpop.f32.mrf.mxu3 }
 0x255   : > { %v1634_v20 = vadd.f32 %v1633_v36, %v3172_v37  ;;  %v1458_v19 = vpop.f32.mrf.mxu0 }
 0x256   : > { %v1459_v22 = vadd.f32 %v1458_v19, %v3160_v23 }
 0x257   : > { %v1723_v59 = vadd.f32 %v1722_v25, %v1634_v20 }
 0x258   : > { %v1548_v9 = vadd.f32 %v1547_v21, %v1459_v22 }
 0x259   : > { %1794 = vst [vmem:[%s3174_s14 + $0x138] sm:$0xff] %v1723_v59 }
 0x25a   : > { %1795 = vst [vmem:[%s3174_s14 + $0x140] sm:$0xff] %v1548_v9 }
 0x25b   : > { %v1549_v29 = vpop.f32.mrf.mxu1 }
 0x25c   : > { %v1636_v28 = vpop.f32.mrf.mxu2  ;;  %v1725_v42 = vpop.f32.mrf.mxu3 }
 0x25d   : > { %v1637_v17 = vadd.f32 %v1636_v28, %v3172_v37  ;;  %v1460_v1 = vpop.f32.mrf.mxu0 }
 0x25e   : > { %v1461_v61 = vadd.f32 %v1460_v1, %v3160_v23 }
 0x25f   : > { %v1726_v34 = vadd.f32 %v1725_v42, %v1637_v17 }
 0x260   : > { %v1550_v30 = vadd.f32 %v1549_v29, %v1461_v61 }
 0x261   : > { %1796 = vst [vmem:[%s3174_s14 + $0x148] sm:$0xff] %v1726_v34 }
 0x262   : > { %1797 = vst [vmem:[%s3174_s14 + $0x150] sm:$0xff] %v1550_v30 }
 0x263   : > { %v1552_v50 = vpop.f32.mrf.mxu1 }
 0x264   : > { %v1638_v63 = vpop.f32.mrf.mxu2  ;;  %v1727_v18 = vpop.f32.mrf.mxu3 }
 0x265   : > { %v1639_v31 = vadd.f32 %v1638_v63, %v3172_v37  ;;  %v1463_v33 = vpop.f32.mrf.mxu0 }
 0x266   : > { %v1464_v6 = vadd.f32 %v1463_v33, %v3160_v23 }
 0x267   : > { %v1728_v39 = vadd.f32 %v1727_v18, %v1639_v31 }
 0x268   : > { %v1553_v46 = vadd.f32 %v1552_v50, %v1464_v6 }
 0x269   : > { %1798 = vst [vmem:[%s3174_s14 + $0x158] sm:$0xff] %v1728_v39 }
 0x26a   : > { %1799 = vst [vmem:[%s3174_s14 + $0x160] sm:$0xff] %v1553_v46 }
 0x26b   : > { %v1554_v43 = vpop.f32.mrf.mxu1 }
 0x26c   : > { %v1641_v40 = vpop.f32.mrf.mxu2  ;;  %v1730_v47 = vpop.f32.mrf.mxu3 }
 0x26d   : > { %v1642_v3 = vadd.f32 %v1641_v40, %v3172_v37  ;;  %v1465_v24 = vpop.f32.mrf.mxu0 }
 0x26e   : > { %v1466_v51 = vadd.f32 %v1465_v24, %v3160_v23 }
 0x26f   : > { %v1731_v35 = vadd.f32 %v1730_v47, %v1642_v3 }
 0x270   : > { %v1555_v44 = vadd.f32 %v1554_v43, %v1466_v51 }
 0x271   : > { %1800 = vst [vmem:[%s3174_s14 + $0x168] sm:$0xff] %v1731_v35 }
 0x272   : > { %1801 = vst [vmem:[%s3174_s14 + $0x170] sm:$0xff] %v1555_v44 }
 0x273   : > { %v1557_v49 = vpop.f32.mrf.mxu1 }
 0x274   : > { %v1643_v27 = vpop.f32.mrf.mxu2  ;;  %v1732_v10 = vpop.f32.mrf.mxu3 }
 0x275   : > { %v1644_v45 = vadd.f32 %v1643_v27, %v3172_v37  ;;  %v1468_v48 = vpop.f32.mrf.mxu0 }
 0x276   : > { %v1469_v52 = vadd.f32 %v1468_v48, %v3160_v23 }
 0x277   : > { %v1733_v26 = vadd.f32 %v1732_v10, %v1644_v45 }
 0x278   : > { %v1558_v54 = vadd.f32 %v1557_v49, %v1469_v52 }
 0x279   : > { %1802 = vst [vmem:[%s3174_s14 + $0x178] sm:$0xff] %v1733_v26 }
 0x27a   : > { %1803 = vst [vmem:[%s3174_s14 + $0x180] sm:$0xff] %v1558_v54 }
 0x27b   : > { %v1559_v60 = vpop.f32.mrf.mxu1 }
 0x27c   : > { %v1646_v55 = vpop.f32.mrf.mxu2  ;;  %v1735_v56 = vpop.f32.mrf.mxu3 }
 0x27d   : > { %v1647_v57 = vadd.f32 %v1646_v55, %v3172_v37  ;;  %v1470_v58 = vpop.f32.mrf.mxu0 }
 0x27e   : > { %v1471_v32 = vadd.f32 %v1470_v58, %v3160_v23 }
 0x27f   : > { %v1736_v11 = vadd.f32 %v1735_v56, %v1647_v57 }
 0x280   : > { %v1560_v38 = vadd.f32 %v1559_v60, %v1471_v32 }
 0x281   : > { %1804 = vst [vmem:[%s3174_s14 + $0x188] sm:$0xff] %v1736_v11 }
 0x282   : > { %1805 = vst [vmem:[%s3174_s14 + $0x190] sm:$0xff] %v1560_v38 }
 0x283   : > { %v1562_v7 = vpop.f32.mrf.mxu1 }
 0x284   : > { %v1648_v41 = vpop.f32.mrf.mxu2  ;;  %v1737_v2 = vpop.f32.mrf.mxu3 }
 0x285   : > { %v1649_v4 = vadd.f32 %v1648_v41, %v3172_v37  ;;  %v1473_v5 = vpop.f32.mrf.mxu0 }
 0x286   : > { %v1474_v8 = vadd.f32 %v1473_v5, %v3160_v23 }
 0x287   : > { %v1738_v53 = vadd.f32 %v1737_v2, %v1649_v4 }
 0x288   : > { %v1563_v62 = vadd.f32 %v1562_v7, %v1474_v8 }
 0x289   : > { %1806 = vst [vmem:[%s3174_s14 + $0x198] sm:$0xff] %v1738_v53 }
 0x28a   : > { %1807 = vst [vmem:[%s3174_s14 + $0x1a0] sm:$0xff] %v1563_v62 }
 0x28b   : > { %v1564_v15 = vpop.f32.mrf.mxu1 }
 0x28c   : > { %v1651_v0 = vpop.f32.mrf.mxu2  ;;  %v1740_v12 = vpop.f32.mrf.mxu3 }
 0x28d   : > { %v1652_v13 = vadd.f32 %v1651_v0, %v3172_v37  ;;  %v1475_v14 = vpop.f32.mrf.mxu0 }
 0x28e   : > { %v1476_v16 = vadd.f32 %v1475_v14, %v3160_v23 }
 0x28f   : > { %v1741_v36 = vadd.f32 %v1740_v12, %v1652_v13 }
 0x290   : > { %v1565_v25 = vadd.f32 %v1564_v15, %v1476_v16 }
 0x291   : > { %1808 = vst [vmem:[%s3174_s14 + $0x1a8] sm:$0xff] %v1741_v36 }
 0x292   : > { %1809 = vst [vmem:[%s3174_s14 + $0x1b0] sm:$0xff] %v1565_v25 }
 0x293   : > { %v1567_v59 = vpop.f32.mrf.mxu1 }
 0x294   : > { %v1653_v20 = vpop.f32.mrf.mxu2  ;;  %v1742_v19 = vpop.f32.mrf.mxu3 }
 0x295   : > { %v1654_v21 = vadd.f32 %v1653_v20, %v3172_v37  ;;  %v1478_v22 = vpop.f32.mrf.mxu0 }
 0x296   : > { %v1479_v9 = vadd.f32 %v1478_v22, %v3160_v23 }
 0x297   : > { %v1743_v28 = vadd.f32 %v1742_v19, %v1654_v21 }
 0x298   : > { %v1568_v42 = vadd.f32 %v1567_v59, %v1479_v9 }
 0x299   : > { %1810 = vst [vmem:[%s3174_s14 + $0x1b8] sm:$0xff] %v1743_v28 }
 0x29a   : > { %1811 = vst [vmem:[%s3174_s14 + $0x1c0] sm:$0xff] %v1568_v42 }
 0x29b   : > { %v1569_v34 = vpop.f32.mrf.mxu1 }
 0x29c   : > { %v1656_v17 = vpop.f32.mrf.mxu2  ;;  %v1745_v1 = vpop.f32.mrf.mxu3 }
 0x29d   : > { %v1657_v29 = vadd.f32 %v1656_v17, %v3172_v37  ;;  %v1480_v61 = vpop.f32.mrf.mxu0 }
 0x29e   : > { %v1481_v30 = vadd.f32 %v1480_v61, %v3160_v23 }
 0x29f   : > { %v1746_v63 = vadd.f32 %v1745_v1, %v1657_v29 }
 0x2a0   : > { %v1570_v18 = vadd.f32 %v1569_v34, %v1481_v30 }
 0x2a1   : > { %1812 = vst [vmem:[%s3174_s14 + $0x1c8] sm:$0xff] %v1746_v63 }
 0x2a2   : > { %1813 = vst [vmem:[%s3174_s14 + $0x1d0] sm:$0xff] %v1570_v18 }
 0x2a3   : > { %v1572_v39 = vpop.f32.mrf.mxu1 }
 0x2a4   : > { %v1658_v31 = vpop.f32.mrf.mxu2  ;;  %v1747_v33 = vpop.f32.mrf.mxu3 }
 0x2a5   : > { %v1659_v50 = vadd.f32 %v1658_v31, %v3172_v37  ;;  %v1483_v6 = vpop.f32.mrf.mxu0 }
 0x2a6   : > { %v1484_v46 = vadd.f32 %v1483_v6, %v3160_v23 }
 0x2a7   : > { %v1748_v40 = vadd.f32 %v1747_v33, %v1659_v50 }
 0x2a8   : > { %v1573_v47 = vadd.f32 %v1572_v39, %v1484_v46 }
 0x2a9   : > { %1814 = vst [vmem:[%s3174_s14 + $0x1d8] sm:$0xff] %v1748_v40 }
 0x2aa   : > { %1815 = vst [vmem:[%s3174_s14 + $0x1e0] sm:$0xff] %v1573_v47 }
 0x2ab   : > { %v1574_v27 = vpop.f32.mrf.mxu1 }
 0x2ac   : > { %v1661_v3 = vpop.f32.mrf.mxu2  ;;  %v1750_v24 = vpop.f32.mrf.mxu3 }
 0x2ad   : > { %v1662_v43 = vadd.f32 %v1661_v3, %v3172_v37  ;;  %v1485_v51 = vpop.f32.mrf.mxu0 }
 0x2ae   : > { %v1486_v35 = vadd.f32 %v1485_v51, %v3160_v23 }
 0x2af   : > { %v1751_v44 = vadd.f32 %v1750_v24, %v1662_v43 }
 0x2b0   : > { %v1575_v10 = vadd.f32 %v1574_v27, %v1486_v35 }
 0x2b1   : > { %1816 = vst [vmem:[%s3174_s14 + $0x1e8] sm:$0xff] %v1751_v44 }
 0x2b2   : > { %1817 = vst [vmem:[%s3174_s14 + $0x1f0] sm:$0xff] %v1575_v10 }
 0x2b4   : > { %v1663_v45 = vpop.f32.mrf.mxu2  ;;  %v1752_v49 = vpop.f32.mrf.mxu3 }
 0x2b5   : > { %v1664_v48 = vadd.f32 %v1663_v45, %v3172_v37 }
 0x2b7   : > { %v1753_v23 = vadd.f32 %v1752_v49, %v1664_v48 }
 0x2b9   : > { %1818 = vst [vmem:[%s3174_s14 + $0x1f8] sm:$0xff] %v1753_v23 }
 0x2ba   : > { %2303 = shalt.err (!%p2300_p3)
}
 0x2bb   : > { %s2340_s8 = smov 256   ;;  %s2341_s14 = smov 16  }
 0x2bc   : > { %2235 = dma.vmem_to_hbm [thread:$0]  (%p2420_p5), %s1834_s19, 8192, %s1836_s20, %s1820_s28, %s2340_s8, %s2340_s8, %s2341_s14  }
 0x2bd PF: > { %p2241_p4 = scmp.ge.s32.totalorder %s2338_s27, 2  ;;  %s1850_s16 = sand.u32 1, %s2326_s24  }
 0x2be   : > { %s1851_s17 = scalar_lea.sflag [#allocation3], %s1850_s16 }
 0x2bf   : > { %p2238_p7 = pnand %p2241_p4, %p2424_p6 }
 0x2c1   : > { %p2239_p8 = pneg %p2238_p7 }
 0x2c3   : > { %2321 = dma.done.wait (%p2239_p8), %s1851_s17, 8192  }
 0x2c4   : > { %2323 = vsyncadd (%p2239_p8), %s1851_s17, 4294959104  ;;  %p17_p9 = scmp.ge.s32.totalorder %s2407_s30, 4   ;;  %s3377_s24 = smov %s2330_s25 }
 0x2c5   : > { %s3378_s25 = smov %s2334_s26  ;;  %s3379_s26 = smov %s2418_s10 }
 0x2c6   : > { %s3380_s27 = smov %s2407_s30  ;;  %19 = sbr.rel (!%p17_p9) target bundleno = 3 (0x3), region = 83 }
 0x2cb   :  { %1857 = vsyncpa [#allocation3], 1 }
 0x2cc   :  { %1859 = vsyncpa [#allocation3 + $0x1], 1 }

</bundles_post_ra>
